<compile_context>
chip_gen: v7x
topology: tpu7x:2x2x1
jax: 0.10.0
libtpu: 0.0.40
codegen_flags: <defaults>
</compile_context>

<pallas_src>
import functools
import math

import jax
import jax.numpy as jnp
from jax import lax
from jax.experimental import pallas as pl
from jax.experimental.pallas import tpu as pltpu


_EPS = 1e-5
# Scoped-VMEM budget: well above the 16 MiB (v5e) / 32 MiB (v6e, v7x) scoped defaults,
# with headroom under v7x's 64 MiB physical VMEM.
_VMEM_LIMIT = 48 * 1024 * 1024


def _cparams(dims):
    return pltpu.CompilerParams(dimension_semantics=dims,
                                vmem_limit_bytes=_VMEM_LIMIT)


# ----------------------------------------------------------------------------
# Tile-size helpers
# ----------------------------------------------------------------------------
def _pick_tile_m(m, target=512):
    """Token-axis tile: full M when small (no pointless splitting of tiny inputs),
    otherwise the largest multiple-of-8 divisor of M that is <= target."""
    if m <= target:
        return m
    t = (target // 8) * 8
    while t >= 8 and m % t != 0:
        t -= 8
    return t if t >= 8 else m


def _pick_tile_f(f, target=512):
    """d_ff reduction tile: largest multiple-of-128 divisor of f <= target, else f."""
    if f <= target or f % 128 != 0:
        return f
    t = (target // 128) * 128
    while t >= 128 and f % t != 0:
        t -= 128
    return t if t >= 128 else f


# ----------------------------------------------------------------------------
# In-kernel LayerNorm helper (PyTorch semantics: unbiased std, divide by std+eps)
# ----------------------------------------------------------------------------
def _layernorm_f32(x, gamma, beta, eps):
    d = x.shape[-1]
    mean = jnp.mean(x, axis=-1, keepdims=True)
    c = x - mean
    # torch.Tensor.std() defaults to the unbiased estimator (ddof=1).
    std = jnp.sqrt(jnp.sum(c * c, axis=-1, keepdims=True) * (1.0 / (d - 1)))
    inv = pl.reciprocal(std + eps, approx=True)      # EUP slot; VPU stays free
    return gamma * (c * inv) + beta


# ----------------------------------------------------------------------------
# Fused LN + linear (optionally split into several lane-dense outputs)
# ----------------------------------------------------------------------------
def _ln_linear_kernel(x_ref, g_ref, beta_ref, w_ref, b_ref, *o_refs, eps):
    x = x_ref[...].astype(jnp.float32)
    xn = _layernorm_f32(x, g_ref[...], beta_ref[...], eps)
    # bf16 weights + bf16 activations -> bf16 MXU path, f32 accumulation.
    y = jnp.dot(xn.astype(w_ref.dtype), w_ref[...],
                preferred_element_type=jnp.float32) + b_ref[...]
    n_per = y.shape[-1] // len(o_refs)
    for idx, o_ref in enumerate(o_refs):
        o_ref[...] = y[:, idx * n_per:(idx + 1) * n_per].astype(o_ref.dtype)


def ln_linear(x2d, gamma, beta, w, bias, n_splits=1, *, eps=_EPS, tile_m=None):
    m, d = x2d.shape
    n = w.shape[1]
    n_per = n // n_splits
    tile_m = _pick_tile_m(m) if tile_m is None else tile_m
    assert m % tile_m == 0 and n % n_splits == 0
    return pl.pallas_call(
        functools.partial(_ln_linear_kernel, eps=eps),
        out_shape=tuple(jax.ShapeDtypeStruct((m, n_per), x2d.dtype)
                        for _ in range(n_splits)),
        grid_spec=pltpu.PrefetchScalarGridSpec(
            num_scalar_prefetch=0,
            grid=(m // tile_m,),
            in_specs=[
                pl.BlockSpec((tile_m, d), lambda i: (i, 0)),
                pl.BlockSpec((1, d), lambda i: (0, 0)),
                pl.BlockSpec((1, d), lambda i: (0, 0)),
                pl.BlockSpec((d, n), lambda i: (0, 0)),
                pl.BlockSpec((1, n), lambda i: (0, 0)),
            ],
            out_specs=tuple(pl.BlockSpec((tile_m, n_per), lambda i: (i, 0))
                            for _ in range(n_splits)),
        ),
        compiler_params=_cparams(("parallel",)),
    )(x2d, gamma, beta, w, bias)


# ----------------------------------------------------------------------------
# Plain linear (no LN) with split outputs — used for the encoder K/V projection
# ----------------------------------------------------------------------------
def _linear_split_kernel(x_ref, w_ref, b_ref, *o_refs):
    x = x_ref[...].astype(w_ref.dtype)
    y = jnp.dot(x, w_ref[...], preferred_element_type=jnp.float32) + b_ref[...]
    n_per = y.shape[-1] // len(o_refs)
    for idx, o_ref in enumerate(o_refs):
        o_ref[...] = y[:, idx * n_per:(idx + 1) * n_per].astype(o_ref.dtype)


def linear_split(x2d, w, bias, n_splits=1, *, tile_m=None):
    m, d = x2d.shape
    n = w.shape[1]
    n_per = n // n_splits
    tile_m = _pick_tile_m(m) if tile_m is None else tile_m
    assert m % tile_m == 0 and n % n_splits == 0
    return pl.pallas_call(
        _linear_split_kernel,
        out_shape=tuple(jax.ShapeDtypeStruct((m, n_per), x2d.dtype)
                        for _ in range(n_splits)),
        grid_spec=pltpu.PrefetchScalarGridSpec(
            num_scalar_prefetch=0,
            grid=(m // tile_m,),
            in_specs=[
                pl.BlockSpec((tile_m, d), lambda i: (i, 0)),
                pl.BlockSpec((d, n), lambda i: (0, 0)),
                pl.BlockSpec((1, n), lambda i: (0, 0)),
            ],
            out_specs=tuple(pl.BlockSpec((tile_m, n_per), lambda i: (i, 0))
                            for _ in range(n_splits)),
        ),
        compiler_params=_cparams(("parallel",)),
    )(x2d, w, bias)


# ----------------------------------------------------------------------------
# Output projection fused with the residual add: out = residual + ctx @ Wo + bo
# ----------------------------------------------------------------------------
def _proj_residual_kernel(x_ref, w_ref, b_ref, r_ref, o_ref):
    x = x_ref[...].astype(w_ref.dtype)
    y = jnp.dot(x, w_ref[...], preferred_element_type=jnp.float32) + b_ref[...]
    o_ref[...] = (r_ref[...].astype(jnp.float32) + y).astype(o_ref.dtype)


def linear_residual(x2d, w, bias, residual2d, *, tile_m=None):
    m, d = x2d.shape
    n = w.shape[1]
    tile_m = _pick_tile_m(m) if tile_m is None else tile_m
    assert m % tile_m == 0
    return pl.pallas_call(
        _proj_residual_kernel,
        out_shape=jax.ShapeDtypeStruct((m, n), residual2d.dtype),
        grid_spec=pltpu.PrefetchScalarGridSpec(
            num_scalar_prefetch=0,
            grid=(m // tile_m,),
            in_specs=[
                pl.BlockSpec((tile_m, d), lambda i: (i, 0)),
                pl.BlockSpec((d, n), lambda i: (0, 0)),
                pl.BlockSpec((1, n), lambda i: (0, 0)),
                pl.BlockSpec((tile_m, n), lambda i: (i, 0)),
            ],
            out_specs=pl.BlockSpec((tile_m, n), lambda i: (i, 0)),
        ),
        compiler_params=_cparams(("parallel",)),
    )(x2d, w, bias, residual2d)


# ----------------------------------------------------------------------------
# Attention: one batch element per grid step, ALL heads inside the kernel
# (128-wide blocks in and out; head split done in VMEM, mask DMA'd once per batch)
# ----------------------------------------------------------------------------
def _attention_kernel(q_ref, k_ref, v_ref, mask_ref, o_ref, *, head_count, scale):
    d = q_ref.shape[-1]
    dh = d // head_count
    q = q_ref[...]                                  # (Sq, D) f32
    k = k_ref[...]                                  # (Sk, D) f32
    v = v_ref[...]                                  # (Sk, D) f32
    mask = mask_ref[...]                            # ({1|Sq}, Sk) int32
    neg = jnp.float32(-1e9)
    outs = []
    for h in range(head_count):                     # static unroll over heads
        lo, hi = h * dh, (h + 1) * dh
        qh = q[:, lo:hi].astype(jnp.bfloat16)
        kh = k[:, lo:hi].astype(jnp.bfloat16)
        vh = v[:, lo:hi].astype(jnp.bfloat16)
        # scores = (q @ k^T) / sqrt(dh): contract the head dim, f32 accumulate
        s = lax.dot_general(qh, kh, (((1,), (1,)), ((), ())),
                            preferred_element_type=jnp.float32) * scale
        s = jnp.where(mask == 0, neg, s)            # masked_fill_(mask == 0, -1e9)
        s_max = jnp.max(s, axis=-1, keepdims=True)
        e = jnp.exp(s - s_max)                      # softmax stats stay in f32 (v5e VPU)
        p = e * pl.reciprocal(jnp.sum(e, axis=-1, keepdims=True), approx=True)
        # TODO(synk): training-mode dropout on p would use pltpu.prng_seed/prng_random_bits.
        outs.append(jnp.dot(p.astype(jnp.bfloat16), vh,
                            preferred_element_type=jnp.float32))
    # Lane-dense (Sq, D) store.
    o_ref[...] = jnp.concatenate(outs, axis=-1).astype(o_ref.dtype)
    # TODO(synk): for production Sk (>=2k) tile over Sk with an online-softmax (flash)
    # accumulator so VMEM stays bounded on v7x (64 MiB physical).


def attention(q, k, v, mask, head_count):
    """q: (B, Sq, D); k/v: (B, Sk, D); mask: (B, {1|Sq}, Sk) int32."""
    b, sq, d = q.shape
    sk = k.shape[1]
    mq = mask.shape[1]
    assert d % head_count == 0
    dh = d // head_count
    return pl.pallas_call(
        functools.partial(_attention_kernel, head_count=head_count,
                          scale=1.0 / math.sqrt(dh)),
        out_shape=jax.ShapeDtypeStruct((b, sq, d), q.dtype),
        grid_spec=pltpu.PrefetchScalarGridSpec(
            num_scalar_prefetch=0,
            grid=(b,),
            in_specs=[
                pl.BlockSpec((None, sq, d), lambda bi: (bi, 0, 0)),
                pl.BlockSpec((None, sk, d), lambda bi: (bi, 0, 0)),
                pl.BlockSpec((None, sk, d), lambda bi: (bi, 0, 0)),
                pl.BlockSpec((None, mq, sk), lambda bi: (bi, 0, 0)),
            ],
            out_specs=pl.BlockSpec((None, sq, d), lambda bi: (bi, 0, 0)),
        ),
        compiler_params=_cparams(("parallel",)),
    )(q, k, v, mask)


# ----------------------------------------------------------------------------
# FFN fused with LN2 and the residual: out = x + relu(LN2(x) @ W1 + b1) @ W2 + b2
# Token-tiled x d_ff-tiled with a resident f32 accumulator and a bf16 LN scratch.
# ----------------------------------------------------------------------------
def _ffn_kernel(x_ref, g_ref, beta_ref, w1_ref, b1_ref, w2_ref, b2_ref,
                o_ref, acc_ref, xn_ref, *, eps):
    kstep = pl.program_id(1)

    @pl.when(kstep == 0)
    def _():
        x = x_ref[...].astype(jnp.float32)
        xn = _layernorm_f32(x, g_ref[...], beta_ref[...], eps)
        xn_ref[...] = xn.astype(xn_ref.dtype)       # reused across all d_ff tiles
        acc_ref[...] = jnp.zeros_like(acc_ref)

    h = jnp.dot(xn_ref[...], w1_ref[...], preferred_element_type=jnp.float32)
    h = jnp.maximum(h + b1_ref[...], 0.0)
    # TODO(synk): training-mode dropout on h would use pltpu.prng_seed/prng_random_bits.
    acc_ref[...] += jnp.dot(h.astype(w2_ref.dtype), w2_ref[...],
                            preferred_element_type=jnp.float32)

    @pl.when(kstep == pl.num_programs(1) - 1)
    def _():
        o_ref[...] = (x_ref[...].astype(jnp.float32) + acc_ref[...]
                      + b2_ref[...]).astype(o_ref.dtype)


def feed_forward(x2d, gamma, beta, w1, b1, w2, b2, *, eps=_EPS,
                 tile_m=None, tile_f=None):
    m, d = x2d.shape
    f = w1.shape[1]
    tile_m = _pick_tile_m(m) if tile_m is None else tile_m
    tile_f = _pick_tile_f(f) if tile_f is None else tile_f
    assert m % tile_m == 0 and f % tile_f == 0

    cost = pl.CostEstimate(
        flops=4 * m * d * f,
        transcendentals=m,
        bytes_accessed=(2 * m * d * x2d.dtype.itemsize
                        + d * f * w1.dtype.itemsize + f * b1.dtype.itemsize
                        + f * d * w2.dtype.itemsize + d * b2.dtype.itemsize),
    )
    return pl.pallas_call(
        functools.partial(_ffn_kernel, eps=eps),
        out_shape=jax.ShapeDtypeStruct((m, d), x2d.dtype),
        grid_spec=pltpu.PrefetchScalarGridSpec(
            num_scalar_prefetch=0,
            grid=(m // tile_m, f // tile_f),
            in_specs=[
                pl.BlockSpec((tile_m, d), lambda i, k: (i, 0)),   # x (residual + LN src)
                pl.BlockSpec((1, d), lambda i, k: (0, 0)),        # ln gamma
                pl.BlockSpec((1, d), lambda i, k: (0, 0)),        # ln beta
                pl.BlockSpec((d, tile_f), lambda i, k: (0, k)),   # W1 column block
                pl.BlockSpec((1, tile_f), lambda i, k: (0, k)),   # b1 chunk
                pl.BlockSpec((tile_f, d), lambda i, k: (k, 0)),   # W2 row block
                pl.BlockSpec((1, d), lambda i, k: (0, 0)),        # b2
            ],
            out_specs=pl.BlockSpec((tile_m, d), lambda i, k: (i, 0)),  # resident over k
            scratch_shapes=[pltpu.VMEM((tile_m, d), jnp.float32),
                            pltpu.VMEM((tile_m, d), w1.dtype)],
        ),
        compiler_params=_cparams(("parallel", "arbitrary")),
        cost_estimate=cost,
    )(x2d, gamma, beta, w1, b1, w2, b2)


# ----------------------------------------------------------------------------
# DecoderBlock forward (dropout = identity at inference)
# ----------------------------------------------------------------------------
def decoder_block(x, encoder_output, encoder_mask, decoder_mask, params, head_count):
    b, s, d = x.shape
    se = encoder_output.shape[1]

    # Drop the singleton head dim and convert to int32 0/1 so the in-kernel
    # (mask == 0) test is not a float-equality on a broadcast f32 tensor.
    dec_mask = (decoder_mask[:, 0] != 0).astype(jnp.int32)   # (B, Sq, Sq)
    enc_mask = (encoder_mask[:, 0] != 0).astype(jnp.int32)   # (B, 1,  Se)

    x2d = x.reshape(b * s, d)

    # 1) masked self-attention sub-layer: LN0 fused into QKV, residual into Wo
    sa = params["self_attn"]
    q2d, k2d, v2d = ln_linear(x2d, params["ln0_g"], params["ln0_b"],
                              sa["w_qkv"], sa["b_qkv"], n_splits=3)
    ctx = attention(q2d.reshape(b, s, d), k2d.reshape(b, s, d),
                    v2d.reshape(b, s, d), dec_mask, head_count)
    x2d = linear_residual(ctx.reshape(b * s, d), sa["wo"], sa["bo"], x2d)

    # 2) cross-attention: LN1 fused into Q; K/V come from encoder output (no LN)
    ca = params["cross_attn"]
    q2d = ln_linear(x2d, params["ln1_g"], params["ln1_b"],
                    ca["wq"], ca["bq"], n_splits=1)[0]
    k2d, v2d = linear_split(encoder_output.reshape(b * se, d),
                            ca["w_kv"], ca["b_kv"], n_splits=2)
    ctx = attention(q2d.reshape(b, s, d), k2d.reshape(b, se, d),
                    v2d.reshape(b, se, d), enc_mask, head_count)
    x2d = linear_residual(ctx.reshape(b * s, d), ca["wo"], ca["bo"], x2d)

    # 3) position-wise feed-forward: LN2 + both matmuls + residual in one kernel
    x2d = feed_forward(x2d, params["ln2_g"], params["ln2_b"],
                       params["w1"], params["b1"], params["w2"], params["b2"])
    return x2d.reshape(b, s, d)
    # TODO(synk): attention_scores attribute (stored on the torch module, never
    # returned) is not materialized.


# ----------------------------------------------------------------------------
# Pure-JAX f32 reference (mirrors the PyTorch module)
# ----------------------------------------------------------------------------
def _ln_ref(x, g, beta, eps=_EPS):
    mean = jnp.mean(x, axis=-1, keepdims=True)
    std = jnp.sqrt(jnp.var(x, axis=-1, ddof=1, keepdims=True))
    return g * (x - mean) / (std + eps) + beta


def _mha_ref(q_in, kv_in, mask, p, h):
    bsz, sq, d = q_in.shape
    sk = kv_in.shape[1]
    dh = d // h
    q = (q_in @ p["wq"] + p["bq"]).reshape(bsz, sq, h, dh).transpose(0, 2, 1, 3)
    k = (kv_in @ p["wk"] + p["bk"]).reshape(bsz, sk, h, dh).transpose(0, 2, 1, 3)
    v = (kv_in @ p["wv"] + p["bv"]).reshape(bsz, sk, h, dh).transpose(0, 2, 1, 3)
    s = jnp.einsum("bhqd,bhkd->bhqk", q, k) / math.sqrt(dh)
    s = jnp.where(mask == 0, -1e9, s)
    a = jax.nn.softmax(s, axis=-1)
    o = jnp.einsum("bhqk,bhkd->bhqd", a, v).transpose(0, 2, 1, 3).reshape(bsz, sq, d)
    return o @ p["wo"] + p["bo"]


def _ffn_ref(x, params):
    h = jnp.maximum(x @ params["w1"] + params["b1"], 0.0)
    return h @ params["w2"] + params["b2"]


def _decoder_block_ref(x, enc, enc_mask, dec_mask, params, h):
    xn = _ln_ref(x, params["ln0_g"], params["ln0_b"])
    x = x + _mha_ref(xn, xn, dec_mask, params["self_attn"], h)
    xn = _ln_ref(x, params["ln1_g"], params["ln1_b"])
    x = x + _mha_ref(xn, enc, enc_mask, params["cross_attn"], h)
    xn = _ln_ref(x, params["ln2_g"], params["ln2_b"])
    return x + _ffn_ref(xn, params)


# ----------------------------------------------------------------------------
if __name__ == "__main__":
    # Small but lane-dense shapes (d_model / d_ff multiples of 128).
    B, S_DEC, S_ENC, D, H, F = 2, 16, 16, 128, 4, 256
    DROPOUT_P = 0.1  # nn.Dropout is identity at inference — not applied here.

    kit = iter(jax.random.split(jax.random.PRNGKey(0), 64))

    def linear_params(fan_in, fan_out):
        """Returns (bf16 weight for the kernels, identical-valued f32 weight for the
        reference, f32 bias). Weights are quantized once so both paths see the same
        weight values and only activation rounding differs."""
        bound = 1.0 / math.sqrt(fan_in)
        w = jax.random.uniform(next(kit), (fan_in, fan_out), jnp.float32, -bound, bound)
        bvec = jax.random.uniform(next(kit), (1, fan_out), jnp.float32, -bound, bound)
        wb = w.astype(jnp.bfloat16)
        return wb, wb.astype(jnp.float32), bvec

    def ln_params():
        g = 1.0 + 0.1 * jax.random.normal(next(kit), (1, D), jnp.float32)
        beta = 0.1 * jax.random.normal(next(kit), (1, D), jnp.float32)
        return g, beta

    def attn_params():
        wq_b, wq_f, bq = linear_params(D, D)
        wk_b, wk_f, bk = linear_params(D, D)
        wv_b, wv_f, bv = linear_params(D, D)
        wo_b, wo_f, bo = linear_params(D, D)
        pallas_p = {
            "w_qkv": jnp.concatenate([wq_b, wk_b, wv_b], axis=1),   # (D, 3D) bf16
            "b_qkv": jnp.concatenate([bq, bk, bv], axis=1),         # (1, 3D) f32
            "wq": wq_b, "bq": bq,
            "w_kv": jnp.concatenate([wk_b, wv_b], axis=1),          # (D, 2D) bf16
            "b_kv": jnp.concatenate([bk, bv], axis=1),
            "wo": wo_b, "bo": bo,
        }
        ref_p = {"wq": wq_f, "bq": bq, "wk": wk_f, "bk": bk,
                 "wv": wv_f, "bv": bv, "wo": wo_f, "bo": bo}
        return pallas_p, ref_p

    params, ref_params = {}, {}
    for name in ("ln0", "ln1", "ln2"):
        g, beta = ln_params()
        params[name + "_g"], params[name + "_b"] = g, beta
        ref_params[name + "_g"], ref_params[name + "_b"] = g, beta
    params["self_attn"], ref_params["self_attn"] = attn_params()
    params["cross_attn"], ref_params["cross_attn"] = attn_params()
    w1_b, w1_f, b1 = linear_params(D, F)
    w2_b, w2_f, b2 = linear_params(F, D)
    params.update(w1=w1_b, b1=b1, w2=w2_b, b2=b2)
    ref_params.update(w1=w1_f, b1=b1, w2=w2_f, b2=b2)

    x = jax.random.normal(next(kit), (B, S_DEC, D), jnp.float32)
    encoder_output = jax.random.normal(next(kit), (B, S_ENC, D), jnp.float32)

    # Causal decoder mask (B, 1, S_dec, S_dec); encoder padding mask (B, 1, 1, S_enc)
    causal = jnp.tril(jnp.ones((S_DEC, S_DEC), jnp.float32))
    decoder_mask = jnp.broadcast_to(causal, (B, 1, S_DEC, S_DEC))
    enc_valid = jnp.stack(
        [jnp.ones((S_ENC,), jnp.float32),
         jnp.concatenate([jnp.ones((S_ENC - 3,), jnp.float32),
                          jnp.zeros((3,), jnp.float32)])], axis=0)
    encoder_mask = enc_valid.reshape(B, 1, 1, S_ENC)

    fwd = jax.jit(functools.partial(decoder_block, head_count=H))
    out = fwd(x, encoder_output, encoder_mask, decoder_mask, params)
    out = jax.block_until_ready(out)

    ref = _decoder_block_ref(x, encoder_output, encoder_mask, decoder_mask,
                             ref_params, H)

    assert out.shape == (B, S_DEC, D)
    max_err = float(jnp.max(jnp.abs(out - ref)))
    # Tolerance reflects intentional bf16 MXU inputs (f32 accumulation / stats).
    assert jnp.allclose(out, ref, atol=3e-2, rtol=3e-2), f"max abs err {max_err}"

    print("KERNEL_OK")
</pallas_src>

<mosaic_0001>
module attributes {stable_mosaic.version = 11 : i64} {
  func.func @_proj_residual_kernel(%arg0: i32, %arg1: memref<32x128xf32, #tpu.memory_space<vmem>>, %arg2: memref<128x128xbf16, #tpu.memory_space<vmem>>, %arg3: memref<1x128xf32, #tpu.memory_space<vmem>>, %arg4: memref<32x128xf32, #tpu.memory_space<vmem>>, %arg5: memref<32x128xf32, #tpu.memory_space<vmem>>) attributes {dimension_semantics = [#tpu.dimension_semantics<parallel>], iteration_bounds = array<i64: 1>, scalar_prefetch = 0 : i64, scratch_operands = 0 : i64, tpu.core_type = #tpu.core_type<tc>, window_params = [{transform_indices = @transform_0, window_bounds = array<i64: 32, 128>}, {pipeline_mode = #tpu.pipeline_mode<synchronous>, transform_indices = @transform_1, window_bounds = array<i64: 128, 128>}, {pipeline_mode = #tpu.pipeline_mode<synchronous>, transform_indices = @transform_2, window_bounds = array<i64: 1, 128>}, {transform_indices = @transform_3, window_bounds = array<i64: 32, 128>}, {transform_indices = @transform_4, window_bounds = array<i64: 32, 128>}]} {
    %c0 = arith.constant 0 : index
    %c0_0 = arith.constant 0 : index
    %0 = vector.load %arg1[%c0, %c0_0] : memref<32x128xf32, #tpu.memory_space<vmem>>, vector<32x128xf32>
    %1 = arith.truncf %0 : vector<32x128xf32> to vector<32x128xbf16>
    %c0_1 = arith.constant 0 : index
    %c0_2 = arith.constant 0 : index
    %2 = vector.load %arg2[%c0_1, %c0_2] : memref<128x128xbf16, #tpu.memory_space<vmem>>, vector<128x128xbf16>
    %cst = arith.constant dense<0.000000e+00> : vector<32x128xf32>
    %3 = tpu.matmul %1, %2, %cst {dimension_numbers = #tpu.dot_dimension_numbers<[1], [0], [0], [1], [0, 0, 1, 1], [], []>} : vector<32x128xbf16>, vector<128x128xbf16>, vector<32x128xf32> -> vector<32x128xf32>
    %c0_3 = arith.constant 0 : index
    %c0_4 = arith.constant 0 : index
    %4 = vector.load %arg3[%c0_3, %c0_4] : memref<1x128xf32, #tpu.memory_space<vmem>>, vector<1x128xf32>
    %5 = vector.broadcast %4 : vector<1x128xf32> to vector<32x128xf32>
    %6 = arith.addf %3, %5 : vector<32x128xf32>
    %c0_5 = arith.constant 0 : index
    %c0_6 = arith.constant 0 : index
    %7 = vector.load %arg4[%c0_5, %c0_6] : memref<32x128xf32, #tpu.memory_space<vmem>>, vector<32x128xf32>
    %8 = arith.addf %7, %6 : vector<32x128xf32>
    %c0_7 = arith.constant 0 : index
    %c0_8 = arith.constant 0 : index
    %9 = vector.load %arg5[%c0_7, %c0_8] : memref<32x128xf32, #tpu.memory_space<vmem>>, vector<32x128xf32>
    tpu.vector_store %arg5[%c0_7, %c0_8], %8 {strides = array<i32>} : memref<32x128xf32, #tpu.memory_space<vmem>>, vector<32x128xf32>,
    return
  }
  func.func @transform_0(%arg0: i32) -> (i32, i32) {
    %c0_i32 = arith.constant 0 : i32
    %c0_i32_0 = arith.constant 0 : i32
    return %arg0, %c0_i32 : i32, i32
  }
  func.func @transform_1(%arg0: i32) -> (i32, i32) {
    %c0_i32 = arith.constant 0 : i32
    %c0_i32_0 = arith.constant 0 : i32
    %c0_i32_1 = arith.constant 0 : i32
    return %c0_i32, %c0_i32_0 : i32, i32
  }
  func.func @transform_2(%arg0: i32) -> (i32, i32) {
    %c0_i32 = arith.constant 0 : i32
    %c0_i32_0 = arith.constant 0 : i32
    %c0_i32_1 = arith.constant 0 : i32
    return %c0_i32, %c0_i32_0 : i32, i32
  }
  func.func @transform_3(%arg0: i32) -> (i32, i32) {
    %c0_i32 = arith.constant 0 : i32
    %c0_i32_0 = arith.constant 0 : i32
    return %arg0, %c0_i32 : i32, i32
  }
  func.func @transform_4(%arg0: i32) -> (i32, i32) {
    %c0_i32 = arith.constant 0 : i32
    %c0_i32_0 = arith.constant 0 : i32
    return %arg0, %c0_i32 : i32, i32
  }
}

module attributes {stable_mosaic.version = 11 : i64} {
  func.func @_ln_linear_kernel(%arg0: i32, %arg1: memref<32x128xf32, #tpu.memory_space<vmem>>, %arg2: memref<1x128xf32, #tpu.memory_space<vmem>>, %arg3: memref<1x128xf32, #tpu.memory_space<vmem>>, %arg4: memref<128x384xbf16, #tpu.memory_space<vmem>>, %arg5: memref<1x384xf32, #tpu.memory_space<vmem>>, %arg6: memref<32x128xf32, #tpu.memory_space<vmem>>, %arg7: memref<32x128xf32, #tpu.memory_space<vmem>>, %arg8: memref<32x128xf32, #tpu.memory_space<vmem>>) attributes {dimension_semantics = [#tpu.dimension_semantics<parallel>], iteration_bounds = array<i64: 1>, scalar_prefetch = 0 : i64, scratch_operands = 0 : i64, tpu.core_type = #tpu.core_type<tc>, window_params = [{transform_indices = @transform_0, window_bounds = array<i64: 32, 128>}, {pipeline_mode = #tpu.pipeline_mode<synchronous>, transform_indices = @transform_1, window_bounds = array<i64: 1, 128>}, {pipeline_mode = #tpu.pipeline_mode<synchronous>, transform_indices = @transform_2, window_bounds = array<i64: 1, 128>}, {pipeline_mode = #tpu.pipeline_mode<synchronous>, transform_indices = @transform_3, window_bounds = array<i64: 128, 384>}, {pipeline_mode = #tpu.pipeline_mode<synchronous>, transform_indices = @transform_4, window_bounds = array<i64: 1, 384>}, {transform_indices = @transform_5, window_bounds = array<i64: 32, 128>}, {transform_indices = @transform_6, window_bounds = array<i64: 32, 128>}, {transform_indices = @transform_7, window_bounds = array<i64: 32, 128>}]} {
    %c0 = arith.constant 0 : index
    %c0_0 = arith.constant 0 : index
    %0 = vector.load %arg1[%c0, %c0_0] : memref<32x128xf32, #tpu.memory_space<vmem>>, vector<32x128xf32>
    %c0_1 = arith.constant 0 : index
    %c0_2 = arith.constant 0 : index
    %1 = vector.load %arg2[%c0_1, %c0_2] : memref<1x128xf32, #tpu.memory_space<vmem>>, vector<1x128xf32>
    %c0_3 = arith.constant 0 : index
    %c0_4 = arith.constant 0 : index
    %2 = vector.load %arg3[%c0_3, %c0_4] : memref<1x128xf32, #tpu.memory_space<vmem>>, vector<1x128xf32>
    %cst = arith.constant dense<0.000000e+00> : vector<32xf32>
    %3 = vector.multi_reduction <add>, %0, %cst [1] : vector<32x128xf32> to vector<32xf32>
    %4 = vector.shape_cast %3 : vector<32xf32> to vector<32x1xf32>
    %cst_5 = arith.constant 1.280000e+02 : f32
    %5 = vector.broadcast %cst_5 : f32 to vector<32x1xf32>
    %6 = arith.divf %4, %5 : vector<32x1xf32>
    %7 = vector.broadcast %6 : vector<32x1xf32> to vector<32x128xf32>
    %8 = arith.subf %0, %7 : vector<32x128xf32>
    %9 = arith.mulf %8, %8 : vector<32x128xf32>
    %cst_6 = arith.constant dense<0.000000e+00> : vector<32xf32>
    %10 = vector.multi_reduction <add>, %9, %cst_6 [1] : vector<32x128xf32> to vector<32xf32>
    %11 = vector.shape_cast %10 : vector<32xf32> to vector<32x1xf32>
    %cst_7 = arith.constant 0.00787401571 : f32
    %12 = vector.broadcast %cst_7 : f32 to vector<32x1xf32>
    %13 = arith.mulf %11, %12 : vector<32x1xf32>
    %14 = math.sqrt %13 : vector<32x1xf32>
    %cst_8 = arith.constant 9.99999974E-6 : f32
    %15 = vector.broadcast %cst_8 : f32 to vector<32x1xf32>
    %16 = arith.addf %14, %15 : vector<32x1xf32>
    %17 = tpu.reciprocal %16 {approx = true} : vector<32x1xf32> -> vector<32x1xf32>
    %18 = vector.broadcast %17 : vector<32x1xf32> to vector<32x128xf32>
    %19 = arith.mulf %8, %18 : vector<32x128xf32>
    %20 = vector.broadcast %1 : vector<1x128xf32> to vector<32x128xf32>
    %21 = arith.mulf %20, %19 : vector<32x128xf32>
    %22 = vector.broadcast %2 : vector<1x128xf32> to vector<32x128xf32>
    %23 = arith.addf %21, %22 : vector<32x128xf32>
    %24 = arith.truncf %23 : vector<32x128xf32> to vector<32x128xbf16>
    %c0_9 = arith.constant 0 : index
    %c0_10 = arith.constant 0 : index
    %25 = vector.load %arg4[%c0_9, %c0_10] : memref<128x384xbf16, #tpu.memory_space<vmem>>, vector<128x384xbf16>
    %cst_11 = arith.constant dense<0.000000e+00> : vector<32x384xf32>
    %26 = tpu.matmul %24, %25, %cst_11 {dimension_numbers = #tpu.dot_dimension_numbers<[1], [0], [0], [1], [0, 0, 1, 1], [], []>} : vector<32x128xbf16>, vector<128x384xbf16>, vector<32x384xf32> -> vector<32x384xf32>
    %c0_12 = arith.constant 0 : index
    %c0_13 = arith.constant 0 : index
    %27 = vector.load %arg5[%c0_12, %c0_13] : memref<1x384xf32, #tpu.memory_space<vmem>>, vector<1x384xf32>
    %28 = vector.broadcast %27 : vector<1x384xf32> to vector<32x384xf32>
    %29 = arith.addf %26, %28 : vector<32x384xf32>
    %30 = vector.extract_strided_slice %29 {offsets = [0, 0], sizes = [32, 128], strides = [1, 1]} : vector<32x384xf32> to vector<32x128xf32>
    %c0_14 = arith.constant 0 : index
    %c0_15 = arith.constant 0 : index
    %31 = vector.load %arg6[%c0_14, %c0_15] : memref<32x128xf32, #tpu.memory_space<vmem>>, vector<32x128xf32>
    tpu.vector_store %arg6[%c0_14, %c0_15], %30 {strides = array<i32>} : memref<32x128xf32, #tpu.memory_space<vmem>>, vector<32x128xf32>,
    %32 = vector.extract_strided_slice %29 {offsets = [0, 128], sizes = [32, 128], strides = [1, 1]} : vector<32x384xf32> to vector<32x128xf32>
    %c0_16 = arith.constant 0 : index
    %c0_17 = arith.constant 0 : index
    %33 = vector.load %arg7[%c0_16, %c0_17] : memref<32x128xf32, #tpu.memory_space<vmem>>, vector<32x128xf32>
    tpu.vector_store %arg7[%c0_16, %c0_17], %32 {strides = array<i32>} : memref<32x128xf32, #tpu.memory_space<vmem>>, vector<32x128xf32>,
    %34 = vector.extract_strided_slice %29 {offsets = [0, 256], sizes = [32, 128], strides = [1, 1]} : vector<32x384xf32> to vector<32x128xf32>
    %c0_18 = arith.constant 0 : index
    %c0_19 = arith.constant 0 : index
    %35 = vector.load %arg8[%c0_18, %c0_19] : memref<32x128xf32, #tpu.memory_space<vmem>>, vector<32x128xf32>
    tpu.vector_store %arg8[%c0_18, %c0_19], %34 {strides = array<i32>} : memref<32x128xf32, #tpu.memory_space<vmem>>, vector<32x128xf32>,
    return
  }
  func.func @transform_0(%arg0: i32) -> (i32, i32) {
    %c0_i32 = arith.constant 0 : i32
    %c0_i32_0 = arith.constant 0 : i32
    return %arg0, %c0_i32 : i32, i32
  }
  func.func @transform_1(%arg0: i32) -> (i32, i32) {
    %c0_i32 = arith.constant 0 : i32
    %c0_i32_0 = arith.constant 0 : i32
    %c0_i32_1 = arith.constant 0 : i32
    return %c0_i32, %c0_i32_0 : i32, i32
  }
  func.func @transform_2(%arg0: i32) -> (i32, i32) {
    %c0_i32 = arith.constant 0 : i32
    %c0_i32_0 = arith.constant 0 : i32
    %c0_i32_1 = arith.constant 0 : i32
    return %c0_i32, %c0_i32_0 : i32, i32
  }
  func.func @transform_3(%arg0: i32) -> (i32, i32) {
    %c0_i32 = arith.constant 0 : i32
    %c0_i32_0 = arith.constant 0 : i32
    %c0_i32_1 = arith.constant 0 : i32
    return %c0_i32, %c0_i32_0 : i32, i32
  }
  func.func @transform_4(%arg0: i32) -> (i32, i32) {
    %c0_i32 = arith.constant 0 : i32
    %c0_i32_0 = arith.constant 0 : i32
    %c0_i32_1 = arith.constant 0 : i32
    return %c0_i32, %c0_i32_0 : i32, i32
  }
  func.func @transform_5(%arg0: i32) -> (i32, i32) {
    %c0_i32 = arith.constant 0 : i32
    %c0_i32_0 = arith.constant 0 : i32
    return %arg0, %c0_i32 : i32, i32
  }
  func.func @transform_6(%arg0: i32) -> (i32, i32) {
    %c0_i32 = arith.constant 0 : i32
    %c0_i32_0 = arith.constant 0 : i32
    return %arg0, %c0_i32 : i32, i32
  }
  func.func @transform_7(%arg0: i32) -> (i32, i32) {
    %c0_i32 = arith.constant 0 : i32
    %c0_i32_0 = arith.constant 0 : i32
    return %arg0, %c0_i32 : i32, i32
  }
}

module attributes {stable_mosaic.version = 11 : i64} {
  func.func @_attention_kernel(%arg0: i32, %arg1: memref<1x16x128xf32, #tpu.memory_space<vmem>>, %arg2: memref<1x16x128xf32, #tpu.memory_space<vmem>>, %arg3: memref<1x16x128xf32, #tpu.memory_space<vmem>>, %arg4: memref<1x16x16xi32, #tpu.memory_space<vmem>>, %arg5: memref<1x16x128xf32, #tpu.memory_space<vmem>>) attributes {dimension_semantics = [#tpu.dimension_semantics<parallel>], iteration_bounds = array<i64: 2>, scalar_prefetch = 0 : i64, scratch_operands = 0 : i64, tpu.core_type = #tpu.core_type<tc>, window_params = [{transform_indices = @transform_0, window_bounds = array<i64: 1, 16, 128>}, {transform_indices = @transform_1, window_bounds = array<i64: 1, 16, 128>}, {transform_indices = @transform_2, window_bounds = array<i64: 1, 16, 128>}, {transform_indices = @transform_3, window_bounds = array<i64: 1, 16, 16>}, {transform_indices = @transform_4, window_bounds = array<i64: 1, 16, 128>}]} {
    %c0 = arith.constant 0 : index
    %c0_0 = arith.constant 0 : index
    %c0_1 = arith.constant 0 : index
    %0 = vector.load %arg1[%c0, %c0_0, %c0_1] : memref<1x16x128xf32, #tpu.memory_space<vmem>>, vector<1x16x128xf32>
    %1 = vector.shape_cast %0 : vector<1x16x128xf32> to vector<16x128xf32>
    %c0_2 = arith.constant 0 : index
    %c0_3 = arith.constant 0 : index
    %c0_4 = arith.constant 0 : index
    %2 = vector.load %arg2[%c0_2, %c0_3, %c0_4] : memref<1x16x128xf32, #tpu.memory_space<vmem>>, vector<1x16x128xf32>
    %3 = vector.shape_cast %2 : vector<1x16x128xf32> to vector<16x128xf32>
    %c0_5 = arith.constant 0 : index
    %c0_6 = arith.constant 0 : index
    %c0_7 = arith.constant 0 : index
    %4 = vector.load %arg3[%c0_5, %c0_6, %c0_7] : memref<1x16x128xf32, #tpu.memory_space<vmem>>, vector<1x16x128xf32>
    %5 = vector.shape_cast %4 : vector<1x16x128xf32> to vector<16x128xf32>
    %c0_8 = arith.constant 0 : index
    %c0_9 = arith.constant 0 : index
    %c0_10 = arith.constant 0 : index
    %6 = vector.load %arg4[%c0_8, %c0_9, %c0_10] : memref<1x16x16xi32, #tpu.memory_space<vmem>>, vector<1x16x16xi32>
    %7 = vector.shape_cast %6 : vector<1x16x16xi32> to vector<16x16xi32>
    %8 = vector.extract_strided_slice %1 {offsets = [0, 0], sizes = [16, 32], strides = [1, 1]} : vector<16x128xf32> to vector<16x32xf32>
    %9 = arith.truncf %8 : vector<16x32xf32> to vector<16x32xbf16>
    %10 = vector.extract_strided_slice %3 {offsets = [0, 0], sizes = [16, 32], strides = [1, 1]} : vector<16x128xf32> to vector<16x32xf32>
    %11 = arith.truncf %10 : vector<16x32xf32> to vector<16x32xbf16>
    %12 = vector.extract_strided_slice %5 {offsets = [0, 0], sizes = [16, 32], strides = [1, 1]} : vector<16x128xf32> to vector<16x32xf32>
    %13 = arith.truncf %12 : vector<16x32xf32> to vector<16x32xbf16>
    %cst = arith.constant dense<0.000000e+00> : vector<16x16xf32>
    %14 = tpu.matmul %9, %11, %cst {dimension_numbers = #tpu.dot_dimension_numbers<[1], [1], [0], [0], [0, 0, 1, 0], [], []>} : vector<16x32xbf16>, vector<16x32xbf16>, vector<16x16xf32> -> vector<16x16xf32>
    %cst_11 = arith.constant 0.176776692 : f32
    %15 = vector.broadcast %cst_11 : f32 to vector<16x16xf32>
    %16 = arith.mulf %14, %15 : vector<16x16xf32>
    %c0_i32 = arith.constant 0 : i32
    %17 = vector.broadcast %c0_i32 : i32 to vector<16x16xi32>
    %18 = arith.cmpi eq, %7, %17 : vector<16x16xi32>
    %cst_12 = arith.constant -1.000000e+09 : f32
    %19 = vector.broadcast %cst_12 : f32 to vector<16x16xf32>
    %20 = arith.select %18, %19, %16 : vector<16x16xi1>, vector<16x16xf32>
    %cst_13 = arith.constant dense<0xFF800000> : vector<16xf32>
    %21 = vector.multi_reduction <maximumf>, %20, %cst_13 [1] : vector<16x16xf32> to vector<16xf32>
    %22 = vector.shape_cast %21 : vector<16xf32> to vector<16x1xf32>
    %23 = vector.broadcast %22 : vector<16x1xf32> to vector<16x16xf32>
    %24 = arith.subf %20, %23 : vector<16x16xf32>
    %25 = math.exp %24 : vector<16x16xf32>
    %cst_14 = arith.constant dense<0.000000e+00> : vector<16xf32>
    %26 = vector.multi_reduction <add>, %25, %cst_14 [1] : vector<16x16xf32> to vector<16xf32>
    %27 = vector.shape_cast %26 : vector<16xf32> to vector<16x1xf32>
    %28 = tpu.reciprocal %27 {approx = true} : vector<16x1xf32> -> vector<16x1xf32>
    %29 = vector.broadcast %28 : vector<16x1xf32> to vector<16x16xf32>
    %30 = arith.mulf %25, %29 : vector<16x16xf32>
    %31 = arith.truncf %30 : vector<16x16xf32> to vector<16x16xbf16>
    %cst_15 = arith.constant dense<0.000000e+00> : vector<16x32xf32>
    %32 = tpu.matmul %31, %13, %cst_15 {dimension_numbers = #tpu.dot_dimension_numbers<[1], [0], [0], [1], [0, 0, 1, 1], [], []>} : vector<16x16xbf16>, vector<16x32xbf16>, vector<16x32xf32> -> vector<16x32xf32>
    %33 = vector.extract_strided_slice %1 {offsets = [0, 32], sizes = [16, 32], strides = [1, 1]} : vector<16x128xf32> to vector<16x32xf32>
    %34 = arith.truncf %33 : vector<16x32xf32> to vector<16x32xbf16>
    %35 = vector.extract_strided_slice %3 {offsets = [0, 32], sizes = [16, 32], strides = [1, 1]} : vector<16x128xf32> to vector<16x32xf32>
    %36 = arith.truncf %35 : vector<16x32xf32> to vector<16x32xbf16>
    %37 = vector.extract_strided_slice %5 {offsets = [0, 32], sizes = [16, 32], strides = [1, 1]} : vector<16x128xf32> to vector<16x32xf32>
    %38 = arith.truncf %37 : vector<16x32xf32> to vector<16x32xbf16>
    %cst_16 = arith.constant dense<0.000000e+00> : vector<16x16xf32>
    %39 = tpu.matmul %34, %36, %cst_16 {dimension_numbers = #tpu.dot_dimension_numbers<[1], [1], [0], [0], [0, 0, 1, 0], [], []>} : vector<16x32xbf16>, vector<16x32xbf16>, vector<16x16xf32> -> vector<16x16xf32>
    %cst_17 = arith.constant 0.176776692 : f32
    %40 = vector.broadcast %cst_17 : f32 to vector<16x16xf32>
    %41 = arith.mulf %39, %40 : vector<16x16xf32>
    %c0_i32_18 = arith.constant 0 : i32
    %42 = vector.broadcast %c0_i32_18 : i32 to vector<16x16xi32>
    %43 = arith.cmpi eq, %7, %42 : vector<16x16xi32>
    %cst_19 = arith.constant -1.000000e+09 : f32
    %44 = vector.broadcast %cst_19 : f32 to vector<16x16xf32>
    %45 = arith.select %43, %44, %41 : vector<16x16xi1>, vector<16x16xf32>
    %cst_20 = arith.constant dense<0xFF800000> : vector<16xf32>
    %46 = vector.multi_reduction <maximumf>, %45, %cst_20 [1] : vector<16x16xf32> to vector<16xf32>
    %47 = vector.shape_cast %46 : vector<16xf32> to vector<16x1xf32>
    %48 = vector.broadcast %47 : vector<16x1xf32> to vector<16x16xf32>
    %49 = arith.subf %45, %48 : vector<16x16xf32>
    %50 = math.exp %49 : vector<16x16xf32>
    %cst_21 = arith.constant dense<0.000000e+00> : vector<16xf32>
    %51 = vector.multi_reduction <add>, %50, %cst_21 [1] : vector<16x16xf32> to vector<16xf32>
    %52 = vector.shape_cast %51 : vector<16xf32> to vector<16x1xf32>
    %53 = tpu.reciprocal %52 {approx = true} : vector<16x1xf32> -> vector<16x1xf32>
    %54 = vector.broadcast %53 : vector<16x1xf32> to vector<16x16xf32>
    %55 = arith.mulf %50, %54 : vector<16x16xf32>
    %56 = arith.truncf %55 : vector<16x16xf32> to vector<16x16xbf16>
    %cst_22 = arith.constant dense<0.000000e+00> : vector<16x32xf32>
    %57 = tpu.matmul %56, %38, %cst_22 {dimension_numbers = #tpu.dot_dimension_numbers<[1], [0], [0], [1], [0, 0, 1, 1], [], []>} : vector<16x16xbf16>, vector<16x32xbf16>, vector<16x32xf32> -> vector<16x32xf32>
    %58 = vector.extract_strided_slice %1 {offsets = [0, 64], sizes = [16, 32], strides = [1, 1]} : vector<16x128xf32> to vector<16x32xf32>
    %59 = arith.truncf %58 : vector<16x32xf32> to vector<16x32xbf16>
    %60 = vector.extract_strided_slice %3 {offsets = [0, 64], sizes = [16, 32], strides = [1, 1]} : vector<16x128xf32> to vector<16x32xf32>
    %61 = arith.truncf %60 : vector<16x32xf32> to vector<16x32xbf16>
    %62 = vector.extract_strided_slice %5 {offsets = [0, 64], sizes = [16, 32], strides = [1, 1]} : vector<16x128xf32> to vector<16x32xf32>
    %63 = arith.truncf %62 : vector<16x32xf32> to vector<16x32xbf16>
    %cst_23 = arith.constant dense<0.000000e+00> : vector<16x16xf32>
    %64 = tpu.matmul %59, %61, %cst_23 {dimension_numbers = #tpu.dot_dimension_numbers<[1], [1], [0], [0], [0, 0, 1, 0], [], []>} : vector<16x32xbf16>, vector<16x32xbf16>, vector<16x16xf32> -> vector<16x16xf32>
    %cst_24 = arith.constant 0.176776692 : f32
    %65 = vector.broadcast %cst_24 : f32 to vector<16x16xf32>
    %66 = arith.mulf %64, %65 : vector<16x16xf32>
    %c0_i32_25 = arith.constant 0 : i32
    %67 = vector.broadcast %c0_i32_25 : i32 to vector<16x16xi32>
    %68 = arith.cmpi eq, %7, %67 : vector<16x16xi32>
    %cst_26 = arith.constant -1.000000e+09 : f32
    %69 = vector.broadcast %cst_26 : f32 to vector<16x16xf32>
    %70 = arith.select %68, %69, %66 : vector<16x16xi1>, vector<16x16xf32>
    %cst_27 = arith.constant dense<0xFF800000> : vector<16xf32>
    %71 = vector.multi_reduction <maximumf>, %70, %cst_27 [1] : vector<16x16xf32> to vector<16xf32>
    %72 = vector.shape_cast %71 : vector<16xf32> to vector<16x1xf32>
    %73 = vector.broadcast %72 : vector<16x1xf32> to vector<16x16xf32>
    %74 = arith.subf %70, %73 : vector<16x16xf32>
    %75 = math.exp %74 : vector<16x16xf32>
    %cst_28 = arith.constant dense<0.000000e+00> : vector<16xf32>
    %76 = vector.multi_reduction <add>, %75, %cst_28 [1] : vector<16x16xf32> to vector<16xf32>
    %77 = vector.shape_cast %76 : vector<16xf32> to vector<16x1xf32>
    %78 = tpu.reciprocal %77 {approx = true} : vector<16x1xf32> -> vector<16x1xf32>
    %79 = vector.broadcast %78 : vector<16x1xf32> to vector<16x16xf32>
    %80 = arith.mulf %75, %79 : vector<16x16xf32>
    %81 = arith.truncf %80 : vector<16x16xf32> to vector<16x16xbf16>
    %cst_29 = arith.constant dense<0.000000e+00> : vector<16x32xf32>
    %82 = tpu.matmul %81, %63, %cst_29 {dimension_numbers = #tpu.dot_dimension_numbers<[1], [0], [0], [1], [0, 0, 1, 1], [], []>} : vector<16x16xbf16>, vector<16x32xbf16>, vector<16x32xf32> -> vector<16x32xf32>
    %83 = vector.extract_strided_slice %1 {offsets = [0, 96], sizes = [16, 32], strides = [1, 1]} : vector<16x128xf32> to vector<16x32xf32>
    %84 = arith.truncf %83 : vector<16x32xf32> to vector<16x32xbf16>
    %85 = vector.extract_strided_slice %3 {offsets = [0, 96], sizes = [16, 32], strides = [1, 1]} : vector<16x128xf32> to vector<16x32xf32>
    %86 = arith.truncf %85 : vector<16x32xf32> to vector<16x32xbf16>
    %87 = vector.extract_strided_slice %5 {offsets = [0, 96], sizes = [16, 32], strides = [1, 1]} : vector<16x128xf32> to vector<16x32xf32>
    %88 = arith.truncf %87 : vector<16x32xf32> to vector<16x32xbf16>
    %cst_30 = arith.constant dense<0.000000e+00> : vector<16x16xf32>
    %89 = tpu.matmul %84, %86, %cst_30 {dimension_numbers = #tpu.dot_dimension_numbers<[1], [1], [0], [0], [0, 0, 1, 0], [], []>} : vector<16x32xbf16>, vector<16x32xbf16>, vector<16x16xf32> -> vector<16x16xf32>
    %cst_31 = arith.constant 0.176776692 : f32
    %90 = vector.broadcast %cst_31 : f32 to vector<16x16xf32>
    %91 = arith.mulf %89, %90 : vector<16x16xf32>
    %c0_i32_32 = arith.constant 0 : i32
    %92 = vector.broadcast %c0_i32_32 : i32 to vector<16x16xi32>
    %93 = arith.cmpi eq, %7, %92 : vector<16x16xi32>
    %cst_33 = arith.constant -1.000000e+09 : f32
    %94 = vector.broadcast %cst_33 : f32 to vector<16x16xf32>
    %95 = arith.select %93, %94, %91 : vector<16x16xi1>, vector<16x16xf32>
    %cst_34 = arith.constant dense<0xFF800000> : vector<16xf32>
    %96 = vector.multi_reduction <maximumf>, %95, %cst_34 [1] : vector<16x16xf32> to vector<16xf32>
    %97 = vector.shape_cast %96 : vector<16xf32> to vector<16x1xf32>
    %98 = vector.broadcast %97 : vector<16x1xf32> to vector<16x16xf32>
    %99 = arith.subf %95, %98 : vector<16x16xf32>
    %100 = math.exp %99 : vector<16x16xf32>
    %cst_35 = arith.constant dense<0.000000e+00> : vector<16xf32>
    %101 = vector.multi_reduction <add>, %100, %cst_35 [1] : vector<16x16xf32> to vector<16xf32>
    %102 = vector.shape_cast %101 : vector<16xf32> to vector<16x1xf32>
    %103 = tpu.reciprocal %102 {approx = true} : vector<16x1xf32> -> vector<16x1xf32>
    %104 = vector.broadcast %103 : vector<16x1xf32> to vector<16x16xf32>
    %105 = arith.mulf %100, %104 : vector<16x16xf32>
    %106 = arith.truncf %105 : vector<16x16xf32> to vector<16x16xbf16>
    %cst_36 = arith.constant dense<0.000000e+00> : vector<16x32xf32>
    %107 = tpu.matmul %106, %88, %cst_36 {dimension_numbers = #tpu.dot_dimension_numbers<[1], [0], [0], [1], [0, 0, 1, 1], [], []>} : vector<16x16xbf16>, vector<16x32xbf16>, vector<16x32xf32> -> vector<16x32xf32>
    %108 = tpu.concatenate %32, %57, %82, %107 in 1 : vector<16x32xf32>, vector<16x32xf32>, vector<16x32xf32>, vector<16x32xf32> -> vector<16x128xf32>
    %c0_37 = arith.constant 0 : index
    %c0_38 = arith.constant 0 : index
    %c0_39 = arith.constant 0 : index
    %109 = vector.load %arg5[%c0_37, %c0_38, %c0_39] : memref<1x16x128xf32, #tpu.memory_space<vmem>>, vector<1x16x128xf32>
    %110 = vector.shape_cast %109 : vector<1x16x128xf32> to vector<16x128xf32>
    %111 = vector.shape_cast %108 : vector<16x128xf32> to vector<1x16x128xf32>
    tpu.vector_store %arg5[%c0_37, %c0_38, %c0_39], %111 {strides = array<i32>} : memref<1x16x128xf32, #tpu.memory_space<vmem>>, vector<1x16x128xf32>,
    return
  }
  func.func @transform_0(%arg0: i32) -> (i32, i32, i32) {
    %c0_i32 = arith.constant 0 : i32
    %c0_i32_0 = arith.constant 0 : i32
    %c0_i32_1 = arith.constant 0 : i32
    return %arg0, %c0_i32, %c0_i32_0 : i32, i32, i32
  }
  func.func @transform_1(%arg0: i32) -> (i32, i32, i32) {
    %c0_i32 = arith.constant 0 : i32
    %c0_i32_0 = arith.constant 0 : i32
    %c0_i32_1 = arith.constant 0 : i32
    return %arg0, %c0_i32, %c0_i32_0 : i32, i32, i32
  }
  func.func @transform_2(%arg0: i32) -> (i32, i32, i32) {
    %c0_i32 = arith.constant 0 : i32
    %c0_i32_0 = arith.constant 0 : i32
    %c0_i32_1 = arith.constant 0 : i32
    return %arg0, %c0_i32, %c0_i32_0 : i32, i32, i32
  }
  func.func @transform_3(%arg0: i32) -> (i32, i32, i32) {
    %c0_i32 = arith.constant 0 : i32
    %c0_i32_0 = arith.constant 0 : i32
    %c0_i32_1 = arith.constant 0 : i32
    return %arg0, %c0_i32, %c0_i32_0 : i32, i32, i32
  }
  func.func @transform_4(%arg0: i32) -> (i32, i32, i32) {
    %c0_i32 = arith.constant 0 : i32
    %c0_i32_0 = arith.constant 0 : i32
    %c0_i32_1 = arith.constant 0 : i32
    return %arg0, %c0_i32, %c0_i32_0 : i32, i32, i32
  }
}

module attributes {stable_mosaic.version = 11 : i64} {
  func.func @_ln_linear_kernel(%arg0: i32, %arg1: memref<32x128xf32, #tpu.memory_space<vmem>>, %arg2: memref<1x128xf32, #tpu.memory_space<vmem>>, %arg3: memref<1x128xf32, #tpu.memory_space<vmem>>, %arg4: memref<128x128xbf16, #tpu.memory_space<vmem>>, %arg5: memref<1x128xf32, #tpu.memory_space<vmem>>, %arg6: memref<32x128xf32, #tpu.memory_space<vmem>>) attributes {dimension_semantics = [#tpu.dimension_semantics<parallel>], iteration_bounds = array<i64: 1>, scalar_prefetch = 0 : i64, scratch_operands = 0 : i64, tpu.core_type = #tpu.core_type<tc>, window_params = [{transform_indices = @transform_0, window_bounds = array<i64: 32, 128>}, {pipeline_mode = #tpu.pipeline_mode<synchronous>, transform_indices = @transform_1, window_bounds = array<i64: 1, 128>}, {pipeline_mode = #tpu.pipeline_mode<synchronous>, transform_indices = @transform_2, window_bounds = array<i64: 1, 128>}, {pipeline_mode = #tpu.pipeline_mode<synchronous>, transform_indices = @transform_3, window_bounds = array<i64: 128, 128>}, {pipeline_mode = #tpu.pipeline_mode<synchronous>, transform_indices = @transform_4, window_bounds = array<i64: 1, 128>}, {transform_indices = @transform_5, window_bounds = array<i64: 32, 128>}]} {
    %c0 = arith.constant 0 : index
    %c0_0 = arith.constant 0 : index
    %0 = vector.load %arg1[%c0, %c0_0] : memref<32x128xf32, #tpu.memory_space<vmem>>, vector<32x128xf32>
    %c0_1 = arith.constant 0 : index
    %c0_2 = arith.constant 0 : index
    %1 = vector.load %arg2[%c0_1, %c0_2] : memref<1x128xf32, #tpu.memory_space<vmem>>, vector<1x128xf32>
    %c0_3 = arith.constant 0 : index
    %c0_4 = arith.constant 0 : index
    %2 = vector.load %arg3[%c0_3, %c0_4] : memref<1x128xf32, #tpu.memory_space<vmem>>, vector<1x128xf32>
    %cst = arith.constant dense<0.000000e+00> : vector<32xf32>
    %3 = vector.multi_reduction <add>, %0, %cst [1] : vector<32x128xf32> to vector<32xf32>
    %4 = vector.shape_cast %3 : vector<32xf32> to vector<32x1xf32>
    %cst_5 = arith.constant 1.280000e+02 : f32
    %5 = vector.broadcast %cst_5 : f32 to vector<32x1xf32>
    %6 = arith.divf %4, %5 : vector<32x1xf32>
    %7 = vector.broadcast %6 : vector<32x1xf32> to vector<32x128xf32>
    %8 = arith.subf %0, %7 : vector<32x128xf32>
    %9 = arith.mulf %8, %8 : vector<32x128xf32>
    %cst_6 = arith.constant dense<0.000000e+00> : vector<32xf32>
    %10 = vector.multi_reduction <add>, %9, %cst_6 [1] : vector<32x128xf32> to vector<32xf32>
    %11 = vector.shape_cast %10 : vector<32xf32> to vector<32x1xf32>
    %cst_7 = arith.constant 0.00787401571 : f32
    %12 = vector.broadcast %cst_7 : f32 to vector<32x1xf32>
    %13 = arith.mulf %11, %12 : vector<32x1xf32>
    %14 = math.sqrt %13 : vector<32x1xf32>
    %cst_8 = arith.constant 9.99999974E-6 : f32
    %15 = vector.broadcast %cst_8 : f32 to vector<32x1xf32>
    %16 = arith.addf %14, %15 : vector<32x1xf32>
    %17 = tpu.reciprocal %16 {approx = true} : vector<32x1xf32> -> vector<32x1xf32>
    %18 = vector.broadcast %17 : vector<32x1xf32> to vector<32x128xf32>
    %19 = arith.mulf %8, %18 : vector<32x128xf32>
    %20 = vector.broadcast %1 : vector<1x128xf32> to vector<32x128xf32>
    %21 = arith.mulf %20, %19 : vector<32x128xf32>
    %22 = vector.broadcast %2 : vector<1x128xf32> to vector<32x128xf32>
    %23 = arith.addf %21, %22 : vector<32x128xf32>
    %24 = arith.truncf %23 : vector<32x128xf32> to vector<32x128xbf16>
    %c0_9 = arith.constant 0 : index
    %c0_10 = arith.constant 0 : index
    %25 = vector.load %arg4[%c0_9, %c0_10] : memref<128x128xbf16, #tpu.memory_space<vmem>>, vector<128x128xbf16>
    %cst_11 = arith.constant dense<0.000000e+00> : vector<32x128xf32>
    %26 = tpu.matmul %24, %25, %cst_11 {dimension_numbers = #tpu.dot_dimension_numbers<[1], [0], [0], [1], [0, 0, 1, 1], [], []>} : vector<32x128xbf16>, vector<128x128xbf16>, vector<32x128xf32> -> vector<32x128xf32>
    %c0_12 = arith.constant 0 : index
    %c0_13 = arith.constant 0 : index
    %27 = vector.load %arg5[%c0_12, %c0_13] : memref<1x128xf32, #tpu.memory_space<vmem>>, vector<1x128xf32>
    %28 = vector.broadcast %27 : vector<1x128xf32> to vector<32x128xf32>
    %29 = arith.addf %26, %28 : vector<32x128xf32>
    %c0_14 = arith.constant 0 : index
    %c0_15 = arith.constant 0 : index
    %30 = vector.load %arg6[%c0_14, %c0_15] : memref<32x128xf32, #tpu.memory_space<vmem>>, vector<32x128xf32>
    tpu.vector_store %arg6[%c0_14, %c0_15], %29 {strides = array<i32>} : memref<32x128xf32, #tpu.memory_space<vmem>>, vector<32x128xf32>,
    return
  }
  func.func @transform_0(%arg0: i32) -> (i32, i32) {
    %c0_i32 = arith.constant 0 : i32
    %c0_i32_0 = arith.constant 0 : i32
    return %arg0, %c0_i32 : i32, i32
  }
  func.func @transform_1(%arg0: i32) -> (i32, i32) {
    %c0_i32 = arith.constant 0 : i32
    %c0_i32_0 = arith.constant 0 : i32
    %c0_i32_1 = arith.constant 0 : i32
    return %c0_i32, %c0_i32_0 : i32, i32
  }
  func.func @transform_2(%arg0: i32) -> (i32, i32) {
    %c0_i32 = arith.constant 0 : i32
    %c0_i32_0 = arith.constant 0 : i32
    %c0_i32_1 = arith.constant 0 : i32
    return %c0_i32, %c0_i32_0 : i32, i32
  }
  func.func @transform_3(%arg0: i32) -> (i32, i32) {
    %c0_i32 = arith.constant 0 : i32
    %c0_i32_0 = arith.constant 0 : i32
    %c0_i32_1 = arith.constant 0 : i32
    return %c0_i32, %c0_i32_0 : i32, i32
  }
  func.func @transform_4(%arg0: i32) -> (i32, i32) {
    %c0_i32 = arith.constant 0 : i32
    %c0_i32_0 = arith.constant 0 : i32
    %c0_i32_1 = arith.constant 0 : i32
    return %c0_i32, %c0_i32_0 : i32, i32
  }
  func.func @transform_5(%arg0: i32) -> (i32, i32) {
    %c0_i32 = arith.constant 0 : i32
    %c0_i32_0 = arith.constant 0 : i32
    return %arg0, %c0_i32 : i32, i32
  }
}

module attributes {stable_mosaic.version = 11 : i64} {
  func.func @_linear_split_kernel(%arg0: i32, %arg1: memref<32x128xf32, #tpu.memory_space<vmem>>, %arg2: memref<128x256xbf16, #tpu.memory_space<vmem>>, %arg3: memref<1x256xf32, #tpu.memory_space<vmem>>, %arg4: memref<32x128xf32, #tpu.memory_space<vmem>>, %arg5: memref<32x128xf32, #tpu.memory_space<vmem>>) attributes {dimension_semantics = [#tpu.dimension_semantics<parallel>], iteration_bounds = array<i64: 1>, scalar_prefetch = 0 : i64, scratch_operands = 0 : i64, tpu.core_type = #tpu.core_type<tc>, window_params = [{transform_indices = @transform_0, window_bounds = array<i64: 32, 128>}, {pipeline_mode = #tpu.pipeline_mode<synchronous>, transform_indices = @transform_1, window_bounds = array<i64: 128, 256>}, {pipeline_mode = #tpu.pipeline_mode<synchronous>, transform_indices = @transform_2, window_bounds = array<i64: 1, 256>}, {transform_indices = @transform_3, window_bounds = array<i64: 32, 128>}, {transform_indices = @transform_4, window_bounds = array<i64: 32, 128>}]} {
    %c0 = arith.constant 0 : index
    %c0_0 = arith.constant 0 : index
    %0 = vector.load %arg1[%c0, %c0_0] : memref<32x128xf32, #tpu.memory_space<vmem>>, vector<32x128xf32>
    %1 = arith.truncf %0 : vector<32x128xf32> to vector<32x128xbf16>
    %c0_1 = arith.constant 0 : index
    %c0_2 = arith.constant 0 : index
    %2 = vector.load %arg2[%c0_1, %c0_2] : memref<128x256xbf16, #tpu.memory_space<vmem>>, vector<128x256xbf16>
    %cst = arith.constant dense<0.000000e+00> : vector<32x256xf32>
    %3 = tpu.matmul %1, %2, %cst {dimension_numbers = #tpu.dot_dimension_numbers<[1], [0], [0], [1], [0, 0, 1, 1], [], []>} : vector<32x128xbf16>, vector<128x256xbf16>, vector<32x256xf32> -> vector<32x256xf32>
    %c0_3 = arith.constant 0 : index
    %c0_4 = arith.constant 0 : index
    %4 = vector.load %arg3[%c0_3, %c0_4] : memref<1x256xf32, #tpu.memory_space<vmem>>, vector<1x256xf32>
    %5 = vector.broadcast %4 : vector<1x256xf32> to vector<32x256xf32>
    %6 = arith.addf %3, %5 : vector<32x256xf32>
    %7 = vector.extract_strided_slice %6 {offsets = [0, 0], sizes = [32, 128], strides = [1, 1]} : vector<32x256xf32> to vector<32x128xf32>
    %c0_5 = arith.constant 0 : index
    %c0_6 = arith.constant 0 : index
    %8 = vector.load %arg4[%c0_5, %c0_6] : memref<32x128xf32, #tpu.memory_space<vmem>>, vector<32x128xf32>
    tpu.vector_store %arg4[%c0_5, %c0_6], %7 {strides = array<i32>} : memref<32x128xf32, #tpu.memory_space<vmem>>, vector<32x128xf32>,
    %9 = vector.extract_strided_slice %6 {offsets = [0, 128], sizes = [32, 128], strides = [1, 1]} : vector<32x256xf32> to vector<32x128xf32>
    %c0_7 = arith.constant 0 : index
    %c0_8 = arith.constant 0 : index
    %10 = vector.load %arg5[%c0_7, %c0_8] : memref<32x128xf32, #tpu.memory_space<vmem>>, vector<32x128xf32>
    tpu.vector_store %arg5[%c0_7, %c0_8], %9 {strides = array<i32>} : memref<32x128xf32, #tpu.memory_space<vmem>>, vector<32x128xf32>,
    return
  }
  func.func @transform_0(%arg0: i32) -> (i32, i32) {
    %c0_i32 = arith.constant 0 : i32
    %c0_i32_0 = arith.constant 0 : i32
    return %arg0, %c0_i32 : i32, i32
  }
  func.func @transform_1(%arg0: i32) -> (i32, i32) {
    %c0_i32 = arith.constant 0 : i32
    %c0_i32_0 = arith.constant 0 : i32
    %c0_i32_1 = arith.constant 0 : i32
    return %c0_i32, %c0_i32_0 : i32, i32
  }
  func.func @transform_2(%arg0: i32) -> (i32, i32) {
    %c0_i32 = arith.constant 0 : i32
    %c0_i32_0 = arith.constant 0 : i32
    %c0_i32_1 = arith.constant 0 : i32
    return %c0_i32, %c0_i32_0 : i32, i32
  }
  func.func @transform_3(%arg0: i32) -> (i32, i32) {
    %c0_i32 = arith.constant 0 : i32
    %c0_i32_0 = arith.constant 0 : i32
    return %arg0, %c0_i32 : i32, i32
  }
  func.func @transform_4(%arg0: i32) -> (i32, i32) {
    %c0_i32 = arith.constant 0 : i32
    %c0_i32_0 = arith.constant 0 : i32
    return %arg0, %c0_i32 : i32, i32
  }
}

module attributes {stable_mosaic.version = 11 : i64} {
  func.func @_ffn_kernel(%arg0: i32, %arg1: i32, %arg2: memref<32x128xf32, #tpu.memory_space<vmem>>, %arg3: memref<1x128xf32, #tpu.memory_space<vmem>>, %arg4: memref<1x128xf32, #tpu.memory_space<vmem>>, %arg5: memref<128x256xbf16, #tpu.memory_space<vmem>>, %arg6: memref<1x256xf32, #tpu.memory_space<vmem>>, %arg7: memref<256x128xbf16, #tpu.memory_space<vmem>>, %arg8: memref<1x128xf32, #tpu.memory_space<vmem>>, %arg9: memref<32x128xf32, #tpu.memory_space<vmem>>, %arg10: memref<32x128xf32, #tpu.memory_space<vmem>>, %arg11: memref<32x128xbf16, #tpu.memory_space<vmem>>) attributes {dimension_semantics = [#tpu.dimension_semantics<parallel>, #tpu.dimension_semantics<arbitrary>], iteration_bounds = array<i64: 1, 1>, scalar_prefetch = 0 : i64, scratch_operands = 2 : i64, tpu.core_type = #tpu.core_type<tc>, window_params = [{transform_indices = @transform_0, window_bounds = array<i64: 32, 128>}, {pipeline_mode = #tpu.pipeline_mode<synchronous>, transform_indices = @transform_1, window_bounds = array<i64: 1, 128>}, {pipeline_mode = #tpu.pipeline_mode<synchronous>, transform_indices = @transform_2, window_bounds = array<i64: 1, 128>}, {transform_indices = @transform_3, window_bounds = array<i64: 128, 256>}, {transform_indices = @transform_4, window_bounds = array<i64: 1, 256>}, {transform_indices = @transform_5, window_bounds = array<i64: 256, 128>}, {pipeline_mode = #tpu.pipeline_mode<synchronous>, transform_indices = @transform_6, window_bounds = array<i64: 1, 128>}, {transform_indices = @transform_7, window_bounds = array<i64: 32, 128>}]} {
    %c0_i32 = arith.constant 0 : i32
    %0 = arith.cmpi eq, %arg1, %c0_i32 : i32
    %1 = arith.extui %0 : i1 to i32
    %c0_i32_0 = arith.constant 0 : i32
    %2 = arith.cmpi ne, %1, %c0_i32_0 : i32
    scf.if %2 {
      %c0_16 = arith.constant 0 : index
      %c0_17 = arith.constant 0 : index
      %20 = vector.load %arg2[%c0_16, %c0_17] : memref<32x128xf32, #tpu.memory_space<vmem>>, vector<32x128xf32>
      %c0_18 = arith.constant 0 : index
      %c0_19 = arith.constant 0 : index
      %21 = vector.load %arg3[%c0_18, %c0_19] : memref<1x128xf32, #tpu.memory_space<vmem>>, vector<1x128xf32>
      %c0_20 = arith.constant 0 : index
      %c0_21 = arith.constant 0 : index
      %22 = vector.load %arg4[%c0_20, %c0_21] : memref<1x128xf32, #tpu.memory_space<vmem>>, vector<1x128xf32>
      %cst_22 = arith.constant dense<0.000000e+00> : vector<32xf32>
      %23 = vector.multi_reduction <add>, %20, %cst_22 [1] : vector<32x128xf32> to vector<32xf32>
      %24 = vector.shape_cast %23 : vector<32xf32> to vector<32x1xf32>
      %cst_23 = arith.constant 1.280000e+02 : f32
      %25 = vector.broadcast %cst_23 : f32 to vector<32x1xf32>
      %26 = arith.divf %24, %25 : vector<32x1xf32>
      %27 = vector.broadcast %26 : vector<32x1xf32> to vector<32x128xf32>
      %28 = arith.subf %20, %27 : vector<32x128xf32>
      %29 = arith.mulf %28, %28 : vector<32x128xf32>
      %cst_24 = arith.constant dense<0.000000e+00> : vector<32xf32>
      %30 = vector.multi_reduction <add>, %29, %cst_24 [1] : vector<32x128xf32> to vector<32xf32>
      %31 = vector.shape_cast %30 : vector<32xf32> to vector<32x1xf32>
      %cst_25 = arith.constant 0.00787401571 : f32
      %32 = vector.broadcast %cst_25 : f32 to vector<32x1xf32>
      %33 = arith.mulf %31, %32 : vector<32x1xf32>
      %34 = math.sqrt %33 : vector<32x1xf32>
      %cst_26 = arith.constant 9.99999974E-6 : f32
      %35 = vector.broadcast %cst_26 : f32 to vector<32x1xf32>
      %36 = arith.addf %34, %35 : vector<32x1xf32>
      %37 = tpu.reciprocal %36 {approx = true} : vector<32x1xf32> -> vector<32x1xf32>
      %38 = vector.broadcast %37 : vector<32x1xf32> to vector<32x128xf32>
      %39 = arith.mulf %28, %38 : vector<32x128xf32>
      %40 = vector.broadcast %21 : vector<1x128xf32> to vector<32x128xf32>
      %41 = arith.mulf %40, %39 : vector<32x128xf32>
      %42 = vector.broadcast %22 : vector<1x128xf32> to vector<32x128xf32>
      %43 = arith.addf %41, %42 : vector<32x128xf32>
      %44 = arith.truncf %43 : vector<32x128xf32> to vector<32x128xbf16>
      %c0_27 = arith.constant 0 : index
      %c0_28 = arith.constant 0 : index
      %45 = vector.load %arg11[%c0_27, %c0_28] : memref<32x128xbf16, #tpu.memory_space<vmem>>, vector<32x128xbf16>
      tpu.vector_store %arg11[%c0_27, %c0_28], %44 {strides = array<i32>} : memref<32x128xbf16, #tpu.memory_space<vmem>>, vector<32x128xbf16>,
      %cst_29 = arith.constant 0.000000e+00 : f32
      %46 = vector.broadcast %cst_29 : f32 to vector<32x128xf32>
      %c0_30 = arith.constant 0 : index
      %c0_31 = arith.constant 0 : index
      %47 = vector.load %arg10[%c0_30, %c0_31] : memref<32x128xf32, #tpu.memory_space<vmem>>, vector<32x128xf32>
      tpu.vector_store %arg10[%c0_30, %c0_31], %46 {strides = array<i32>} : memref<32x128xf32, #tpu.memory_space<vmem>>, vector<32x128xf32>,
    } else {
    }
    %c0 = arith.constant 0 : index
    %c0_1 = arith.constant 0 : index
    %3 = vector.load %arg11[%c0, %c0_1] : memref<32x128xbf16, #tpu.memory_space<vmem>>, vector<32x128xbf16>
    %c0_2 = arith.constant 0 : index
    %c0_3 = arith.constant 0 : index
    %4 = vector.load %arg5[%c0_2, %c0_3] : memref<128x256xbf16, #tpu.memory_space<vmem>>, vector<128x256xbf16>
    %cst = arith.constant dense<0.000000e+00> : vector<32x256xf32>
    %5 = tpu.matmul %3, %4, %cst {dimension_numbers = #tpu.dot_dimension_numbers<[1], [0], [0], [1], [0, 0, 1, 1], [], []>} : vector<32x128xbf16>, vector<128x256xbf16>, vector<32x256xf32> -> vector<32x256xf32>
    %c0_4 = arith.constant 0 : index
    %c0_5 = arith.constant 0 : index
    %6 = vector.load %arg6[%c0_4, %c0_5] : memref<1x256xf32, #tpu.memory_space<vmem>>, vector<1x256xf32>
    %7 = vector.broadcast %6 : vector<1x256xf32> to vector<32x256xf32>
    %8 = arith.addf %5, %7 : vector<32x256xf32>
    %cst_6 = arith.constant 0.000000e+00 : f32
    %9 = vector.broadcast %cst_6 : f32 to vector<32x256xf32>
    %10 = arith.maximumf %8, %9 : vector<32x256xf32>
    %c0_7 = arith.constant 0 : index
    %c0_8 = arith.constant 0 : index
    %11 = vector.load %arg10[%c0_7, %c0_8] : memref<32x128xf32, #tpu.memory_space<vmem>>, vector<32x128xf32>
    %12 = arith.truncf %10 : vector<32x256xf32> to vector<32x256xbf16>
    %c0_9 = arith.constant 0 : index
    %c0_10 = arith.constant 0 : index
    %13 = vector.load %arg7[%c0_9, %c0_10] : memref<256x128xbf16, #tpu.memory_space<vmem>>, vector<256x128xbf16>
    %cst_11 = arith.constant dense<0.000000e+00> : vector<32x128xf32>
    %14 = tpu.matmul %12, %13, %cst_11 {dimension_numbers = #tpu.dot_dimension_numbers<[1], [0], [0], [1], [0, 0, 1, 1], [], []>} : vector<32x256xbf16>, vector<256x128xbf16>, vector<32x128xf32> -> vector<32x128xf32>
    %15 = arith.addf %11, %14 : vector<32x128xf32>
    %c0_12 = arith.constant 0 : index
    %c0_13 = arith.constant 0 : index
    %16 = vector.load %arg10[%c0_12, %c0_13] : memref<32x128xf32, #tpu.memory_space<vmem>>, vector<32x128xf32>
    tpu.vector_store %arg10[%c0_12, %c0_13], %15 {strides = array<i32>} : memref<32x128xf32, #tpu.memory_space<vmem>>, vector<32x128xf32>,
    %c0_i32_14 = arith.constant 0 : i32
    %17 = arith.cmpi eq, %arg1, %c0_i32_14 : i32
    %18 = arith.extui %17 : i1 to i32
    %c0_i32_15 = arith.constant 0 : i32
    %19 = arith.cmpi ne, %18, %c0_i32_15 : i32
    scf.if %19 {
      %c0_16 = arith.constant 0 : index
      %c0_17 = arith.constant 0 : index
      %20 = vector.load %arg2[%c0_16, %c0_17] : memref<32x128xf32, #tpu.memory_space<vmem>>, vector<32x128xf32>
      %c0_18 = arith.constant 0 : index
      %c0_19 = arith.constant 0 : index
      %21 = vector.load %arg10[%c0_18, %c0_19] : memref<32x128xf32, #tpu.memory_space<vmem>>, vector<32x128xf32>
      %22 = arith.addf %20, %21 : vector<32x128xf32>
      %c0_20 = arith.constant 0 : index
      %c0_21 = arith.constant 0 : index
      %23 = vector.load %arg8[%c0_20, %c0_21] : memref<1x128xf32, #tpu.memory_space<vmem>>, vector<1x128xf32>
      %24 = vector.broadcast %23 : vector<1x128xf32> to vector<32x128xf32>
      %25 = arith.addf %22, %24 : vector<32x128xf32>
      %c0_22 = arith.constant 0 : index
      %c0_23 = arith.constant 0 : index
      %26 = vector.load %arg9[%c0_22, %c0_23] : memref<32x128xf32, #tpu.memory_space<vmem>>, vector<32x128xf32>
      tpu.vector_store %arg9[%c0_22, %c0_23], %25 {strides = array<i32>} : memref<32x128xf32, #tpu.memory_space<vmem>>, vector<32x128xf32>,
    } else {
    }
    return
  }
  func.func @transform_0(%arg0: i32, %arg1: i32) -> (i32, i32) {
    %c0_i32 = arith.constant 0 : i32
    %c0_i32_0 = arith.constant 0 : i32
    return %arg0, %c0_i32 : i32, i32
  }
  func.func @transform_1(%arg0: i32, %arg1: i32) -> (i32, i32) {
    %c0_i32 = arith.constant 0 : i32
    %c0_i32_0 = arith.constant 0 : i32
    %c0_i32_1 = arith.constant 0 : i32
    return %c0_i32, %c0_i32_0 : i32, i32
  }
  func.func @transform_2(%arg0: i32, %arg1: i32) -> (i32, i32) {
    %c0_i32 = arith.constant 0 : i32
    %c0_i32_0 = arith.constant 0 : i32
    %c0_i32_1 = arith.constant 0 : i32
    return %c0_i32, %c0_i32_0 : i32, i32
  }
  func.func @transform_3(%arg0: i32, %arg1: i32) -> (i32, i32) {
    %c0_i32 = arith.constant 0 : i32
    %c0_i32_0 = arith.constant 0 : i32
    return %c0_i32, %arg1 : i32, i32
  }
  func.func @transform_4(%arg0: i32, %arg1: i32) -> (i32, i32) {
    %c0_i32 = arith.constant 0 : i32
    %c0_i32_0 = arith.constant 0 : i32
    return %c0_i32, %arg1 : i32, i32
  }
  func.func @transform_5(%arg0: i32, %arg1: i32) -> (i32, i32) {
    %c0_i32 = arith.constant 0 : i32
    %c0_i32_0 = arith.constant 0 : i32
    return %arg1, %c0_i32 : i32, i32
  }
  func.func @transform_6(%arg0: i32, %arg1: i32) -> (i32, i32) {
    %c0_i32 = arith.constant 0 : i32
    %c0_i32_0 = arith.constant 0 : i32
    %c0_i32_1 = arith.constant 0 : i32
    return %c0_i32, %c0_i32_0 : i32, i32
  }
  func.func @transform_7(%arg0: i32, %arg1: i32) -> (i32, i32) {
    %c0_i32 = arith.constant 0 : i32
    %c0_i32_0 = arith.constant 0 : i32
    return %arg0, %c0_i32 : i32, i32
  }
}

module attributes {stable_mosaic.version = 11 : i64} {
  func.func @_attention_kernel(%arg0: i32, %arg1: memref<1x16x128xf32, #tpu.memory_space<vmem>>, %arg2: memref<1x16x128xf32, #tpu.memory_space<vmem>>, %arg3: memref<1x16x128xf32, #tpu.memory_space<vmem>>, %arg4: memref<1x1x16xi32, #tpu.memory_space<vmem>>, %arg5: memref<1x16x128xf32, #tpu.memory_space<vmem>>) attributes {dimension_semantics = [#tpu.dimension_semantics<parallel>], iteration_bounds = array<i64: 2>, scalar_prefetch = 0 : i64, scratch_operands = 0 : i64, tpu.core_type = #tpu.core_type<tc>, window_params = [{transform_indices = @transform_0, window_bounds = array<i64: 1, 16, 128>}, {transform_indices = @transform_1, window_bounds = array<i64: 1, 16, 128>}, {transform_indices = @transform_2, window_bounds = array<i64: 1, 16, 128>}, {transform_indices = @transform_3, window_bounds = array<i64: 1, 1, 16>}, {transform_indices = @transform_4, window_bounds = array<i64: 1, 16, 128>}]} {
    %c0 = arith.constant 0 : index
    %c0_0 = arith.constant 0 : index
    %c0_1 = arith.constant 0 : index
    %0 = vector.load %arg1[%c0, %c0_0, %c0_1] : memref<1x16x128xf32, #tpu.memory_space<vmem>>, vector<1x16x128xf32>
    %1 = vector.shape_cast %0 : vector<1x16x128xf32> to vector<16x128xf32>
    %c0_2 = arith.constant 0 : index
    %c0_3 = arith.constant 0 : index
    %c0_4 = arith.constant 0 : index
    %2 = vector.load %arg2[%c0_2, %c0_3, %c0_4] : memref<1x16x128xf32, #tpu.memory_space<vmem>>, vector<1x16x128xf32>
    %3 = vector.shape_cast %2 : vector<1x16x128xf32> to vector<16x128xf32>
    %c0_5 = arith.constant 0 : index
    %c0_6 = arith.constant 0 : index
    %c0_7 = arith.constant 0 : index
    %4 = vector.load %arg3[%c0_5, %c0_6, %c0_7] : memref<1x16x128xf32, #tpu.memory_space<vmem>>, vector<1x16x128xf32>
    %5 = vector.shape_cast %4 : vector<1x16x128xf32> to vector<16x128xf32>
    %c0_8 = arith.constant 0 : index
    %c0_9 = arith.constant 0 : index
    %c0_10 = arith.constant 0 : index
    %6 = vector.load %arg4[%c0_8, %c0_9, %c0_10] : memref<1x1x16xi32, #tpu.memory_space<vmem>>, vector<1x1x16xi32>
    %7 = vector.shape_cast %6 : vector<1x1x16xi32> to vector<1x16xi32>
    %8 = vector.extract_strided_slice %1 {offsets = [0, 0], sizes = [16, 32], strides = [1, 1]} : vector<16x128xf32> to vector<16x32xf32>
    %9 = arith.truncf %8 : vector<16x32xf32> to vector<16x32xbf16>
    %10 = vector.extract_strided_slice %3 {offsets = [0, 0], sizes = [16, 32], strides = [1, 1]} : vector<16x128xf32> to vector<16x32xf32>
    %11 = arith.truncf %10 : vector<16x32xf32> to vector<16x32xbf16>
    %12 = vector.extract_strided_slice %5 {offsets = [0, 0], sizes = [16, 32], strides = [1, 1]} : vector<16x128xf32> to vector<16x32xf32>
    %13 = arith.truncf %12 : vector<16x32xf32> to vector<16x32xbf16>
    %cst = arith.constant dense<0.000000e+00> : vector<16x16xf32>
    %14 = tpu.matmul %9, %11, %cst {dimension_numbers = #tpu.dot_dimension_numbers<[1], [1], [0], [0], [0, 0, 1, 0], [], []>} : vector<16x32xbf16>, vector<16x32xbf16>, vector<16x16xf32> -> vector<16x16xf32>
    %cst_11 = arith.constant 0.176776692 : f32
    %15 = vector.broadcast %cst_11 : f32 to vector<16x16xf32>
    %16 = arith.mulf %14, %15 : vector<16x16xf32>
    %c0_i32 = arith.constant 0 : i32
    %17 = vector.broadcast %c0_i32 : i32 to vector<1x16xi32>
    %18 = arith.cmpi eq, %7, %17 : vector<1x16xi32>
    %cst_12 = arith.constant -1.000000e+09 : f32
    %19 = vector.shape_cast %18 : vector<1x16xi1> to vector<1x16xi1>
    %20 = vector.broadcast %19 : vector<1x16xi1> to vector<16x16xi1>
    %21 = vector.broadcast %cst_12 : f32 to vector<16x16xf32>
    %22 = arith.select %20, %21, %16 : vector<16x16xi1>, vector<16x16xf32>
    %cst_13 = arith.constant dense<0xFF800000> : vector<16xf32>
    %23 = vector.multi_reduction <maximumf>, %22, %cst_13 [1] : vector<16x16xf32> to vector<16xf32>
    %24 = vector.shape_cast %23 : vector<16xf32> to vector<16x1xf32>
    %25 = vector.broadcast %24 : vector<16x1xf32> to vector<16x16xf32>
    %26 = arith.subf %22, %25 : vector<16x16xf32>
    %27 = math.exp %26 : vector<16x16xf32>
    %cst_14 = arith.constant dense<0.000000e+00> : vector<16xf32>
    %28 = vector.multi_reduction <add>, %27, %cst_14 [1] : vector<16x16xf32> to vector<16xf32>
    %29 = vector.shape_cast %28 : vector<16xf32> to vector<16x1xf32>
    %30 = tpu.reciprocal %29 {approx = true} : vector<16x1xf32> -> vector<16x1xf32>
    %31 = vector.broadcast %30 : vector<16x1xf32> to vector<16x16xf32>
    %32 = arith.mulf %27, %31 : vector<16x16xf32>
    %33 = arith.truncf %32 : vector<16x16xf32> to vector<16x16xbf16>
    %cst_15 = arith.constant dense<0.000000e+00> : vector<16x32xf32>
    %34 = tpu.matmul %33, %13, %cst_15 {dimension_numbers = #tpu.dot_dimension_numbers<[1], [0], [0], [1], [0, 0, 1, 1], [], []>} : vector<16x16xbf16>, vector<16x32xbf16>, vector<16x32xf32> -> vector<16x32xf32>
    %35 = vector.extract_strided_slice %1 {offsets = [0, 32], sizes = [16, 32], strides = [1, 1]} : vector<16x128xf32> to vector<16x32xf32>
    %36 = arith.truncf %35 : vector<16x32xf32> to vector<16x32xbf16>
    %37 = vector.extract_strided_slice %3 {offsets = [0, 32], sizes = [16, 32], strides = [1, 1]} : vector<16x128xf32> to vector<16x32xf32>
    %38 = arith.truncf %37 : vector<16x32xf32> to vector<16x32xbf16>
    %39 = vector.extract_strided_slice %5 {offsets = [0, 32], sizes = [16, 32], strides = [1, 1]} : vector<16x128xf32> to vector<16x32xf32>
    %40 = arith.truncf %39 : vector<16x32xf32> to vector<16x32xbf16>
    %cst_16 = arith.constant dense<0.000000e+00> : vector<16x16xf32>
    %41 = tpu.matmul %36, %38, %cst_16 {dimension_numbers = #tpu.dot_dimension_numbers<[1], [1], [0], [0], [0, 0, 1, 0], [], []>} : vector<16x32xbf16>, vector<16x32xbf16>, vector<16x16xf32> -> vector<16x16xf32>
    %cst_17 = arith.constant 0.176776692 : f32
    %42 = vector.broadcast %cst_17 : f32 to vector<16x16xf32>
    %43 = arith.mulf %41, %42 : vector<16x16xf32>
    %c0_i32_18 = arith.constant 0 : i32
    %44 = vector.broadcast %c0_i32_18 : i32 to vector<1x16xi32>
    %45 = arith.cmpi eq, %7, %44 : vector<1x16xi32>
    %cst_19 = arith.constant -1.000000e+09 : f32
    %46 = vector.shape_cast %45 : vector<1x16xi1> to vector<1x16xi1>
    %47 = vector.broadcast %46 : vector<1x16xi1> to vector<16x16xi1>
    %48 = vector.broadcast %cst_19 : f32 to vector<16x16xf32>
    %49 = arith.select %47, %48, %43 : vector<16x16xi1>, vector<16x16xf32>
    %cst_20 = arith.constant dense<0xFF800000> : vector<16xf32>
    %50 = vector.multi_reduction <maximumf>, %49, %cst_20 [1] : vector<16x16xf32> to vector<16xf32>
    %51 = vector.shape_cast %50 : vector<16xf32> to vector<16x1xf32>
    %52 = vector.broadcast %51 : vector<16x1xf32> to vector<16x16xf32>
    %53 = arith.subf %49, %52 : vector<16x16xf32>
    %54 = math.exp %53 : vector<16x16xf32>
    %cst_21 = arith.constant dense<0.000000e+00> : vector<16xf32>
    %55 = vector.multi_reduction <add>, %54, %cst_21 [1] : vector<16x16xf32> to vector<16xf32>
    %56 = vector.shape_cast %55 : vector<16xf32> to vector<16x1xf32>
    %57 = tpu.reciprocal %56 {approx = true} : vector<16x1xf32> -> vector<16x1xf32>
    %58 = vector.broadcast %57 : vector<16x1xf32> to vector<16x16xf32>
    %59 = arith.mulf %54, %58 : vector<16x16xf32>
    %60 = arith.truncf %59 : vector<16x16xf32> to vector<16x16xbf16>
    %cst_22 = arith.constant dense<0.000000e+00> : vector<16x32xf32>
    %61 = tpu.matmul %60, %40, %cst_22 {dimension_numbers = #tpu.dot_dimension_numbers<[1], [0], [0], [1], [0, 0, 1, 1], [], []>} : vector<16x16xbf16>, vector<16x32xbf16>, vector<16x32xf32> -> vector<16x32xf32>
    %62 = vector.extract_strided_slice %1 {offsets = [0, 64], sizes = [16, 32], strides = [1, 1]} : vector<16x128xf32> to vector<16x32xf32>
    %63 = arith.truncf %62 : vector<16x32xf32> to vector<16x32xbf16>
    %64 = vector.extract_strided_slice %3 {offsets = [0, 64], sizes = [16, 32], strides = [1, 1]} : vector<16x128xf32> to vector<16x32xf32>
    %65 = arith.truncf %64 : vector<16x32xf32> to vector<16x32xbf16>
    %66 = vector.extract_strided_slice %5 {offsets = [0, 64], sizes = [16, 32], strides = [1, 1]} : vector<16x128xf32> to vector<16x32xf32>
    %67 = arith.truncf %66 : vector<16x32xf32> to vector<16x32xbf16>
    %cst_23 = arith.constant dense<0.000000e+00> : vector<16x16xf32>
    %68 = tpu.matmul %63, %65, %cst_23 {dimension_numbers = #tpu.dot_dimension_numbers<[1], [1], [0], [0], [0, 0, 1, 0], [], []>} : vector<16x32xbf16>, vector<16x32xbf16>, vector<16x16xf32> -> vector<16x16xf32>
    %cst_24 = arith.constant 0.176776692 : f32
    %69 = vector.broadcast %cst_24 : f32 to vector<16x16xf32>
    %70 = arith.mulf %68, %69 : vector<16x16xf32>
    %c0_i32_25 = arith.constant 0 : i32
    %71 = vector.broadcast %c0_i32_25 : i32 to vector<1x16xi32>
    %72 = arith.cmpi eq, %7, %71 : vector<1x16xi32>
    %cst_26 = arith.constant -1.000000e+09 : f32
    %73 = vector.shape_cast %72 : vector<1x16xi1> to vector<1x16xi1>
    %74 = vector.broadcast %73 : vector<1x16xi1> to vector<16x16xi1>
    %75 = vector.broadcast %cst_26 : f32 to vector<16x16xf32>
    %76 = arith.select %74, %75, %70 : vector<16x16xi1>, vector<16x16xf32>
    %cst_27 = arith.constant dense<0xFF800000> : vector<16xf32>
    %77 = vector.multi_reduction <maximumf>, %76, %cst_27 [1] : vector<16x16xf32> to vector<16xf32>
    %78 = vector.shape_cast %77 : vector<16xf32> to vector<16x1xf32>
    %79 = vector.broadcast %78 : vector<16x1xf32> to vector<16x16xf32>
    %80 = arith.subf %76, %79 : vector<16x16xf32>
    %81 = math.exp %80 : vector<16x16xf32>
    %cst_28 = arith.constant dense<0.000000e+00> : vector<16xf32>
    %82 = vector.multi_reduction <add>, %81, %cst_28 [1] : vector<16x16xf32> to vector<16xf32>
    %83 = vector.shape_cast %82 : vector<16xf32> to vector<16x1xf32>
    %84 = tpu.reciprocal %83 {approx = true} : vector<16x1xf32> -> vector<16x1xf32>
    %85 = vector.broadcast %84 : vector<16x1xf32> to vector<16x16xf32>
    %86 = arith.mulf %81, %85 : vector<16x16xf32>
    %87 = arith.truncf %86 : vector<16x16xf32> to vector<16x16xbf16>
    %cst_29 = arith.constant dense<0.000000e+00> : vector<16x32xf32>
    %88 = tpu.matmul %87, %67, %cst_29 {dimension_numbers = #tpu.dot_dimension_numbers<[1], [0], [0], [1], [0, 0, 1, 1], [], []>} : vector<16x16xbf16>, vector<16x32xbf16>, vector<16x32xf32> -> vector<16x32xf32>
    %89 = vector.extract_strided_slice %1 {offsets = [0, 96], sizes = [16, 32], strides = [1, 1]} : vector<16x128xf32> to vector<16x32xf32>
    %90 = arith.truncf %89 : vector<16x32xf32> to vector<16x32xbf16>
    %91 = vector.extract_strided_slice %3 {offsets = [0, 96], sizes = [16, 32], strides = [1, 1]} : vector<16x128xf32> to vector<16x32xf32>
    %92 = arith.truncf %91 : vector<16x32xf32> to vector<16x32xbf16>
    %93 = vector.extract_strided_slice %5 {offsets = [0, 96], sizes = [16, 32], strides = [1, 1]} : vector<16x128xf32> to vector<16x32xf32>
    %94 = arith.truncf %93 : vector<16x32xf32> to vector<16x32xbf16>
    %cst_30 = arith.constant dense<0.000000e+00> : vector<16x16xf32>
    %95 = tpu.matmul %90, %92, %cst_30 {dimension_numbers = #tpu.dot_dimension_numbers<[1], [1], [0], [0], [0, 0, 1, 0], [], []>} : vector<16x32xbf16>, vector<16x32xbf16>, vector<16x16xf32> -> vector<16x16xf32>
    %cst_31 = arith.constant 0.176776692 : f32
    %96 = vector.broadcast %cst_31 : f32 to vector<16x16xf32>
    %97 = arith.mulf %95, %96 : vector<16x16xf32>
    %c0_i32_32 = arith.constant 0 : i32
    %98 = vector.broadcast %c0_i32_32 : i32 to vector<1x16xi32>
    %99 = arith.cmpi eq, %7, %98 : vector<1x16xi32>
    %cst_33 = arith.constant -1.000000e+09 : f32
    %100 = vector.shape_cast %99 : vector<1x16xi1> to vector<1x16xi1>
    %101 = vector.broadcast %100 : vector<1x16xi1> to vector<16x16xi1>
    %102 = vector.broadcast %cst_33 : f32 to vector<16x16xf32>
    %103 = arith.select %101, %102, %97 : vector<16x16xi1>, vector<16x16xf32>
    %cst_34 = arith.constant dense<0xFF800000> : vector<16xf32>
    %104 = vector.multi_reduction <maximumf>, %103, %cst_34 [1] : vector<16x16xf32> to vector<16xf32>
    %105 = vector.shape_cast %104 : vector<16xf32> to vector<16x1xf32>
    %106 = vector.broadcast %105 : vector<16x1xf32> to vector<16x16xf32>
    %107 = arith.subf %103, %106 : vector<16x16xf32>
    %108 = math.exp %107 : vector<16x16xf32>
    %cst_35 = arith.constant dense<0.000000e+00> : vector<16xf32>
    %109 = vector.multi_reduction <add>, %108, %cst_35 [1] : vector<16x16xf32> to vector<16xf32>
    %110 = vector.shape_cast %109 : vector<16xf32> to vector<16x1xf32>
    %111 = tpu.reciprocal %110 {approx = true} : vector<16x1xf32> -> vector<16x1xf32>
    %112 = vector.broadcast %111 : vector<16x1xf32> to vector<16x16xf32>
    %113 = arith.mulf %108, %112 : vector<16x16xf32>
    %114 = arith.truncf %113 : vector<16x16xf32> to vector<16x16xbf16>
    %cst_36 = arith.constant dense<0.000000e+00> : vector<16x32xf32>
    %115 = tpu.matmul %114, %94, %cst_36 {dimension_numbers = #tpu.dot_dimension_numbers<[1], [0], [0], [1], [0, 0, 1, 1], [], []>} : vector<16x16xbf16>, vector<16x32xbf16>, vector<16x32xf32> -> vector<16x32xf32>
    %116 = tpu.concatenate %34, %61, %88, %115 in 1 : vector<16x32xf32>, vector<16x32xf32>, vector<16x32xf32>, vector<16x32xf32> -> vector<16x128xf32>
    %c0_37 = arith.constant 0 : index
    %c0_38 = arith.constant 0 : index
    %c0_39 = arith.constant 0 : index
    %117 = vector.load %arg5[%c0_37, %c0_38, %c0_39] : memref<1x16x128xf32, #tpu.memory_space<vmem>>, vector<1x16x128xf32>
    %118 = vector.shape_cast %117 : vector<1x16x128xf32> to vector<16x128xf32>
    %119 = vector.shape_cast %116 : vector<16x128xf32> to vector<1x16x128xf32>
    tpu.vector_store %arg5[%c0_37, %c0_38, %c0_39], %119 {strides = array<i32>} : memref<1x16x128xf32, #tpu.memory_space<vmem>>, vector<1x16x128xf32>,
    return
  }
  func.func @transform_0(%arg0: i32) -> (i32, i32, i32) {
    %c0_i32 = arith.constant 0 : i32
    %c0_i32_0 = arith.constant 0 : i32
    %c0_i32_1 = arith.constant 0 : i32
    return %arg0, %c0_i32, %c0_i32_0 : i32, i32, i32
  }
  func.func @transform_1(%arg0: i32) -> (i32, i32, i32) {
    %c0_i32 = arith.constant 0 : i32
    %c0_i32_0 = arith.constant 0 : i32
    %c0_i32_1 = arith.constant 0 : i32
    return %arg0, %c0_i32, %c0_i32_0 : i32, i32, i32
  }
  func.func @transform_2(%arg0: i32) -> (i32, i32, i32) {
    %c0_i32 = arith.constant 0 : i32
    %c0_i32_0 = arith.constant 0 : i32
    %c0_i32_1 = arith.constant 0 : i32
    return %arg0, %c0_i32, %c0_i32_0 : i32, i32, i32
  }
  func.func @transform_3(%arg0: i32) -> (i32, i32, i32) {
    %c0_i32 = arith.constant 0 : i32
    %c0_i32_0 = arith.constant 0 : i32
    %c0_i32_1 = arith.constant 0 : i32
    return %arg0, %c0_i32, %c0_i32_0 : i32, i32, i32
  }
  func.func @transform_4(%arg0: i32) -> (i32, i32, i32) {
    %c0_i32 = arith.constant 0 : i32
    %c0_i32_0 = arith.constant 0 : i32
    %c0_i32_1 = arith.constant 0 : i32
    return %arg0, %c0_i32, %c0_i32_0 : i32, i32, i32
  }
}

</mosaic_0001>

<bundles_post_ra>
// kernel: decoder_block.10
= control target key start
LH: loop header
LB: loop body
LE: loop exit
PB: predicated region body
PF: predicated region fallthrough
CT: control target
= control target key end

     0   :  { %s295_s1 = inlined_call_operand.vmem [shape: bf16[128,128], index: 1, kind: input, shape index: {}]   ;;  %s296_s0 = inlined_call_operand.vmem [shape: f32[32,128], index: 0, kind: input, shape index: {}]   ;;  %s297_s2 = inlined_call_operand.vmem [shape: f32[1,128], index: 2, kind: input, shape index: {}]   ;;  %s298_s3 = inlined_call_operand.vmem [shape: f32[32,128], index: 3, kind: input, shape index: {}]   ;;  %s299_s4 = inlined_call_operand.vmem [shape: f32[32,128], index: 4, kind: output, shape index: {}]  }
   0x1   :  { %v199_v0 = vld [vmem:[%s295_s1] sm:$0xff]   ;;  %v200_v1 = vld [vmem:[%s295_s1 + $0x8] sm:$0xff]   ;;  %v201_v2 = vld [vmem:[%s295_s1 + $0x10] sm:$0xff]  }
   0x2   :  { %179 = vmatprep.subr.bf16.mxu0 %v199_v0  ;;  %v202_v3 = vld [vmem:[%s295_s1 + $0x18] sm:$0xff]   ;;  %v18_v4 = vld [vmem:[%s296_s0] sm:$0xff]  ;;  %v19_v5 = vld [vmem:[%s296_s0 + $0x8] sm:$0xff] }
   0x3   :  { %180 = vmatpush3.bf16.msra.mxu0 %v199_v0  ;;  %v22_v6 = vpack.c.bf16 %v19_v5, %v18_v4  ;;  %v203_v7 = vld [vmem:[%s295_s1 + $0x20] sm:$0xff]   ;;  %v204_v8 = vld [vmem:[%s295_s1 + $0x28] sm:$0xff]   ;;  %v205_v9 = vld [vmem:[%s295_s1 + $0x30] sm:$0xff]  }
   0x4   :  { %181 = vmatprep.subr.bf16.mxu0 %v200_v1  ;;  %v206_v10 = vld [vmem:[%s295_s1 + $0x38] sm:$0xff]   ;;  %v20_v11 = vld [vmem:[%s296_s0 + $0x10] sm:$0xff]  ;;  %v160_v14 = vld [vmem:[%s297_s2] ss:$0 sm:$0xff] }
   0x5   :  { %195 = vmatprep.mubr.bf16.mxu0 %v22_v6  ;;  %v21_v12 = vld [vmem:[%s296_s0 + $0x18] sm:$0xff]  ;;  %v146_v16 = vld [vmem:[%s298_s3 + $0x10] sm:$0xff]  ;;  %v144_v19 = vld [vmem:[%s298_s3] sm:$0xff] }
   0x6   :  { %v23_v13 = vpack.c.bf16 %v21_v12, %v20_v11  ;;  %v147_v22 = vld [vmem:[%s298_s3 + $0x18] sm:$0xff]  ;;  %v145_v26 = vld [vmem:[%s298_s3 + $0x8] sm:$0xff] }
   0x7   :  { %182 = vmatpush3.bf16.msra.mxu0 %v200_v1 }
   0x8   :  { %183 = vmatprep.subr.bf16.mxu0 %v201_v2 }
   0xb   :  { %184 = vmatpush3.bf16.msra.mxu0 %v201_v2 }
   0xc   :  { %185 = vmatprep.subr.bf16.mxu0 %v202_v3 }
   0xf   :  { %186 = vmatpush3.bf16.msra.mxu0 %v202_v3 }
  0x10   :  { %187 = vmatprep.subr.bf16.mxu0 %v203_v7 }
  0x13   :  { %188 = vmatpush3.bf16.msra.mxu0 %v203_v7 }
  0x14   :  { %189 = vmatprep.subr.bf16.mxu0 %v204_v8 }
  0x17   :  { %190 = vmatpush3.bf16.msra.mxu0 %v204_v8 }
  0x18   :  { %191 = vmatprep.subr.bf16.mxu0 %v205_v9 }
  0x1b   :  { %192 = vmatpush3.bf16.msra.mxu0 %v205_v9 }
  0x1c   :  { %193 = vmatprep.subr.bf16.mxu0 %v206_v10 }
  0x1f   :  { %194 = vmatpush3.bf16.msra.mxu0 %v206_v10 }
  0x22   :  { %196 = vmatmul.mubr.bf16.vlgmr.msra.gmra.mrb[0].mxu0 %v23_v13 }
  0xf5   :  { %v197_v15 = vpop.f32.mrb[0].mxu0 }
  0xf6   :  { %v138_v17 = vadd.f32 %v197_v15, %v160_v14  ;;  %v129_v18 = vpop.f32.mrb[1].mxu0 }
  0xf7   :  { %v130_v20 = vadd.f32 %v160_v14, %v129_v18  ;;  %v198_v21 = vpop.f32.mrb[2].mxu0 }
  0xf8   :  { %v150_v23 = vadd.f32 %v146_v16, %v138_v17  ;;  %v141_v24 = vadd.f32 %v198_v21, %v160_v14  ;;  %v132_v25 = vpop.f32.mrb[3].mxu0 }
  0xf9   :  { %v148_v27 = vadd.f32 %v144_v19, %v130_v20  ;;  %v133_v28 = vadd.f32 %v160_v14, %v132_v25 }
  0xfa   :  { %154 = vst [vmem:[%s299_s4 + $0x10] sm:$0xff] %v150_v23  ;;  %v151_v29 = vadd.f32 %v147_v22, %v141_v24 }
  0xfb   :  { %152 = vst [vmem:[%s299_s4] sm:$0xff] %v148_v27  ;;  %v149_v30 = vadd.f32 %v145_v26, %v133_v28 }
  0xfc   :  { %155 = vst [vmem:[%s299_s4 + $0x18] sm:$0xff] %v151_v29 }
  0xfd   :  { %153 = vst [vmem:[%s299_s4 + $0x8] sm:$0xff] %v149_v30 }

// kernel: decoder_block.8
= control target key start
LH: loop header
LB: loop body
LE: loop exit
PB: predicated region body
PF: predicated region fallthrough
CT: control target
= control target key end

     0   :  { %13 = vsyncpa [#allocation3], 0  ;;  %s575_s24 = smov [#allocation2]   ;;  %s710_s0 = inlined_call_operand.vmem [shape: f32[32,128], index: 0, kind: input, shape index: {}]   ;;  %s711_s1 = inlined_call_operand.vmem [shape: f32[1,128], index: 1, kind: input, shape index: {}]   ;;  %s712_s2 = inlined_call_operand.vmem [shape: f32[1,128], index: 2, kind: input, shape index: {}]   ;;  %s713_s3 = inlined_call_operand.hbm [shape: bf16[128,384], index: 3, kind: input, shape index: {}]   ;;  %s714_s4 = inlined_call_operand.vmem [shape: f32[1,384], index: 4, kind: input, shape index: {}]   ;;  %s715_s5 = inlined_call_operand.vmem [shape: f32[32,128], index: 5, kind: output, shape index: {0}]   ;;  %s716_s6 = inlined_call_operand.vmem [shape: f32[32,128], index: 6, kind: output, shape index: {1}]   ;;  %s717_s7 = inlined_call_operand.vmem [shape: f32[32,128], index: 7, kind: output, shape index: {2}]  }
   0x1   :  { %s25_s25 = sshll.u32 %s575_s24, 4  ;;  %s551_s28 = scalar_lea.hbm %s713_s3, 3072  ;;  %s26_s25 = int_to_ptr.vmem [resolvable:$true] %s25_s25 }
   0x2   :  { %p552_p0 = scmp.ne.s32.totalorder %s713_s3, %s551_s28  ;;  %p555_p1 = scmp.lt.u32.totalorder %s551_s28, %s713_s3 }
   0x4   :  { %p557_p2 = pnand %p555_p1, %p552_p0 }
   0x6   :  { %560 = shalt.err (!%p557_p2)
}
   0x7   :  { %s561_s10 = scalar_lea.vmem %s26_s25, 3072  ;;  %p566_p4 = scmp.lt.s32.totalorder %s26_s25, %s26_s25 }
   0x8   :  { %p562_p3 = scmp.ne.s32.totalorder %s26_s25, %s561_s10  ;;  %p567_p5 = scmp.lt.s32.totalorder %s561_s10, %s561_s10 }
   0xa   :  { %p568_p6 = por %p567_p5, %p566_p4 }
   0xc   :  { %p569_p7 = pnand %p568_p6, %p562_p3 }
   0xe   :  { %572 = shalt.err (!%p569_p7)
}
   0xf   :  { %s576_s11 = smov 192   ;;  %s577_s12 = smov 12  }
  0x10   :  { %31 = dma.hbm_to_vmem [thread:$0]  %s713_s3, 3072, %s26_s25, [#allocation3], %s576_s11, %s576_s11, %s577_s12  }
  0x11   :  { %573 = dma.done.wait [#allocation3], 3072  }
  0x12   :  { %574 = vsyncadd [#allocation3], 4294964224  ;;  %v38_v0 = vld [vmem:[%s710_s0] sm:$0xff]  ;;  %v40_v1 = vld [vmem:[%s710_s0 + $0x10] sm:$0xff]  ;;  %v578_v39 = vmov 0  }
  0x13   :  { %v39_v2 = vld [vmem:[%s710_s0 + $0x8] sm:$0xff]  ;;  %44 = vadd.xlane.f32.xlu0 %v38_v0  ;;  %48 = vadd.xlane.f32.xlu1 %v40_v1  ;;  %v41_v3 = vld [vmem:[%s710_s0 + $0x18] sm:$0xff]  ;;  %v503_v20 = vld [vmem:[#allocation2 + $0x4] ss:$12 sps:$4 sm:$0xff]  }
  0x14   :  { %v505_v21 = vld [vmem:[#allocation2] ss:$12 sps:$4 sm:$0xff]   ;;  %316 = vmatprep.subr.bf16.mxu0 %v503_v20  ;;  %v506_v22 = vld [vmem:[#allocation2 + $0x1c] ss:$12 sps:$4 sm:$0xff]   ;;  %v509_v24 = vld [vmem:[#allocation2 + $0x18] ss:$12 sps:$4 sm:$0xff]   ;;  %348 = vmatprep.mubr.bf16.mxu0 %v578_v39 }
  0x15   :  { %317 = vmatpush1.bf16.msra.mxu0 %v505_v21  ;;  %v508_v23 = vld [vmem:[#allocation2 + $0x8] ss:$12 sps:$4 sm:$0xff]   ;;  %v512_v26 = vld [vmem:[#allocation2 + $0x20] ss:$12 sps:$4 sm:$0xff]   ;;  %v513_v27 = vld [vmem:[#allocation2 + $0x30] ss:$12 sps:$4 sm:$0xff]  }
  0x16   :  { %318 = vmatprep.subr.bf16.mxu0 %v506_v22  ;;  %479 = vmatprep.subr.bf16.mxu1 %v508_v23  ;;  %v510_v25 = vld [vmem:[#allocation2 + $0x34] ss:$12 sps:$4 sm:$0xff]   ;;  %v514_v28 = vld [vmem:[#allocation2 + $0x4c] ss:$12 sps:$4 sm:$0xff]   ;;  %v518_v31 = vld [vmem:[#allocation2 + $0x64] ss:$12 sps:$4 sm:$0xff]  }
  0x17   :  { %46 = vadd.xlane.f32.xlu0 %v39_v2  ;;  %50 = vadd.xlane.f32.xlu1 %v41_v3  ;;  %v516_v29 = vld [vmem:[#allocation2 + $0x38] ss:$12 sps:$4 sm:$0xff]   ;;  %v517_v30 = vld [vmem:[#allocation2 + $0x48] ss:$12 sps:$4 sm:$0xff]   ;;  %v520_v32 = vld [vmem:[#allocation2 + $0x50] ss:$12 sps:$4 sm:$0xff]  }
  0x18   :  { %480 = vmatpush3.bf16.msra.mxu1 %v508_v23  ;;  %v521_v33 = vld [vmem:[#allocation2 + $0x60] ss:$12 sps:$4 sm:$0xff]   ;;  %v522_v34 = vld [vmem:[#allocation2 + $0x7c] ss:$12 sps:$4 sm:$0xff]   ;;  %v525_v36 = vld [vmem:[#allocation2 + $0x78] ss:$12 sps:$4 sm:$0xff]  }
  0x19   :  { %319 = vmatpush1.bf16.msra.mxu0 %v509_v24  ;;  %481 = vmatprep.subr.bf16.mxu1 %v512_v26  ;;  %v524_v35 = vld [vmem:[#allocation2 + $0x68] ss:$12 sps:$4 sm:$0xff]   ;;  %v528_v38 = vld [vmem:[#allocation2 + $0x80] ss:$12 sps:$4 sm:$0xff]   ;;  %v529_v40 = vld [vmem:[#allocation2 + $0x90] ss:$12 sps:$4 sm:$0xff]  }
  0x1a   :  { %320 = vmatprep.subr.bf16.mxu0 %v510_v25  ;;  %v526_v37 = vld [vmem:[#allocation2 + $0x94] ss:$12 sps:$4 sm:$0xff]   ;;  %v530_v41 = vld [vmem:[#allocation2 + $0xac] ss:$12 sps:$4 sm:$0xff]   ;;  %v534_v44 = vld [vmem:[#allocation2 + $0xb0] ss:$12 sps:$4 sm:$0xff]  }
  0x1b   :  { %v532_v42 = vld [vmem:[#allocation2 + $0x98] ss:$12 sps:$4 sm:$0xff]   ;;  %v533_v43 = vld [vmem:[#allocation2 + $0xa8] ss:$12 sps:$4 sm:$0xff]   ;;  %v444_v24 = vld [vmem:[%s712_s2] ss:$0 sm:$0xff] }
  0x1c   :  { %482 = vmatpush3.bf16.msra.mxu1 %v512_v26 }
  0x1d   :  { %321 = vmatpush1.bf16.msra.mxu0 %v513_v27  ;;  %483 = vmatprep.subr.bf16.mxu1 %v516_v29 }
  0x1e   :  { %322 = vmatprep.subr.bf16.mxu0 %v514_v28 }
  0x20   :  { %484 = vmatpush3.bf16.msra.mxu1 %v516_v29 }
  0x21   :  { %323 = vmatpush1.bf16.msra.mxu0 %v517_v30  ;;  %485 = vmatprep.subr.bf16.mxu1 %v520_v32 }
  0x22   :  { %324 = vmatprep.subr.bf16.mxu0 %v518_v31 }
  0x24   :  { %486 = vmatpush3.bf16.msra.mxu1 %v520_v32 }
  0x25   :  { %325 = vmatpush1.bf16.msra.mxu0 %v521_v33  ;;  %487 = vmatprep.subr.bf16.mxu1 %v524_v35 }
  0x26   :  { %326 = vmatprep.subr.bf16.mxu0 %v522_v34 }
  0x28   :  { %488 = vmatpush3.bf16.msra.mxu1 %v524_v35  ;;  %v173_v35 = vlaneseq }
  0x29   :  { %327 = vmatpush1.bf16.msra.mxu0 %v525_v36  ;;  %489 = vmatprep.subr.bf16.mxu1 %v528_v38 }
  0x2a   :  { %328 = vmatprep.subr.bf16.mxu0 %v526_v37  ;;  %v171_v37 = vld [vmem:[%s714_s4] sm:$0x7] }
  0x2c   :  { %490 = vmatpush3.bf16.msra.mxu1 %v528_v38 }
  0x2d   :  { %329 = vmatpush1.bf16.msra.mxu0 %v529_v40  ;;  %491 = vmatprep.subr.bf16.mxu1 %v532_v42 }
  0x2e   :  { %330 = vmatprep.subr.bf16.mxu0 %v530_v41 }
  0x30   :  { %492 = vmatpush3.bf16.msra.mxu1 %v532_v42 }
  0x31   :  { %331 = vmatpush1.bf16.msra.mxu0 %v533_v43  ;;  %493 = vmatprep.subr.bf16.mxu1 %v534_v44 }
  0x34   :  { %494 = vmatpush3.bf16.msra.mxu1 %v534_v44 }
  0xa0   :  { %v45_v4 = vpop.xlane.xlu0 %44  ;;  %v49_v5 = vpop.xlane.xlu1 %48 }
  0xa1   :  { %v53_v6 = vmul.f32 0.0078125, %v45_v4  ;;  %v55_v7 = vmul.f32 0.0078125, %v49_v5 }
  0xa3   :  { %v643_v8 = vsub.f32 %v38_v0, %v53_v6  ;;  %v645_v9 = vsub.f32 %v40_v1, %v55_v7 }
  0xa4   :  { %v47_v10 = vpop.xlane.xlu0 %46  ;;  %v51_v11 = vpop.xlane.xlu1 %50 }
  0xa5   :  { %v54_v12 = vmul.f32 0.0078125, %v47_v10  ;;  %v61_v13 = vmul.f32 %v643_v8, %v643_v8  ;;  %v56_v14 = vmul.f32 0.0078125, %v51_v11  ;;  %v63_v17 = vmul.f32 %v645_v9, %v645_v9 }
  0xa7   :  { %v649_v15 = vsub.f32 %v39_v2, %v54_v12  ;;  %65 = vadd.xlane.f32.xlu0 %v61_v13  ;;  %v651_v16 = vsub.f32 %v41_v3, %v56_v14 }
  0xa9   :  { %v62_v18 = vmul.f32 %v649_v15, %v649_v15  ;;  %v64_v19 = vmul.f32 %v651_v16, %v651_v16 }
  0xab   :  { %69 = vadd.xlane.f32.xlu0 %v63_v17  ;;  %67 = vadd.xlane.f32.xlu1 %v62_v18 }
  0xaf   :  { %71 = vadd.xlane.f32.xlu1 %v64_v19  ;;  %v443_v19 = vld [vmem:[%s711_s1] ss:$0 sm:$0xff] }
 0x134   :  { %v66_v45 = vpop.xlane.xlu0 %65 }
 0x135   :  { %v73_v46 = vmul.f32 0.007874016, %v66_v45 }
 0x137   :  { %535 = vrsqrt.f32 %v73_v46  ;;  %vm79_vm0 = vcmp.eq.f32.partialorder %v73_v46, inf  ;;  %v82_v55 = vand.u32 2147483648, %v73_v46  ;;  %vm81_vm1 = vcmp.eq.f32.partialorder %v73_v46, 0.0 }
 0x138   :  { %v68_v47 = vpop.xlane.xlu1 %67  ;;  %v70_v48 = vpop.xlane.xlu0 %69 }
 0x139   :  { %v74_v49 = vmul.f32 0.007874016, %v68_v47  ;;  %v75_v50 = vmul.f32 0.007874016, %v70_v48 }
 0x13b   :  { %537 = vrsqrt.f32 %v74_v49  ;;  %vm86_vm2 = vcmp.eq.f32.partialorder %v74_v49, inf  ;;  %vm88_vm3 = vcmp.eq.f32.partialorder %v74_v49, 0.0  ;;  %v89_v62 = vand.u32 2147483648, %v74_v49 }
 0x13c   :  { %539 = vrsqrt.f32 %v75_v50  ;;  %v72_v51 = vpop.xlane.xlu1 %71  ;;  %vm93_vm4 = vcmp.eq.f32.partialorder %v75_v50, inf  ;;  %v96_v1 = vand.u32 2147483648, %v75_v50  ;;  %vm95_vm5 = vcmp.eq.f32.partialorder %v75_v50, 0.0 }
 0x13d   :  { %v76_v52 = vmul.f32 0.007874016, %v72_v51 }
 0x13f   :  { %541 = vrsqrt.f32 %v76_v52  ;;  %vm100_vm6 = vcmp.eq.f32.partialorder %v76_v52, inf  ;;  %v103_v11 = vand.u32 2147483648, %v76_v52  ;;  %vm102_vm7 = vcmp.eq.f32.partialorder %v76_v52, 0.0 }
 0x141   :  { %v536_v53 = vpop.eup %535 }
 0x142   :  { %v78_v54 = vmul.f32 %v536_v53, %v73_v46 }
 0x144   :  { %v80_v56 = vsel %vm79_vm0, %v73_v46, %v78_v54 }
 0x145   :  { %v538_v57 = vpop.eup %537  ;;  %v83_v58 = vsel %vm81_vm1, %v82_v55, %v80_v56 }
 0x146   :  { %v540_v59 = vpop.eup %539  ;;  %v105_v60 = vadd.f32 1e-05, %v83_v58  ;;  %v85_v61 = vmul.f32 %v538_v57, %v74_v49 }
 0x147   :  { %v92_v63 = vmul.f32 %v540_v59, %v75_v50 }
 0x148   :  { %v87_v0 = vsel %vm86_vm2, %v74_v49, %v85_v61  ;;  %543 = vrcp.f32 %v105_v60 }
 0x149   :  { %v542_v2 = vpop.eup %541  ;;  %v90_v3 = vsel %vm88_vm3, %v89_v62, %v87_v0  ;;  %v94_v4 = vsel %vm93_vm4, %v75_v50, %v92_v63 }
 0x14a   :  { %v106_v5 = vadd.f32 1e-05, %v90_v3  ;;  %v97_v6 = vsel %vm95_vm5, %v96_v1, %v94_v4  ;;  %v99_v7 = vmul.f32 %v542_v2, %v76_v52 }
 0x14b   :  { %v107_v10 = vadd.f32 1e-05, %v97_v6 }
 0x14c   :  { %v101_v12 = vsel %vm100_vm6, %v76_v52, %v99_v7  ;;  %545 = vrcp.f32 %v106_v5 }
 0x14d   :  { %547 = vrcp.f32 %v107_v10  ;;  %v104_v13 = vsel %vm102_vm7, %v103_v11, %v101_v12 }
 0x14e   :  { %v108_v14 = vadd.f32 1e-05, %v104_v13 }
 0x150   :  { %549 = vrcp.f32 %v108_v14 }
 0x152   :  { %v544_v17 = vpop.eup %543 }
 0x153   :  { %v113_v18 = vmul.f32 %v544_v17, %v643_v8 }
 0x155   :  { %v123_v23 = vmul.f32 %v443_v19, %v113_v18 }
 0x156   :  { %v546_v20 = vpop.eup %545 }
 0x157   :  { %v548_v21 = vpop.eup %547  ;;  %v114_v22 = vmul.f32 %v546_v20, %v649_v15  ;;  %v133_v28 = vadd.f32 %v444_v24, %v123_v23 }
 0x158   :  { %v115_v25 = vmul.f32 %v548_v21, %v645_v9  ;;  %v174_v9 = vshrl.u32 %v173_v35, 7 }
 0x159   :  { %v124_v26 = vmul.f32 %v443_v19, %v114_v22 }
 0x15a   :  { %v550_v27 = vpop.eup %549  ;;  %v125_v30 = vmul.f32 %v443_v19, %v115_v25  ;;  %v175_v36 = vsub.s32 0, %v174_v9  ;;  %v183_v40 = vsub.s32 2, %v174_v9 }
 0x15b   :  { %v134_v29 = vadd.f32 %v444_v24, %v124_v26  ;;  %v116_v8 = vmul.f32 %v550_v27, %v651_v16  ;;  %v179_v16 = vsub.s32 1, %v174_v9 }
 0x15c   :  { %v135_v33 = vadd.f32 %v444_v24, %v125_v30  ;;  %v176_v38 = vrot.slane %v171_v37, %v175_v36  ;;  %v184_v45 = vrot.slane %v171_v37, %v183_v40 }
 0x15d   :  { %v137_v31 = vpack.c.bf16 %v134_v29, %v133_v28  ;;  %v126_v32 = vmul.f32 %v443_v19, %v116_v8  ;;  %v180_v41 = vrot.slane %v171_v37, %v179_v16 }
 0x15f   :  { %349 = vmatmul.mubr.bf16.vlgmr.msra.gmra.mrb[0].mxu0 %v137_v31  ;;  %495 = vmatprep.mubr.bf16.mxu1 %v137_v31  ;;  %v136_v15 = vadd.f32 %v444_v24, %v126_v32 }
 0x160   :  { %358 = vmatprep.mubr.bf16.mxu0 %v578_v39 }
 0x161   :  { %v138_v34 = vpack.c.bf16 %v136_v15, %v135_v33 }
 0x163   :  { %496 = vmatmul.mubr.bf16.vlgmr.msra.gmra.mrb[0].mxu1 %v138_v34 }
 0x167   :  { %359 = vmatmul.mubr.bf16.gmra.mrb[4].mxu0 %v138_v34 }
 0x232   :  { %v350_v42 = vpop.f32.mrb[0].mxu0 }
 0x233   :  { %v351_v43 = vadd.f32 %v350_v42, %v176_v38  ;;  %v352_v44 = vpop.f32.mrb[1].mxu0 }
 0x234   :  { %v353_v46 = vadd.f32 %v352_v44, %v180_v41  ;;  %v354_v39 = vpop.f32.mrb[2].mxu0 }
 0x235   :  { %418 = vst [vmem:[%s715_s5] sm:$0xff] %v351_v43  ;;  %v355_v47 = vadd.f32 %v354_v39, %v176_v38  ;;  %v356_v48 = vpop.f32.mrb[3].mxu0 }
 0x236   :  { %422 = vst [vmem:[%s716_s6] sm:$0xff] %v353_v46  ;;  %v357_v49 = vadd.f32 %v356_v48, %v180_v41  ;;  %v497_v50 = vpop.f32.mrb[0].mxu1 }
 0x237   :  { %419 = vst [vmem:[%s715_s5 + $0x8] sm:$0xff] %v355_v47  ;;  %v412_v51 = vadd.f32 %v497_v50, %v184_v45  ;;  %v403_v52 = vpop.f32.mrb[1].mxu1 }
 0x238   :  { %423 = vst [vmem:[%s716_s6 + $0x8] sm:$0xff] %v357_v49  ;;  %v404_v53 = vadd.f32 %v403_v52, %v184_v45  ;;  %v498_v54 = vpop.f32.mrb[2].mxu1 }
 0x239   :  { %428 = vst [vmem:[%s717_s7 + $0x10] sm:$0xff] %v412_v51  ;;  %v415_v55 = vadd.f32 %v498_v54, %v184_v45  ;;  %v406_v56 = vpop.f32.mrb[3].mxu1 }
 0x23a   :  { %426 = vst [vmem:[%s717_s7] sm:$0xff] %v404_v53  ;;  %v407_v57 = vadd.f32 %v406_v56, %v184_v45  ;;  %v360_v58 = vpop.f32.mrb[4].mxu0 }
 0x23b   :  { %429 = vst [vmem:[%s717_s7 + $0x18] sm:$0xff] %v415_v55  ;;  %v361_v59 = vadd.f32 %v360_v58, %v176_v38  ;;  %v362_v60 = vpop.f32.mrb[5].mxu0 }
 0x23c   :  { %427 = vst [vmem:[%s717_s7 + $0x8] sm:$0xff] %v407_v57  ;;  %v363_v61 = vadd.f32 %v362_v60, %v180_v41  ;;  %v364_v62 = vpop.f32.mrb[6].mxu0 }
 0x23d   :  { %420 = vst [vmem:[%s715_s5 + $0x10] sm:$0xff] %v361_v59  ;;  %v365_v63 = vadd.f32 %v364_v62, %v176_v38  ;;  %v366_v0 = vpop.f32.mrb[7].mxu0 }
 0x23e   :  { %424 = vst [vmem:[%s716_s6 + $0x10] sm:$0xff] %v363_v61  ;;  %v367_v1 = vadd.f32 %v366_v0, %v180_v41 }
 0x23f   :  { %421 = vst [vmem:[%s715_s5 + $0x18] sm:$0xff] %v365_v63 }
 0x240   :  { %425 = vst [vmem:[%s716_s6 + $0x18] sm:$0xff] %v367_v1 }
 0x241   :  { %442 = vsyncpa [#allocation3], 1 }

// kernel: decoder_block.9
= control target key start
LH: loop header
LB: loop body
LE: loop exit
PB: predicated region body
PF: predicated region fallthrough
CT: control target
= control target key end

     0   :  { %s1072_s15 = smov 0   ;;  %s1208_s0 = inlined_call_operand.vmem [shape: f32[2,16,128], index: 0, kind: input, shape index: {}]   ;;  %s1209_s1 = inlined_call_operand.vmem [shape: f32[2,16,128], index: 1, kind: input, shape index: {}]   ;;  %s1210_s2 = inlined_call_operand.vmem [shape: f32[2,16,128], index: 2, kind: input, shape index: {}]   ;;  %s1211_s3 = inlined_call_operand.vmem [shape: s32[2,16,16], index: 3, kind: input, shape index: {}]   ;;  %s1212_s4 = inlined_call_operand.vmem [shape: f32[2,16,128], index: 4, kind: output, shape index: {}]  }
   0x1 LB: > { %s895_s16 = sadd.s32 4294967295, %s1040_s15   ;;  %p899_p0 = scmp.ge.s32.totalorder %s1040_s15, 1  ;;  %s1040_s15 = sphi %s1072_s15, %s14_s15  }
   0x2   : > { %p192_p1 = scmp.lt.s32.totalorder %s1040_s15, 3 }
   0x4   : > { %p193_p2 = pnand %p899_p0, %p192_p1 }
   0x5   : > { %p233_p3 = scmp.lt.s32.totalorder (!%p193_p2), %s895_s16, 1  ;;  %v1042_v0 = vmov (!%p193_p2), 0.0   ;;  %vm1043_vm0 = vmmov (!%p193_p2), 0   ;;  %vm270_vm1 = vcmask (!%p193_p2), 261120   ;;  %vm324_vm3 = vcmask (!%p193_p2), 130048   ;;  %s1044_s27 = smov (!%p193_p2), 96  }
   0x6   : > { %196 = sbr.rel (%p193_p2) target bundleno = 1497 (0x5d9), region = 36  ;;  %941 = vmatprep.subr.bf16.mxu0 (!%p193_p2), %v1042_v0  ;;  %943 = vmatprep.mubr.msk.bf16.mxu0 (!%p193_p2), %vm1043_vm0, %v1042_v0  ;;  %s1045_s28 = smov (!%p193_p2), 32   ;;  %vm796_vm5 = vcmask (!%p193_p2), 523264   ;;  %vm799_vm6 = vcmask (!%p193_p2), 785408  }
   0x7   : > { %947 = vmatprep.subr.bf16.mxu1 (!%p193_p2), %v1042_v0  ;;  %949 = vmatprep.mubr.msk.bf16.mxu1 (!%p193_p2), %vm1043_vm0, %v1042_v0  ;;  %s1046_s6 = smov (!%p193_p2), 64  }
   0xd   : > { %s1214_s16 = smov (!%p233_p3, %s895_s16), 1 }
   0xe   : > { %s1086_s17 = sshll.u32 %s1214_s16, 4 }
   0xf   : > { %s242_s20 = scalar_lea.vmem %s1209_s1, %s1086_s17  ;;  %s237_s23 = scalar_lea.vmem %s1208_s0, %s1086_s17 }
  0x10   : > { %v261_v1 = vld [vmem:[%s242_s20] sm:$0xff]  ;;  %v262_v2 = vld [vmem:[%s242_s20 + $0x8] sm:$0xff]  ;;  %s252_s26 = scalar_lea.vmem %s1211_s3, %s1086_s17  ;;  %s247_s5 = scalar_lea.vmem %s1210_s2, %s1086_s17 }
  0x11   : > { %v268_v3 = vpack.c.bf16 %v262_v2, %v261_v1  ;;  %v259_v5 = vld [vmem:[%s237_s23] sm:$0xff]  ;;  %v260_v6 = vld [vmem:[%s237_s23 + $0x8] sm:$0xff]  ;;  %s257_s9 = scalar_lea.vmem %s1212_s4, %s1086_s17 }
  0x12   : > { %v267_v7 = vpack.c.bf16 %v260_v6, %v259_v5  ;;  %v1105_v8 = vld [vmem:[%s252_s26] sm:$0xff]  ;;  %v1107_v9 = vld [vmem:[%s252_s26 + $0x8] sm:$0xff] }
  0x13   : > { %v275_v4 = vsel %vm270_vm1, %v268_v3, 0  ;;  %vm320_vm2 = vcmp.eq.s32.totalorder %v1105_v8, 0  ;;  %vm321_vm4 = vcmp.eq.s32.totalorder %v1107_v9, 0  ;;  %v263_v30 = vld [vmem:[%s247_s5] sm:$0xff]  ;;  %v264_v31 = vld [vmem:[%s247_s5 + $0x8] sm:$0xff] }
  0x14   : > { %942 = vmatpush3.bf16.xpose.msra.mxu0 %v275_v4  ;;  %v1125_v32 = vpack.c.bf16 %v264_v31, %v263_v30 }
  0x15   : > { %959 = vmatprep.subr.bf16.mxu0 %v1042_v0 }
  0x16   : > { %948 = vmatpush3.bf16.msra.mxu1 %v1125_v32 }
  0x17   : > { %953 = vmatprep.subr.bf16.mxu1 %v1042_v0 }
  0x1b   : > { %944 = vmatmul.mubr.msk.bf16.vlgmr.msra.gmra.mrb[0].mxu0 %vm270_vm1, %v267_v7 }
  0x1c   : > { %961 = vmatprep.mubr.msk.bf16.mxu0 %vm1043_vm0, %v1042_v0 }
  0xee   : > { %v311_v10 = vpop.f32.mrb[0].mxu0 }
  0xef   : > { %v318_v11 = vmul.f32 0.17677669, %v311_v10  ;;  %v945_v12 = vpop.f32.mrb[1].mxu0 }
  0xf0   : > { %v314_v13 = vpop.f32.mrb[2].mxu0 }
  0xf1   : > { %v319_v14 = vmul.f32 0.17677669, %v314_v13  ;;  %v946_v15 = vpop.f32.mrb[3].mxu0  ;;  %v322_v16 = vsel %vm320_vm2, -1e+09, %v318_v11 }
  0xf2   : > { %v325_v17 = vsel %vm324_vm3, %v322_v16, -inf }
  0xf3   : > { %326 = vmax.xlane.f32.xlu0 %v325_v17  ;;  %v323_v18 = vsel %vm321_vm4, -1e+09, %v319_v14 }
  0xf4   : > { %v328_v19 = vsel %vm324_vm3, %v323_v18, -inf }
  0xf7   : > { %329 = vmax.xlane.f32.xlu0 %v328_v19 }
 0x10d   : > { %396 = vrot.lane.b32.xlu0 %v268_v3, %s1044_s27 }
 0x111   : > { %647 = vrot.lane.b32.xlu0 %v268_v3, %s1045_s28 }
 0x180   : > { %v327_v20 = vpop.xlane.xlu0 %326 }
 0x181   : > { %v331_v21 = vsub.f32 %v322_v16, %v327_v20 }
 0x183   : > { %v333_v22 = vmul.f32 1.442695, %v331_v21 }
 0x184   : > { %v330_v23 = vpop.xlane.xlu0 %329 }
 0x185   : > { %1002 = vpow2.f32 %v333_v22  ;;  %v332_v24 = vsub.f32 %v323_v18, %v330_v23 }
 0x187   : > { %v335_v25 = vmul.f32 1.442695, %v332_v24 }
 0x188   : > { %v397_v37 = vpop.permute.xlu0 %396 }
 0x189   : > { %1004 = vpow2.f32 %v335_v25  ;;  %v402_v41 = vsel %vm270_vm1, %v397_v37, 0 }
 0x18c   : > { %v648_v45 = vpop.permute.xlu0 %647 }
 0x18d   : > { %v653_v47 = vsel %vm270_vm1, %v648_v45, 0 }
 0x18f   : > { %v1003_v26 = vpop.eup %1002 }
 0x190   : > { %v337_v27 = vsel %vm324_vm3, %v1003_v26, 0.0 }
 0x191   : > { %338 = vadd.xlane.f32.xlu1 %v337_v27 }
 0x193   : > { %v1005_v28 = vpop.eup %1004 }
 0x194   : > { %v340_v29 = vsel %vm324_vm3, %v1005_v28, 0.0 }
 0x195   : > { %341 = vadd.xlane.f32.xlu1 %v340_v29 }
 0x1a6   : > { %393 = vrot.lane.b32.xlu1 %v267_v7, %s1044_s27 }
 0x1aa   : > { %522 = vrot.lane.b32.xlu1 %v268_v3, %s1046_s6 }
 0x1ae   : > { %520 = vrot.lane.b32.xlu1 %v267_v7, %s1046_s6 }
 0x1b2   : > { %645 = vrot.lane.b32.xlu1 %v267_v7, %s1045_s28 }
 0x21e   : > { %v339_v33 = vpop.xlane.xlu1 %338 }
 0x21f   : > { %1006 = vrcp.f32 %v339_v33 }
 0x222   : > { %v342_v34 = vpop.xlane.xlu1 %341 }
 0x223   : > { %1008 = vrcp.f32 %v342_v34 }
 0x226   : > { %v394_v40 = vpop.permute.xlu1 %393 }
 0x229   : > { %v1007_v35 = vpop.eup %1006 }
 0x22a   : > { %v345_v38 = vmul.f32 %v1007_v35, %v1003_v26  ;;  %v523_v43 = vpop.permute.xlu1 %522 }
 0x22b   : > { %v528_v44 = vsel %vm270_vm1, %v523_v43, 0 }
 0x22d   : > { %v1009_v36 = vpop.eup %1008 }
 0x22e   : > { %v346_v39 = vmul.f32 %v1009_v36, %v1005_v28  ;;  %v521_v46 = vpop.permute.xlu1 %520 }
 0x230   : > { %v347_v42 = vpack.c.bf16 %v346_v39, %v345_v38 }
 0x232   : > { %950 = vmatmul.mubr.msk.bf16.vlgmr.msra.gmra.mrb[0].mxu1 %vm324_vm3, %v347_v42  ;;  %v646_v48 = vpop.permute.xlu1 %645 }
 0x233   : > { %954 = vmatpush3.bf16.xpose.msra.mxu1 %v402_v41  ;;  %955 = vmatprep.mubr.msk.bf16.mxu1 %vm1043_vm0, %v1042_v0 }
 0x234   : > { %965 = vmatprep.subr.bf16.mxu1 %v1042_v0 }
 0x23a   : > { %956 = vmatmul.mubr.msk.bf16.vlgmr.msra.gmra.mrb[4].mxu1 %vm270_vm1, %v394_v40 }
 0x23b   : > { %966 = vmatpush3.bf16.xpose.msra.mxu1 %v528_v44  ;;  %967 = vmatprep.mubr.msk.bf16.mxu1 %vm1043_vm0, %v1042_v0 }
 0x23c   : > { %977 = vmatprep.subr.bf16.mxu1 %v1042_v0 }
 0x242   : > { %968 = vmatmul.mubr.msk.bf16.vlgmr.msra.gmra.mrb[8].mxu1 %vm270_vm1, %v521_v46 }
 0x243   : > { %978 = vmatpush3.bf16.xpose.msra.mxu1 %v653_v47  ;;  %979 = vmatprep.mubr.msk.bf16.mxu1 %vm1043_vm0, %v1042_v0 }
 0x24a   : > { %980 = vmatmul.mubr.msk.bf16.vlgmr.msra.gmra.mrb[12].mxu1 %vm270_vm1, %v646_v48 }
 0x305   : > { %v1148_v49 = vpop.f32.mrb[0].mxu1 }
 0x306   : > { %v951_v50 = vpop.f32.mrb[1].mxu1 }
 0x307   : > { %v1150_v51 = vpop.f32.mrb[2].mxu1 }
 0x308   : > { %v952_v52 = vpop.f32.mrb[3].mxu1 }
 0x30d   : > { %v438_v53 = vpop.f32.mrb[4].mxu1 }
 0x30e   : > { %v445_v54 = vmul.f32 0.17677669, %v438_v53  ;;  %v957_v55 = vpop.f32.mrb[5].mxu1 }
 0x30f   : > { %v441_v56 = vpop.f32.mrb[6].mxu1 }
 0x310   : > { %v446_v57 = vmul.f32 0.17677669, %v441_v56  ;;  %v958_v58 = vpop.f32.mrb[7].mxu1  ;;  %v447_v59 = vsel %vm320_vm2, -1e+09, %v445_v54 }
 0x311   : > { %v449_v60 = vsel %vm324_vm3, %v447_v59, -inf }
 0x312   : > { %450 = vmax.xlane.f32.xlu0 %v449_v60  ;;  %v448_v61 = vsel %vm321_vm4, -1e+09, %v446_v57 }
 0x313   : > { %v452_v62 = vsel %vm324_vm3, %v448_v61, -inf }
 0x314   : > { %453 = vmax.xlane.f32.xlu1 %v452_v62 }
 0x315   : > { %v564_v63 = vpop.f32.mrb[8].mxu1 }
 0x316   : > { %v571_v1 = vmul.f32 0.17677669, %v564_v63  ;;  %v969_v2 = vpop.f32.mrb[9].mxu1 }
 0x317   : > { %v567_v3 = vpop.f32.mrb[10].mxu1 }
 0x318   : > { %v572_v4 = vmul.f32 0.17677669, %v567_v3  ;;  %v970_v5 = vpop.f32.mrb[11].mxu1  ;;  %v573_v6 = vsel %vm320_vm2, -1e+09, %v571_v1 }
 0x319   : > { %v575_v7 = vsel %vm324_vm3, %v573_v6, -inf }
 0x31a   : > { %576 = vmax.xlane.f32.xlu0 %v575_v7  ;;  %v574_v10 = vsel %vm321_vm4, -1e+09, %v572_v4 }
 0x31b   : > { %v578_v12 = vsel %vm324_vm3, %v574_v10, -inf }
 0x31d   : > { %v689_v11 = vpop.f32.mrb[12].mxu1 }
 0x31e   : > { %v696_v13 = vmul.f32 0.17677669, %v689_v11  ;;  %579 = vmax.xlane.f32.xlu0 %v578_v12  ;;  %v981_v14 = vpop.f32.mrb[13].mxu1 }
 0x31f   : > { %v692_v15 = vpop.f32.mrb[14].mxu1 }
 0x320   : > { %v697_v16 = vmul.f32 0.17677669, %v692_v15  ;;  %v698_v17 = vsel %vm320_vm2, -1e+09, %v696_v13  ;;  %v982_v18 = vpop.f32.mrb[15].mxu1 }
 0x321   : > { %v700_v19 = vsel %vm324_vm3, %v698_v17, -inf }
 0x322   : > { %701 = vmax.xlane.f32.xlu0 %v700_v19  ;;  %v699_v20 = vsel %vm321_vm4, -1e+09, %v697_v16 }
 0x323   : > { %v703_v21 = vsel %vm324_vm3, %v699_v20, -inf }
 0x324   : > { %704 = vmax.xlane.f32.xlu1 %v703_v21 }
 0x39f   : > { %v451_v22 = vpop.xlane.xlu0 %450 }
 0x3a0   : > { %v455_v23 = vsub.f32 %v447_v59, %v451_v22 }
 0x3a1   : > { %v454_v24 = vpop.xlane.xlu1 %453 }
 0x3a2   : > { %v457_v25 = vmul.f32 1.442695, %v455_v23  ;;  %v456_v26 = vsub.f32 %v448_v61, %v454_v24 }
 0x3a4   : > { %1010 = vpow2.f32 %v457_v25  ;;  %v459_v27 = vmul.f32 1.442695, %v456_v26 }
 0x3a6   : > { %1012 = vpow2.f32 %v459_v27 }
 0x3a7   : > { %v577_v8 = vpop.xlane.xlu0 %576 }
 0x3a8   : > { %v581_v28 = vsub.f32 %v573_v6, %v577_v8 }
 0x3aa   : > { %v583_v29 = vmul.f32 1.442695, %v581_v28 }
 0x3ab   : > { %v580_v30 = vpop.xlane.xlu0 %579 }
 0x3ac   : > { %1014 = vpow2.f32 %v583_v29  ;;  %v582_v31 = vsub.f32 %v574_v10, %v580_v30 }
 0x3ae   : > { %v1011_v33 = vpop.eup %1010  ;;  %v585_v9 = vmul.f32 1.442695, %v582_v31 }
 0x3af   : > { %v702_v34 = vpop.xlane.xlu0 %701  ;;  %v461_v35 = vsel %vm324_vm3, %v1011_v33, 0.0 }
 0x3b0   : > { %v1013_v36 = vpop.eup %1012  ;;  %1016 = vpow2.f32 %v585_v9  ;;  %v706_v37 = vsub.f32 %v698_v17, %v702_v34  ;;  %462 = vadd.xlane.f32.xlu0 %v461_v35 }
 0x3b1   : > { %v464_v38 = vsel %vm324_vm3, %v1013_v36, 0.0  ;;  %v705_v46 = vpop.xlane.xlu1 %704 }
 0x3b2   : > { %v708_v39 = vmul.f32 1.442695, %v706_v37  ;;  %465 = vadd.xlane.f32.xlu1 %v464_v38  ;;  %v707_v47 = vsub.f32 %v699_v20, %v705_v46 }
 0x3b4   : > { %1018 = vpow2.f32 %v708_v39  ;;  %v710_v48 = vmul.f32 1.442695, %v707_v47 }
 0x3b6   : > { %v1015_v40 = vpop.eup %1014  ;;  %1020 = vpow2.f32 %v710_v48 }
 0x3b7   : > { %v587_v41 = vsel %vm324_vm3, %v1015_v40, 0.0 }
 0x3b8   : > { %588 = vadd.xlane.f32.xlu0 %v587_v41 }
 0x3ba   : > { %v1017_v42 = vpop.eup %1016 }
 0x3bb   : > { %v590_v43 = vsel %vm324_vm3, %v1017_v42, 0.0 }
 0x3bc   : > { %591 = vadd.xlane.f32.xlu1 %v590_v43 }
 0x3be   : > { %v1019_v44 = vpop.eup %1018 }
 0x3bf   : > { %v712_v45 = vsel %vm324_vm3, %v1019_v44, 0.0 }
 0x3c0   : > { %713 = vadd.xlane.f32.xlu0 %v712_v45  ;;  %v1021_v50 = vpop.eup %1020 }
 0x3c1   : > { %v715_v52 = vsel %vm324_vm3, %v1021_v50, 0.0 }
 0x3cd   : > { %598 = vrot.lane.b32.xlu1 %v1125_v32, %s1046_s6 }
 0x3d6   : > { %473 = vrot.lane.b32.xlu0 %v1125_v32, %s1044_s27 }
 0x3f1   : > { %716 = vadd.xlane.f32.xlu1 %v715_v52 }
 0x402   : > { %723 = vrot.lane.b32.xlu1 %v1125_v32, %s1045_s28 }
 0x43d   : > { %v463_v54 = vpop.xlane.xlu0 %462 }
 0x43f   : > { %v466_v53 = vpop.xlane.xlu1 %465 }
 0x440   : > { %1022 = vrcp.f32 %v466_v53 }
 0x441   : > { %1024 = vrcp.f32 %v463_v54 }
 0x445   : > { %v589_v55 = vpop.xlane.xlu0 %588 }
 0x449   : > { %v592_v56 = vpop.xlane.xlu1 %591 }
 0x44a   : > { %1026 = vrcp.f32 %v592_v56  ;;  %v1023_v57 = vpop.eup %1022 }
 0x44b   : > { %1028 = vrcp.f32 %v589_v55  ;;  %v1025_v59 = vpop.eup %1024  ;;  %v470_v60 = vmul.f32 %v1023_v57, %v1013_v36 }
 0x44c   : > { %v469_v61 = vmul.f32 %v1025_v59, %v1011_v33 }
 0x44d   : > { %v714_v58 = vpop.xlane.xlu0 %713  ;;  %v599_v32 = vpop.permute.xlu1 %598 }
 0x44e   : > { %v471_v63 = vpack.c.bf16 %v470_v60, %v469_v61  ;;  %1030 = vrcp.f32 %v714_v58 }
 0x451   : > { %v474_v62 = vpop.permute.xlu0 %473 }
 0x452   : > { %960 = vmatpush3.bf16.msra.mxu0 %v474_v62 }
 0x453   : > { %971 = vmatprep.subr.bf16.mxu0 %v1042_v0 }
 0x454   : > { %v1027_v1 = vpop.eup %1026 }
 0x455   : > { %962 = vmatmul.mubr.msk.bf16.vlgmr.msra.gmra.mrb[4].mxu0 %vm324_vm3, %v471_v63  ;;  %v1029_v2 = vpop.eup %1028  ;;  %v596_v3 = vmul.f32 %v1027_v1, %v1017_v42 }
 0x456   : > { %972 = vmatpush3.bf16.msra.mxu0 %v599_v32  ;;  %973 = vmatprep.mubr.msk.bf16.mxu0 %vm1043_vm0, %v1042_v0  ;;  %v595_v4 = vmul.f32 %v1029_v2, %v1015_v40 }
 0x457   : > { %983 = vmatprep.subr.bf16.mxu0 %v1042_v0 }
 0x458   : > { %v597_v5 = vpack.c.bf16 %v596_v3, %v595_v4  ;;  %v1031_v10 = vpop.eup %1030 }
 0x459   : > { %v720_v12 = vmul.f32 %v1031_v10, %v1019_v44 }
 0x45d   : > { %974 = vmatmul.mubr.msk.bf16.vlgmr.msra.gmra.mrb[8].mxu0 %vm324_vm3, %v597_v5 }
 0x45e   : > { %985 = vmatprep.mubr.msk.bf16.mxu0 %vm1043_vm0, %v1042_v0 }
 0x47e   : > { %v717_v6 = vpop.xlane.xlu1 %716 }
 0x47f   : > { %1032 = vrcp.f32 %v717_v6 }
 0x482   : > { %v724_v7 = vpop.permute.xlu1 %723 }
 0x483   : > { %984 = vmatpush3.bf16.msra.mxu0 %v724_v7 }
 0x489   : > { %v1033_v11 = vpop.eup %1032 }
 0x48a   : > { %v721_v13 = vmul.f32 %v1033_v11, %v1021_v50 }
 0x48c   : > { %v722_v14 = vpack.c.bf16 %v721_v13, %v720_v12 }
 0x48e   : > { %986 = vmatmul.mubr.msk.bf16.vlgmr.msra.gmra.mrb[12].mxu0 %vm324_vm3, %v722_v14 }
 0x528   : > { %v513_v15 = vpop.f32.mrb[4].mxu0 }
 0x529   : > { %772 = vrot.lane.b32.xlu1 %v513_v15, %s1045_s28  ;;  %v963_v16 = vpop.f32.mrb[5].mxu0 }
 0x52a   : > { %v516_v17 = vpop.f32.mrb[6].mxu0 }
 0x52b   : > { %774 = vrot.lane.b32.xlu0 %v516_v17, %s1045_s28  ;;  %v964_v0 = vpop.f32.mrb[7].mxu0 }
 0x530   : > { %v638_v18 = vpop.f32.mrb[8].mxu0 }
 0x531   : > { %780 = vrot.lane.b32.xlu1 %v638_v18, %s1046_s6  ;;  %v975_v19 = vpop.f32.mrb[9].mxu0 }
 0x532   : > { %v641_v20 = vpop.f32.mrb[10].mxu0 }
 0x533   : > { %782 = vrot.lane.b32.xlu0 %v641_v20, %s1046_s6  ;;  %v976_v21 = vpop.f32.mrb[11].mxu0 }
 0x561   : > { %v763_v22 = vpop.f32.mrb[12].mxu0 }
 0x562   : > { %788 = vrot.lane.b32.xlu1 %v763_v22, %s1044_s27  ;;  %v987_v23 = vpop.f32.mrb[13].mxu0 }
 0x563   : > { %v766_v24 = vpop.f32.mrb[14].mxu0 }
 0x564   : > { %790 = vrot.lane.b32.xlu0 %v766_v24, %s1044_s27  ;;  %v988_v25 = vpop.f32.mrb[15].mxu0 }
 0x59b   : > { %v773_v26 = vpop.permute.xlu1 %772 }
 0x59c   : > { %v794_v29 = vsel %vm270_vm1, %v1148_v49, %v773_v26 }
 0x59d   : > { %v775_v27 = vpop.permute.xlu0 %774 }
 0x59e   : > { %v795_v33 = vsel %vm270_vm1, %v1150_v51, %v775_v27 }
 0x5a3   : > { %v781_v8 = vpop.permute.xlu1 %780 }
 0x5a4   : > { %v797_v30 = vsel %vm796_vm5, %v794_v29, %v781_v8 }
 0x5a5   : > { %v783_v28 = vpop.permute.xlu0 %782 }
 0x5a6   : > { %v798_v34 = vsel %vm796_vm5, %v795_v33, %v783_v28 }
 0x5d4   : > { %v789_v31 = vpop.permute.xlu1 %788 }
 0x5d5   : > { %v800_v9 = vsel %vm799_vm6, %v797_v30, %v789_v31 }
 0x5d6   : > { %802 = vst [vmem:[%s257_s9] sm:$0xff] %v800_v9  ;;  %v791_v35 = vpop.permute.xlu0 %790 }
 0x5d7   : > { %v801_v36 = vsel %vm799_vm6, %v798_v34, %v791_v35 }
 0x5d8   : > { %803 = vst [vmem:[%s257_s9 + $0x8] sm:$0xff] %v801_v36 }
 0x5d9 PF: > { %s14_s15 = sadd.s32 1, %s1040_s15  }
 0x5da   : > { %p11_p4 = scmp.ge.s32.totalorder %s14_s15, 4  }
 0x5dc   :  { %13 = sbr.rel (!%p11_p4) target bundleno = 1 (0x1), region = 75 }

// kernel: decoder_block.11
= control target key start
LH: loop header
LB: loop body
LE: loop exit
PB: predicated region body
PF: predicated region fallthrough
CT: control target
= control target key end

     0   :  { %s422_s0 = inlined_call_operand.vmem [shape: f32[32,128], index: 0, kind: input, shape index: {}]   ;;  %s423_s3 = inlined_call_operand.vmem [shape: bf16[128,128], index: 3, kind: input, shape index: {}]   ;;  %s424_s1 = inlined_call_operand.vmem [shape: f32[1,128], index: 1, kind: input, shape index: {}]   ;;  %s425_s2 = inlined_call_operand.vmem [shape: f32[1,128], index: 2, kind: input, shape index: {}]   ;;  %s426_s4 = inlined_call_operand.vmem [shape: f32[1,128], index: 4, kind: input, shape index: {}]   ;;  %s427_s5 = inlined_call_operand.vmem [shape: f32[32,128], index: 5, kind: output, shape index: {}]  }
   0x1   :  { %v21_v0 = vld [vmem:[%s422_s0] sm:$0xff]  ;;  %v23_v1 = vld [vmem:[%s422_s0 + $0x10] sm:$0xff]  ;;  %v22_v2 = vld [vmem:[%s422_s0 + $0x8] sm:$0xff] }
   0x2   :  { %27 = vadd.xlane.f32.xlu0 %v21_v0  ;;  %31 = vadd.xlane.f32.xlu1 %v23_v1  ;;  %v24_v3 = vld [vmem:[%s422_s0 + $0x18] sm:$0xff]  ;;  %v291_v20 = vld [vmem:[%s423_s3] sm:$0xff]   ;;  %v292_v21 = vld [vmem:[%s423_s3 + $0x8] sm:$0xff]  }
   0x3   :  { %271 = vmatprep.subr.bf16.mxu0 %v291_v20  ;;  %v293_v22 = vld [vmem:[%s423_s3 + $0x10] sm:$0xff]   ;;  %v294_v23 = vld [vmem:[%s423_s3 + $0x18] sm:$0xff]   ;;  %v295_v24 = vld [vmem:[%s423_s3 + $0x20] sm:$0xff]  }
   0x4   :  { %272 = vmatpush3.bf16.msra.mxu0 %v291_v20  ;;  %v296_v25 = vld [vmem:[%s423_s3 + $0x28] sm:$0xff]   ;;  %v297_v26 = vld [vmem:[%s423_s3 + $0x30] sm:$0xff]   ;;  %v298_v27 = vld [vmem:[%s423_s3 + $0x38] sm:$0xff]  }
   0x5   :  { %273 = vmatprep.subr.bf16.mxu0 %v292_v21  ;;  %v250_v62 = vld [vmem:[%s424_s1] ss:$0 sm:$0xff] }
   0x6   :  { %29 = vadd.xlane.f32.xlu0 %v22_v2  ;;  %33 = vadd.xlane.f32.xlu1 %v24_v3 }
   0x8   :  { %274 = vmatpush3.bf16.msra.mxu0 %v292_v21 }
   0x9   :  { %275 = vmatprep.subr.bf16.mxu0 %v293_v22 }
   0xc   :  { %276 = vmatpush3.bf16.msra.mxu0 %v293_v22 }
   0xd   :  { %277 = vmatprep.subr.bf16.mxu0 %v294_v23 }
  0x10   :  { %278 = vmatpush3.bf16.msra.mxu0 %v294_v23 }
  0x11   :  { %279 = vmatprep.subr.bf16.mxu0 %v295_v24 }
  0x14   :  { %280 = vmatpush3.bf16.msra.mxu0 %v295_v24 }
  0x15   :  { %281 = vmatprep.subr.bf16.mxu0 %v296_v25 }
  0x18   :  { %282 = vmatpush3.bf16.msra.mxu0 %v296_v25 }
  0x19   :  { %283 = vmatprep.subr.bf16.mxu0 %v297_v26 }
  0x1c   :  { %284 = vmatpush3.bf16.msra.mxu0 %v297_v26 }
  0x1d   :  { %285 = vmatprep.subr.bf16.mxu0 %v298_v27 }
  0x20   :  { %286 = vmatpush3.bf16.msra.mxu0 %v298_v27 }
  0x8f   :  { %v28_v4 = vpop.xlane.xlu0 %27  ;;  %v32_v5 = vpop.xlane.xlu1 %31 }
  0x90   :  { %v36_v6 = vmul.f32 0.0078125, %v28_v4  ;;  %v38_v7 = vmul.f32 0.0078125, %v32_v5 }
  0x92   :  { %v357_v8 = vsub.f32 %v21_v0, %v36_v6  ;;  %v359_v9 = vsub.f32 %v23_v1, %v38_v7 }
  0x93   :  { %v30_v10 = vpop.xlane.xlu0 %29  ;;  %v34_v11 = vpop.xlane.xlu1 %33 }
  0x94   :  { %v37_v12 = vmul.f32 0.0078125, %v30_v10  ;;  %v44_v13 = vmul.f32 %v357_v8, %v357_v8  ;;  %v39_v14 = vmul.f32 0.0078125, %v34_v11  ;;  %v46_v17 = vmul.f32 %v359_v9, %v359_v9 }
  0x96   :  { %v363_v15 = vsub.f32 %v22_v2, %v37_v12  ;;  %48 = vadd.xlane.f32.xlu0 %v44_v13  ;;  %v365_v16 = vsub.f32 %v24_v3, %v39_v14  ;;  %v251_v3 = vld [vmem:[%s425_s2] ss:$0 sm:$0xff] }
  0x98   :  { %v45_v18 = vmul.f32 %v363_v15, %v363_v15  ;;  %v47_v19 = vmul.f32 %v365_v16, %v365_v16 }
  0x9a   :  { %52 = vadd.xlane.f32.xlu0 %v46_v17  ;;  %50 = vadd.xlane.f32.xlu1 %v45_v18  ;;  %v252_v18 = vld [vmem:[%s426_s4] ss:$0 sm:$0xff] }
  0x9e   :  { %54 = vadd.xlane.f32.xlu1 %v47_v19 }
 0x123   :  { %v49_v28 = vpop.xlane.xlu0 %48 }
 0x124   :  { %v56_v29 = vmul.f32 0.007874016, %v49_v28 }
 0x126   :  { %299 = vrsqrt.f32 %v56_v29  ;;  %vm62_vm0 = vcmp.eq.f32.partialorder %v56_v29, inf  ;;  %v65_v38 = vand.u32 2147483648, %v56_v29  ;;  %vm64_vm1 = vcmp.eq.f32.partialorder %v56_v29, 0.0 }
 0x127   :  { %v51_v30 = vpop.xlane.xlu1 %50  ;;  %v53_v31 = vpop.xlane.xlu0 %52 }
 0x128   :  { %v57_v32 = vmul.f32 0.007874016, %v51_v30  ;;  %v58_v33 = vmul.f32 0.007874016, %v53_v31 }
 0x12a   :  { %301 = vrsqrt.f32 %v57_v32  ;;  %vm69_vm2 = vcmp.eq.f32.partialorder %v57_v32, inf  ;;  %vm71_vm3 = vcmp.eq.f32.partialorder %v57_v32, 0.0  ;;  %v72_v45 = vand.u32 2147483648, %v57_v32 }
 0x12b   :  { %303 = vrsqrt.f32 %v58_v33  ;;  %v55_v34 = vpop.xlane.xlu1 %54  ;;  %vm76_vm4 = vcmp.eq.f32.partialorder %v58_v33, inf  ;;  %v79_v48 = vand.u32 2147483648, %v58_v33  ;;  %vm78_vm5 = vcmp.eq.f32.partialorder %v58_v33, 0.0 }
 0x12c   :  { %v59_v35 = vmul.f32 0.007874016, %v55_v34 }
 0x12e   :  { %305 = vrsqrt.f32 %v59_v35  ;;  %vm83_vm6 = vcmp.eq.f32.partialorder %v59_v35, inf  ;;  %v86_v56 = vand.u32 2147483648, %v59_v35  ;;  %vm85_vm7 = vcmp.eq.f32.partialorder %v59_v35, 0.0 }
 0x130   :  { %v300_v36 = vpop.eup %299 }
 0x131   :  { %v61_v37 = vmul.f32 %v300_v36, %v56_v29 }
 0x133   :  { %v63_v39 = vsel %vm62_vm0, %v56_v29, %v61_v37 }
 0x134   :  { %v302_v40 = vpop.eup %301  ;;  %v66_v41 = vsel %vm64_vm1, %v65_v38, %v63_v39 }
 0x135   :  { %v304_v42 = vpop.eup %303  ;;  %v68_v43 = vmul.f32 %v302_v40, %v57_v32  ;;  %v88_v44 = vadd.f32 1e-05, %v66_v41 }
 0x136   :  { %v75_v46 = vmul.f32 %v304_v42, %v58_v33 }
 0x137   :  { %v70_v47 = vsel %vm69_vm2, %v57_v32, %v68_v43  ;;  %307 = vrcp.f32 %v88_v44 }
 0x138   :  { %v306_v49 = vpop.eup %305  ;;  %v77_v50 = vsel %vm76_vm4, %v58_v33, %v75_v46  ;;  %v73_v51 = vsel %vm71_vm3, %v72_v45, %v70_v47 }
 0x139   :  { %v80_v52 = vsel %vm78_vm5, %v79_v48, %v77_v50  ;;  %v82_v53 = vmul.f32 %v306_v49, %v59_v35  ;;  %v89_v54 = vadd.f32 1e-05, %v73_v51 }
 0x13a   :  { %v90_v55 = vadd.f32 1e-05, %v80_v52 }
 0x13b   :  { %v84_v57 = vsel %vm83_vm6, %v59_v35, %v82_v53  ;;  %309 = vrcp.f32 %v89_v54 }
 0x13c   :  { %311 = vrcp.f32 %v90_v55  ;;  %v87_v58 = vsel %vm85_vm7, %v86_v56, %v84_v57 }
 0x13d   :  { %v91_v59 = vadd.f32 1e-05, %v87_v58 }
 0x13f   :  { %313 = vrcp.f32 %v91_v59 }
 0x141   :  { %v308_v60 = vpop.eup %307 }
 0x142   :  { %v96_v61 = vmul.f32 %v308_v60, %v357_v8 }
 0x144   :  { %v106_v2 = vmul.f32 %v250_v62, %v96_v61 }
 0x145   :  { %v310_v63 = vpop.eup %309 }
 0x146   :  { %v312_v0 = vpop.eup %311  ;;  %v97_v1 = vmul.f32 %v310_v63, %v363_v15  ;;  %v116_v7 = vadd.f32 %v251_v3, %v106_v2 }
 0x147   :  { %v98_v4 = vmul.f32 %v312_v0, %v359_v9 }
 0x148   :  { %v107_v5 = vmul.f32 %v250_v62, %v97_v1 }
 0x149   :  { %v314_v6 = vpop.eup %313  ;;  %v108_v11 = vmul.f32 %v250_v62, %v98_v4 }
 0x14a   :  { %v117_v10 = vadd.f32 %v251_v3, %v107_v5  ;;  %v99_v8 = vmul.f32 %v314_v6, %v365_v16 }
 0x14b   :  { %v118_v14 = vadd.f32 %v251_v3, %v108_v11 }
 0x14c   :  { %v120_v12 = vpack.c.bf16 %v117_v10, %v116_v7  ;;  %v109_v13 = vmul.f32 %v250_v62, %v99_v8 }
 0x14e   :  { %287 = vmatprep.mubr.bf16.mxu0 %v120_v12  ;;  %v119_v17 = vadd.f32 %v251_v3, %v109_v13 }
 0x150   :  { %v121_v15 = vpack.c.bf16 %v119_v17, %v118_v14 }
 0x152   :  { %288 = vmatmul.mubr.bf16.vlgmr.msra.gmra.mrb[0].mxu0 %v121_v15 }
 0x225   :  { %v289_v19 = vpop.f32.mrb[0].mxu0 }
 0x226   :  { %v236_v9 = vadd.f32 %v289_v19, %v252_v18  ;;  %v227_v20 = vpop.f32.mrb[1].mxu0 }
 0x227   :  { %v228_v21 = vadd.f32 %v252_v18, %v227_v20  ;;  %v290_v22 = vpop.f32.mrb[2].mxu0 }
 0x228   :  { %244 = vst [vmem:[%s427_s5 + $0x10] sm:$0xff] %v236_v9  ;;  %v239_v16 = vadd.f32 %v290_v22, %v252_v18  ;;  %v230_v23 = vpop.f32.mrb[3].mxu0 }
 0x229   :  { %242 = vst [vmem:[%s427_s5] sm:$0xff] %v228_v21  ;;  %v231_v24 = vadd.f32 %v252_v18, %v230_v23 }
 0x22a   :  { %245 = vst [vmem:[%s427_s5 + $0x18] sm:$0xff] %v239_v16 }
 0x22b   :  { %243 = vst [vmem:[%s427_s5 + $0x8] sm:$0xff] %v231_v24 }

// kernel: decoder_block.12
= control target key start
LH: loop header
LB: loop body
LE: loop exit
PB: predicated region body
PF: predicated region fallthrough
CT: control target
= control target key end

     0   :  { %v257_v1 = vmov 0   ;;  %v41_v23 = vlaneseq  ;;  %s370_s1 = inlined_call_operand.vmem [shape: bf16[128,256], index: 1, kind: input, shape index: {}]   ;;  %s371_s0 = inlined_call_operand.vmem [shape: f32[32,128], index: 0, kind: input, shape index: {}]   ;;  %s372_s2 = inlined_call_operand.vmem [shape: f32[1,256], index: 2, kind: input, shape index: {}]   ;;  %s373_s3 = inlined_call_operand.vmem [shape: f32[32,128], index: 3, kind: output, shape index: {0}]   ;;  %s374_s4 = inlined_call_operand.vmem [shape: f32[32,128], index: 4, kind: output, shape index: {1}]  }
   0x1   :  { %v233_v0 = vld [vmem:[%s370_s1 + $0x4] ss:$8 sps:$4 sm:$0xff]   ;;  %163 = vmatprep.mubr.bf16.mxu0 %v257_v1  ;;  %173 = vmatprep.mubr.bf16.mxu1 %v257_v1  ;;  %v235_v2 = vld [vmem:[%s370_s1] ss:$8 sps:$4 sm:$0xff]   ;;  %v236_v3 = vld [vmem:[%s370_s1 + $0x14] ss:$8 sps:$4 sm:$0xff]  }
   0x2   :  { %131 = vmatprep.subr.bf16.mxu0 %v233_v0  ;;  %216 = vmatprep.subr.bf16.mxu1 %v233_v0  ;;  %v238_v4 = vld [vmem:[%s370_s1 + $0x10] ss:$8 sps:$4 sm:$0xff]   ;;  %v239_v5 = vld [vmem:[%s370_s1 + $0x24] ss:$8 sps:$4 sm:$0xff]   ;;  %v241_v6 = vld [vmem:[%s370_s1 + $0x20] ss:$8 sps:$4 sm:$0xff]  }
   0x3   :  { %132 = vmatpush1.bf16.msra.mxu0 %v235_v2  ;;  %224 = vmatpush1.bf16.msra.mxu1 %v235_v2  ;;  %v242_v7 = vld [vmem:[%s370_s1 + $0x34] ss:$8 sps:$4 sm:$0xff]   ;;  %v244_v8 = vld [vmem:[%s370_s1 + $0x30] ss:$8 sps:$4 sm:$0xff]   ;;  %v245_v9 = vld [vmem:[%s370_s1 + $0x44] ss:$8 sps:$4 sm:$0xff]  }
   0x4   :  { %133 = vmatprep.subr.bf16.mxu0 %v236_v3  ;;  %217 = vmatprep.subr.bf16.mxu1 %v236_v3  ;;  %v247_v10 = vld [vmem:[%s370_s1 + $0x40] ss:$8 sps:$4 sm:$0xff]   ;;  %v248_v11 = vld [vmem:[%s370_s1 + $0x54] ss:$8 sps:$4 sm:$0xff]   ;;  %v250_v12 = vld [vmem:[%s370_s1 + $0x50] ss:$8 sps:$4 sm:$0xff]  }
   0x5   :  { %v251_v13 = vld [vmem:[%s370_s1 + $0x64] ss:$8 sps:$4 sm:$0xff]   ;;  %v253_v14 = vld [vmem:[%s370_s1 + $0x60] ss:$8 sps:$4 sm:$0xff]   ;;  %v254_v15 = vld [vmem:[%s370_s1 + $0x74] ss:$8 sps:$4 sm:$0xff]  }
   0x6   :  { %v256_v16 = vld [vmem:[%s370_s1 + $0x70] ss:$8 sps:$4 sm:$0xff]   ;;  %v17_v17 = vld [vmem:[%s371_s0] sm:$0xff]  ;;  %v18_v18 = vld [vmem:[%s371_s0 + $0x8] sm:$0xff]  ;;  %v42_v24 = vshrl.u32 %v41_v23, 7 }
   0x7   :  { %134 = vmatpush1.bf16.msra.mxu0 %v238_v4  ;;  %225 = vmatpush1.bf16.msra.mxu1 %v238_v4  ;;  %v19_v19 = vld [vmem:[%s371_s0 + $0x10] sm:$0xff]  ;;  %v20_v20 = vld [vmem:[%s371_s0 + $0x18] sm:$0xff]  ;;  %v21_v21 = vpack.c.bf16 %v18_v18, %v17_v17  ;;  %v39_v26 = vld [vmem:[%s372_s2] sm:$0x3] }
   0x8   :  { %135 = vmatprep.subr.bf16.mxu0 %v239_v5  ;;  %218 = vmatprep.subr.bf16.mxu1 %v239_v5  ;;  %v22_v22 = vpack.c.bf16 %v20_v20, %v19_v19  ;;  %v43_v25 = vsub.s32 0, %v42_v24  ;;  %v47_v27 = vsub.s32 1, %v42_v24 }
   0xa   :  { %v44_v28 = vrot.slane %v39_v26, %v43_v25  ;;  %v48_v29 = vrot.slane %v39_v26, %v47_v27 }
   0xb   :  { %136 = vmatpush1.bf16.msra.mxu0 %v241_v6  ;;  %226 = vmatpush1.bf16.msra.mxu1 %v241_v6 }
   0xc   :  { %137 = vmatprep.subr.bf16.mxu0 %v242_v7  ;;  %219 = vmatprep.subr.bf16.mxu1 %v242_v7 }
   0xf   :  { %138 = vmatpush1.bf16.msra.mxu0 %v244_v8  ;;  %227 = vmatpush1.bf16.msra.mxu1 %v244_v8 }
  0x10   :  { %139 = vmatprep.subr.bf16.mxu0 %v245_v9  ;;  %220 = vmatprep.subr.bf16.mxu1 %v245_v9 }
  0x13   :  { %140 = vmatpush1.bf16.msra.mxu0 %v247_v10  ;;  %228 = vmatpush1.bf16.msra.mxu1 %v247_v10 }
  0x14   :  { %141 = vmatprep.subr.bf16.mxu0 %v248_v11  ;;  %221 = vmatprep.subr.bf16.mxu1 %v248_v11 }
  0x17   :  { %142 = vmatpush1.bf16.msra.mxu0 %v250_v12  ;;  %229 = vmatpush1.bf16.msra.mxu1 %v250_v12 }
  0x18   :  { %143 = vmatprep.subr.bf16.mxu0 %v251_v13  ;;  %222 = vmatprep.subr.bf16.mxu1 %v251_v13 }
  0x1b   :  { %144 = vmatpush1.bf16.msra.mxu0 %v253_v14  ;;  %230 = vmatpush1.bf16.msra.mxu1 %v253_v14 }
  0x1c   :  { %145 = vmatprep.subr.bf16.mxu0 %v254_v15  ;;  %223 = vmatprep.subr.bf16.mxu1 %v254_v15 }
  0x1f   :  { %146 = vmatpush1.bf16.msra.mxu0 %v256_v16  ;;  %231 = vmatpush1.bf16.msra.mxu1 %v256_v16 }
  0x22   :  { %164 = vmatmul.mubr.bf16.vlgmr.msra.gmra.mrb[0].mxu0 %v21_v21  ;;  %174 = vmatmul.mubr.bf16.vlgmr.msra.gmra.mrb[0].mxu1 %v22_v22 }
  0xf5   :  { %v165_v30 = vpop.f32.mrb[0].mxu0  ;;  %v175_v31 = vpop.f32.mrb[0].mxu1 }
  0xf6   :  { %v166_v32 = vadd.f32 %v165_v30, %v44_v28  ;;  %v176_v33 = vadd.f32 %v175_v31, %v44_v28  ;;  %v167_v34 = vpop.f32.mrb[1].mxu0  ;;  %v177_v35 = vpop.f32.mrb[1].mxu1 }
  0xf7   :  { %v168_v36 = vadd.f32 %v167_v34, %v48_v29  ;;  %v178_v37 = vadd.f32 %v177_v35, %v48_v29  ;;  %v169_v38 = vpop.f32.mrb[2].mxu0  ;;  %v179_v39 = vpop.f32.mrb[2].mxu1 }
  0xf8   :  { %184 = vst [vmem:[%s373_s3] sm:$0xff] %v166_v32  ;;  %186 = vst [vmem:[%s373_s3 + $0x10] sm:$0xff] %v176_v33  ;;  %v170_v40 = vadd.f32 %v169_v38, %v44_v28  ;;  %v180_v41 = vadd.f32 %v179_v39, %v44_v28  ;;  %v171_v42 = vpop.f32.mrb[3].mxu0  ;;  %v181_v43 = vpop.f32.mrb[3].mxu1 }
  0xf9   :  { %188 = vst [vmem:[%s374_s4] sm:$0xff] %v168_v36  ;;  %190 = vst [vmem:[%s374_s4 + $0x10] sm:$0xff] %v178_v37  ;;  %v172_v44 = vadd.f32 %v171_v42, %v48_v29  ;;  %v182_v45 = vadd.f32 %v181_v43, %v48_v29 }
  0xfa   :  { %185 = vst [vmem:[%s373_s3 + $0x8] sm:$0xff] %v170_v40  ;;  %187 = vst [vmem:[%s373_s3 + $0x18] sm:$0xff] %v180_v41 }
  0xfb   :  { %189 = vst [vmem:[%s374_s4 + $0x8] sm:$0xff] %v172_v44  ;;  %191 = vst [vmem:[%s374_s4 + $0x18] sm:$0xff] %v182_v45 }

// kernel: decoder_block.15
= control target key start
LH: loop header
LB: loop body
LE: loop exit
PB: predicated region body
PF: predicated region fallthrough
CT: control target
= control target key end

     0   :  { %s914_s0 = inlined_call_operand.vmem [shape: f32[32,128], index: 0, kind: input, shape index: {}]   ;;  %s915_s1 = inlined_call_operand.vmem [shape: f32[1,128], index: 1, kind: input, shape index: {}]   ;;  %s916_s2 = inlined_call_operand.vmem [shape: f32[1,128], index: 2, kind: input, shape index: {}]   ;;  %s917_s3 = inlined_call_operand.vmem [shape: bf16[128,256], index: 3, kind: input, shape index: {}]   ;;  %s918_s4 = inlined_call_operand.vmem [shape: f32[1,256], index: 4, kind: input, shape index: {}]   ;;  %s919_s5 = inlined_call_operand.vmem [shape: bf16[256,128], index: 5, kind: input, shape index: {}]   ;;  %s920_s6 = inlined_call_operand.vmem [shape: f32[1,128], index: 6, kind: input, shape index: {}]   ;;  %s921_s7 = inlined_call_operand.hbm [shape: f32[32,128], index: 7, kind: output, shape index: {}]  }
   0x1   :  { %v743_v0 = vld [vmem:[%s914_s0] sm:$0xff]  ;;  %v748_v1 = vld [vmem:[%s914_s0 + $0x10] sm:$0xff]  ;;  %v753_v2 = vld [vmem:[%s914_s0 + $0x8] sm:$0xff] }
   0x2   :  { %38 = vadd.xlane.f32.xlu0 %v743_v0  ;;  %42 = vadd.xlane.f32.xlu1 %v748_v1  ;;  %v760_v3 = vld [vmem:[%s914_s0 + $0x18] sm:$0xff] }
   0x6   :  { %40 = vadd.xlane.f32.xlu0 %v753_v2  ;;  %44 = vadd.xlane.f32.xlu1 %v760_v3 }
   0x7   :  { %12 = vsyncpa [#allocation5], 0  ;;  %v616_v20 = vld [vmem:[%s917_s3 + $0x4] ss:$8 sps:$4 sm:$0xff]   ;;  %v618_v21 = vld [vmem:[%s917_s3] ss:$8 sps:$4 sm:$0xff]  }
   0x8   :  { %249 = vmatprep.subr.bf16.mxu0 %v616_v20  ;;  %v619_v22 = vld [vmem:[%s917_s3 + $0x14] ss:$8 sps:$4 sm:$0xff]   ;;  %v621_v23 = vld [vmem:[%s917_s3 + $0x10] ss:$8 sps:$4 sm:$0xff]   ;;  %v622_v24 = vld [vmem:[%s917_s3 + $0x24] ss:$8 sps:$4 sm:$0xff]  }
   0x9   :  { %250 = vmatpush1.bf16.msra.mxu0 %v618_v21  ;;  %v624_v25 = vld [vmem:[%s917_s3 + $0x20] ss:$8 sps:$4 sm:$0xff]   ;;  %v625_v26 = vld [vmem:[%s917_s3 + $0x34] ss:$8 sps:$4 sm:$0xff]   ;;  %v627_v27 = vld [vmem:[%s917_s3 + $0x30] ss:$8 sps:$4 sm:$0xff]  }
   0xa   :  { %251 = vmatprep.subr.bf16.mxu0 %v619_v22  ;;  %v628_v28 = vld [vmem:[%s917_s3 + $0x44] ss:$8 sps:$4 sm:$0xff]   ;;  %v630_v29 = vld [vmem:[%s917_s3 + $0x40] ss:$8 sps:$4 sm:$0xff]   ;;  %v631_v30 = vld [vmem:[%s917_s3 + $0x54] ss:$8 sps:$4 sm:$0xff]  }
   0xb   :  { %v633_v31 = vld [vmem:[%s917_s3 + $0x50] ss:$8 sps:$4 sm:$0xff]   ;;  %v634_v32 = vld [vmem:[%s917_s3 + $0x64] ss:$8 sps:$4 sm:$0xff]   ;;  %v696_v33 = vmov 0   ;;  %s697_s26 = smov [#allocation4]  }
   0xc   :  { %281 = vmatprep.mubr.bf16.mxu0 %v696_v33  ;;  %v636_v34 = vld [vmem:[%s917_s3 + $0x60] ss:$8 sps:$4 sm:$0xff]   ;;  %v637_v35 = vld [vmem:[%s917_s3 + $0x74] ss:$8 sps:$4 sm:$0xff]   ;;  %v639_v36 = vld [vmem:[%s917_s3 + $0x70] ss:$8 sps:$4 sm:$0xff]  }
   0xd   :  { %252 = vmatpush1.bf16.msra.mxu0 %v621_v23  ;;  %v640_v37 = vld [vmem:[%s919_s5 + $0x40] sm:$0xff]   ;;  %v642_v39 = vld [vmem:[%s919_s5 + $0x48] sm:$0xff]   ;;  %v644_v41 = vld [vmem:[%s919_s5 + $0x50] sm:$0xff]  }
   0xe   :  { %253 = vmatprep.subr.bf16.mxu0 %v622_v24  ;;  %v641_v38 = vld [vmem:[%s919_s5] sm:$0xff]   ;;  %584 = vmatprep.subr.bf16.mxu1 %v640_v37  ;;  %v643_v40 = vld [vmem:[%s919_s5 + $0x8] sm:$0xff]   ;;  %v645_v42 = vld [vmem:[%s919_s5 + $0x10] sm:$0xff]  }
   0xf   :  { %585 = vmatpush3.bf16.msra.mxu1 %v641_v38  ;;  %v646_v43 = vld [vmem:[%s919_s5 + $0x58] sm:$0xff]   ;;  %v648_v45 = vld [vmem:[%s919_s5 + $0x60] sm:$0xff]   ;;  %v650_v47 = vld [vmem:[%s919_s5 + $0x68] sm:$0xff]  }
  0x10   :  { %586 = vmatprep.subr.bf16.mxu1 %v642_v39  ;;  %v647_v44 = vld [vmem:[%s919_s5 + $0x18] sm:$0xff]   ;;  %v649_v46 = vld [vmem:[%s919_s5 + $0x20] sm:$0xff]  }
  0x11   :  { %254 = vmatpush1.bf16.msra.mxu0 %v624_v25 }
  0x12   :  { %255 = vmatprep.subr.bf16.mxu0 %v625_v26  ;;  %v549_v26 = vld [vmem:[%s915_s1] ss:$0 sm:$0xff] }
  0x13   :  { %587 = vmatpush3.bf16.msra.mxu1 %v643_v40 }
  0x14   :  { %588 = vmatprep.subr.bf16.mxu1 %v644_v41 }
  0x15   :  { %256 = vmatpush1.bf16.msra.mxu0 %v627_v27 }
  0x16   :  { %257 = vmatprep.subr.bf16.mxu0 %v628_v28 }
  0x17   :  { %589 = vmatpush3.bf16.msra.mxu1 %v645_v42 }
  0x18   :  { %590 = vmatprep.subr.bf16.mxu1 %v646_v43  ;;  %v651_v43 = vld [vmem:[%s919_s5 + $0x28] sm:$0xff]  }
  0x19   :  { %258 = vmatpush1.bf16.msra.mxu0 %v630_v29 }
  0x1a   :  { %259 = vmatprep.subr.bf16.mxu0 %v631_v30 }
  0x1b   :  { %591 = vmatpush3.bf16.msra.mxu1 %v647_v44  ;;  %v655_v44 = vld [vmem:[%s919_s5 + $0x38] sm:$0xff]  }
  0x1c   :  { %592 = vmatprep.subr.bf16.mxu1 %v648_v45  ;;  %v159_v45 = vlaneseq }
  0x1d   :  { %260 = vmatpush1.bf16.msra.mxu0 %v633_v31  ;;  %v550_v31 = vld [vmem:[%s916_s2] ss:$0 sm:$0xff] }
  0x1e   :  { %261 = vmatprep.subr.bf16.mxu0 %v634_v32 }
  0x1f   :  { %593 = vmatpush3.bf16.msra.mxu1 %v649_v46  ;;  %v160_v46 = vshrl.u32 %v159_v45, 7 }
  0x20   :  { %594 = vmatprep.subr.bf16.mxu1 %v650_v47 }
  0x21   :  { %262 = vmatpush1.bf16.msra.mxu0 %v636_v34  ;;  %v161_v47 = vsub.s32 0, %v160_v46 }
  0x22   :  { %263 = vmatprep.subr.bf16.mxu0 %v637_v35 }
  0x23   :  { %595 = vmatpush3.bf16.msra.mxu1 %v651_v43 }
  0x25   :  { %264 = vmatpush1.bf16.msra.mxu0 %v639_v36 }
  0x8f   :  { %v39_v4 = vpop.xlane.xlu0 %38  ;;  %v43_v5 = vpop.xlane.xlu1 %42 }
  0x90   :  { %v47_v6 = vmul.f32 0.0078125, %v39_v4  ;;  %v49_v7 = vmul.f32 0.0078125, %v43_v5 }
  0x92   :  { %v765_v8 = vsub.f32 %v743_v0, %v47_v6  ;;  %v768_v9 = vsub.f32 %v748_v1, %v49_v7 }
  0x93   :  { %v41_v10 = vpop.xlane.xlu0 %40  ;;  %v45_v11 = vpop.xlane.xlu1 %44 }
  0x94   :  { %v48_v12 = vmul.f32 0.0078125, %v41_v10  ;;  %v55_v13 = vmul.f32 %v765_v8, %v765_v8  ;;  %v50_v14 = vmul.f32 0.0078125, %v45_v11  ;;  %v57_v17 = vmul.f32 %v768_v9, %v768_v9 }
  0x96   :  { %v773_v15 = vsub.f32 %v753_v2, %v48_v12  ;;  %59 = vadd.xlane.f32.xlu0 %v55_v13  ;;  %v776_v16 = vsub.f32 %v760_v3, %v50_v14 }
  0x98   :  { %v56_v18 = vmul.f32 %v773_v15, %v773_v15  ;;  %v58_v19 = vmul.f32 %v776_v16, %v776_v16 }
  0x9a   :  { %63 = vadd.xlane.f32.xlu0 %v57_v17  ;;  %61 = vadd.xlane.f32.xlu1 %v56_v18 }
  0x9e   :  { %65 = vadd.xlane.f32.xlu1 %v58_v19 }
 0x123   :  { %v60_v48 = vpop.xlane.xlu0 %59 }
 0x124   :  { %v67_v49 = vmul.f32 0.007874016, %v60_v48  ;;  %v157_v48 = vld [vmem:[%s918_s4] sm:$0x3] }
 0x126   :  { %656 = vrsqrt.f32 %v67_v49  ;;  %vm73_vm0 = vcmp.eq.f32.partialorder %v67_v49, inf  ;;  %v76_v58 = vand.u32 2147483648, %v67_v49  ;;  %vm75_vm1 = vcmp.eq.f32.partialorder %v67_v49, 0.0 }
 0x127   :  { %v62_v50 = vpop.xlane.xlu1 %61  ;;  %v64_v51 = vpop.xlane.xlu0 %63 }
 0x128   :  { %v68_v52 = vmul.f32 0.007874016, %v62_v50  ;;  %v69_v53 = vmul.f32 0.007874016, %v64_v51  ;;  %v162_v50 = vrot.slane %v157_v48, %v161_v47 }
 0x12a   :  { %658 = vrsqrt.f32 %v68_v52  ;;  %vm80_vm2 = vcmp.eq.f32.partialorder %v68_v52, inf  ;;  %vm82_vm3 = vcmp.eq.f32.partialorder %v68_v52, 0.0  ;;  %v83_v5 = vand.u32 2147483648, %v68_v52 }
 0x12b   :  { %660 = vrsqrt.f32 %v69_v53  ;;  %v66_v54 = vpop.xlane.xlu1 %65  ;;  %vm87_vm4 = vcmp.eq.f32.partialorder %v69_v53, inf  ;;  %v90_v10 = vand.u32 2147483648, %v69_v53  ;;  %vm89_vm5 = vcmp.eq.f32.partialorder %v69_v53, 0.0 }
 0x12c   :  { %v70_v55 = vmul.f32 0.007874016, %v66_v54 }
 0x12e   :  { %662 = vrsqrt.f32 %v70_v55  ;;  %vm94_vm6 = vcmp.eq.f32.partialorder %v70_v55, inf  ;;  %v97_v20 = vand.u32 2147483648, %v70_v55  ;;  %vm96_vm7 = vcmp.eq.f32.partialorder %v70_v55, 0.0 }
 0x130   :  { %v657_v56 = vpop.eup %656 }
 0x131   :  { %v72_v57 = vmul.f32 %v657_v56, %v67_v49 }
 0x133   :  { %v74_v59 = vsel %vm73_vm0, %v67_v49, %v72_v57  ;;  %v165_v49 = vsub.s32 1, %v160_v46 }
 0x134   :  { %v659_v60 = vpop.eup %658  ;;  %v77_v61 = vsel %vm75_vm1, %v76_v58, %v74_v59 }
 0x135   :  { %v661_v62 = vpop.eup %660  ;;  %v99_v63 = vadd.f32 1e-05, %v77_v61  ;;  %v79_v4 = vmul.f32 %v659_v60, %v68_v52  ;;  %v166_v51 = vrot.slane %v157_v48, %v165_v49 }
 0x136   :  { %v86_v6 = vmul.f32 %v661_v62, %v69_v53 }
 0x137   :  { %v81_v7 = vsel %vm80_vm2, %v68_v52, %v79_v4  ;;  %664 = vrcp.f32 %v99_v63 }
 0x138   :  { %v663_v11 = vpop.eup %662  ;;  %v84_v12 = vsel %vm82_vm3, %v83_v5, %v81_v7  ;;  %v88_v13 = vsel %vm87_vm4, %v69_v53, %v86_v6 }
 0x139   :  { %v100_v14 = vadd.f32 1e-05, %v84_v12  ;;  %v91_v17 = vsel %vm89_vm5, %v90_v10, %v88_v13  ;;  %v93_v18 = vmul.f32 %v663_v11, %v70_v55 }
 0x13a   :  { %v101_v19 = vadd.f32 1e-05, %v91_v17 }
 0x13b   :  { %v95_v21 = vsel %vm94_vm6, %v70_v55, %v93_v18  ;;  %666 = vrcp.f32 %v100_v14 }
 0x13c   :  { %v98_v22 = vsel %vm96_vm7, %v97_v20, %v95_v21  ;;  %668 = vrcp.f32 %v101_v19 }
 0x13d   :  { %v102_v23 = vadd.f32 1e-05, %v98_v22 }
 0x13f   :  { %670 = vrcp.f32 %v102_v23 }
 0x141   :  { %v665_v24 = vpop.eup %664 }
 0x142   :  { %v107_v25 = vmul.f32 %v665_v24, %v765_v8 }
 0x144   :  { %v117_v29 = vmul.f32 %v549_v26, %v107_v25 }
 0x145   :  { %v667_v27 = vpop.eup %666 }
 0x146   :  { %v108_v28 = vmul.f32 %v667_v27, %v773_v15  ;;  %v669_v30 = vpop.eup %668  ;;  %v127_v35 = vadd.f32 %v550_v31, %v117_v29 }
 0x147   :  { %v109_v37 = vmul.f32 %v669_v30, %v768_v9  ;;  %v652_v9 = vld [vmem:[%s919_s5 + $0x70] sm:$0xff]  }
 0x148   :  { %v118_v32 = vmul.f32 %v549_v26, %v108_v28  ;;  %596 = vmatprep.subr.bf16.mxu1 %v652_v9  ;;  %v583_v28 = vld [vmem:[%s920_s6] ss:$0 sm:$0xff]  ;;  %s538_s6 = sshll.u32 %s697_s26, 4  ;;  %s539_s6 = int_to_ptr.vmem [resolvable:$true] %s538_s6 }
 0x149   :  { %v671_v34 = vpop.eup %670  ;;  %v119_v40 = vmul.f32 %v549_v26, %v109_v37  ;;  %s672_s27 = scalar_lea.vmem %s539_s6, 512  ;;  %p677_p1 = scmp.lt.s32.totalorder %s539_s6, %s539_s6 }
 0x14a   :  { %v128_v36 = vadd.f32 %v550_v31, %v118_v32  ;;  %v110_v8 = vmul.f32 %v671_v34, %v776_v16  ;;  %v653_v16 = vld [vmem:[%s919_s5 + $0x30] sm:$0xff]   ;;  %p673_p0 = scmp.ne.s32.totalorder %s539_s6, %s672_s27  ;;  %p678_p2 = scmp.lt.s32.totalorder %s672_s27, %s672_s27 }
 0x14b   :  { %v129_v41 = vadd.f32 %v550_v31, %v119_v40  ;;  %597 = vmatpush3.bf16.msra.mxu1 %v653_v16 }
 0x14c   :  { %v131_v38 = vpack.c.bf16 %v128_v36, %v127_v35  ;;  %v120_v39 = vmul.f32 %v549_v26, %v110_v8  ;;  %p679_p3 = por %p678_p2, %p677_p1 }
 0x14e   :  { %282 = vmatmul.mubr.bf16.vlgmr.msra.gmra.mrb[0].mxu0 %v131_v38  ;;  %v130_v15 = vadd.f32 %v550_v31, %v120_v39  ;;  %p680_p4 = pnand %p679_p3, %p673_p0 }
 0x14f   :  { %291 = vmatprep.mubr.bf16.mxu0 %v696_v33  ;;  %v654_v33 = vld [vmem:[%s919_s5 + $0x78] sm:$0xff]  }
 0x150   :  { %v132_v42 = vpack.c.bf16 %v130_v15, %v129_v41  ;;  %598 = vmatprep.subr.bf16.mxu1 %v654_v33 }
 0x151   :  { %599 = vmatpush3.bf16.msra.mxu1 %v655_v44 }
 0x156   :  { %292 = vmatmul.mubr.bf16.gmra.mrb[4].mxu0 %v132_v42 }
 0x221   :  { %v283_v52 = vpop.f32.mrb[0].mxu0 }
 0x222   :  { %v284_v53 = vadd.f32 %v283_v52, %v162_v50  ;;  %v285_v54 = vpop.f32.mrb[1].mxu0 }
 0x223   :  { %v286_v55 = vadd.f32 %v285_v54, %v166_v51  ;;  %v287_v56 = vpop.f32.mrb[2].mxu0 }
 0x224   :  { %v288_v57 = vadd.f32 %v287_v56, %v162_v50  ;;  %v289_v58 = vpop.f32.mrb[3].mxu0  ;;  %v302_v60 = vmax.f32 %v284_v53, 0.0 }
 0x225   :  { %v290_v59 = vadd.f32 %v289_v58, %v166_v51  ;;  %v303_v62 = vmax.f32 %v286_v55, 0.0 }
 0x226   :  { %v304_v61 = vmax.f32 %v288_v57, 0.0 }
 0x227   :  { %v305_v63 = vmax.f32 %v290_v59, 0.0 }
 0x228   :  { %v314_v4 = vpack.c.bf16 %v304_v61, %v302_v60 }
 0x229   :  { %v293_v5 = vpop.f32.mrb[4].mxu0  ;;  %v315_v6 = vpack.c.bf16 %v305_v63, %v303_v62 }
 0x22a   :  { %v294_v7 = vadd.f32 %v293_v5, %v162_v50  ;;  %v295_v10 = vpop.f32.mrb[5].mxu0 }
 0x22b   :  { %v296_v11 = vadd.f32 %v295_v10, %v166_v51  ;;  %v297_v12 = vpop.f32.mrb[6].mxu0  ;;  %478 = vmatprep.mubr.bf16.mxu1 %v315_v6 }
 0x22c   :  { %v298_v13 = vadd.f32 %v297_v12, %v162_v50  ;;  %v299_v14 = vpop.f32.mrb[7].mxu0  ;;  %479 = vmatmul.mubr.bf16.vlgmr.msra.gmra.mrb[0].mxu1 %v314_v4  ;;  %v306_v18 = vmax.f32 %v294_v7, 0.0 }
 0x22d   :  { %v300_v17 = vadd.f32 %v299_v14, %v166_v51  ;;  %v307_v20 = vmax.f32 %v296_v11, 0.0 }
 0x22e   :  { %v308_v19 = vmax.f32 %v298_v13, 0.0 }
 0x22f   :  { %v309_v21 = vmax.f32 %v300_v17, 0.0 }
 0x230   :  { %v316_v22 = vpack.c.bf16 %v308_v19, %v306_v18 }
 0x231   :  { %v317_v23 = vpack.c.bf16 %v309_v21, %v307_v20 }
 0x233   :  { %486 = vmatprep.mubr.bf16.mxu1 %v317_v23 }
 0x234   :  { %487 = vmatmul.mubr.bf16.gmra.mrb[4].mxu1 %v316_v22 }
 0x2ff   :  { %v600_v24 = vpop.f32.mrb[0].mxu1 }
 0x300   :  { %v601_v25 = vpop.f32.mrb[1].mxu1 }
 0x301   :  { %v602_v26 = vadd.f32 %v601_v25, %v600_v24  ;;  %v603_v27 = vpop.f32.mrb[2].mxu1 }
 0x302   :  { %v604_v29 = vpop.f32.mrb[3].mxu1 }
 0x303   :  { %v514_v30 = vadd.f32 %v602_v26, %v743_v0  ;;  %v605_v31 = vadd.f32 %v604_v29, %v603_v27 }
 0x305   :  { %v525_v32 = vadd.f32 %v583_v28, %v514_v30  ;;  %v515_v34 = vadd.f32 %v605_v31, %v753_v2 }
 0x307   :  { %529 = vst [vmem:[#allocation4] sm:$0xff] %v525_v32  ;;  %v526_v35 = vadd.f32 %v583_v28, %v515_v34  ;;  %v606_v36 = vpop.f32.mrb[4].mxu1 }
 0x308   :  { %v607_v37 = vpop.f32.mrb[5].mxu1 }
 0x309   :  { %530 = vst [vmem:[#allocation4 + $0x8] sm:$0xff] %v526_v35  ;;  %v608_v8 = vadd.f32 %v607_v37, %v606_v36  ;;  %v609_v38 = vpop.f32.mrb[6].mxu1 }
 0x30a   :  { %v610_v39 = vpop.f32.mrb[7].mxu1 }
 0x30b   :  { %v516_v40 = vadd.f32 %v608_v8, %v748_v1  ;;  %v611_v15 = vadd.f32 %v610_v39, %v609_v38 }
 0x30d   :  { %v527_v41 = vadd.f32 %v583_v28, %v516_v40  ;;  %v517_v0 = vadd.f32 %v611_v15, %v760_v3 }
 0x30f   :  { %531 = vst [vmem:[#allocation4 + $0x10] sm:$0xff] %v527_v41  ;;  %v528_v42 = vadd.f32 %v583_v28, %v517_v0 }
 0x311   :  { %532 = vst [vmem:[#allocation4 + $0x18] sm:$0xff] %v528_v42 }
 0x312   :  { %683 = shalt.err (!%p680_p4)
}
 0x313   :  { %s684_s30 = scalar_lea.hbm %s921_s7, 512 }
 0x314   :  { %p685_p5 = scmp.ne.s32.totalorder %s921_s7, %s684_s30  ;;  %p688_p6 = scmp.lt.u32.totalorder %s684_s30, %s921_s7 }
 0x316   :  { %p690_p7 = pnand %p688_p6, %p685_p5 }
 0x318   :  { %693 = shalt.err (!%p690_p7)
}
 0x319   :  { %s698_s11 = smov 128   ;;  %s699_s12 = smov 8  }
 0x31a   :  { %544 = dma.vmem_to_hbm [thread:$0]  %s539_s6, 512, %s921_s7, [#allocation5], %s698_s11, %s698_s11, %s699_s12  }
 0x31b   :  { %694 = dma.done.wait [#allocation5], 512  }
 0x31c   :  { %695 = vsyncadd [#allocation5], 4294966784 }
 0x31d   :  { %548 = vsyncpa [#allocation5], 1 }

// kernel: decoder_block.13
= control target key start
LH: loop header
LB: loop body
LE: loop exit
PB: predicated region body
PF: predicated region fallthrough
CT: control target
= control target key end

     0   :  { %s1066_s15 = smov 0   ;;  %s1198_s0 = inlined_call_operand.vmem [shape: f32[2,16,128], index: 0, kind: input, shape index: {}]   ;;  %s1199_s1 = inlined_call_operand.vmem [shape: f32[2,16,128], index: 1, kind: input, shape index: {}]   ;;  %s1200_s2 = inlined_call_operand.vmem [shape: f32[2,16,128], index: 2, kind: input, shape index: {}]   ;;  %s1201_s3 = inlined_call_operand.vmem [shape: s32[2,1,16], index: 3, kind: input, shape index: {}]   ;;  %s1202_s4 = inlined_call_operand.vmem [shape: f32[2,16,128], index: 4, kind: output, shape index: {}]  }
   0x1 LB: > { %s890_s16 = sadd.s32 4294967295, %s1033_s15   ;;  %p894_p0 = scmp.ge.s32.totalorder %s1033_s15, 1  ;;  %s1033_s15 = sphi %s1066_s15, %s14_s15  }
   0x2   : > { %p190_p1 = scmp.lt.s32.totalorder %s1033_s15, 3 }
   0x4   : > { %p191_p2 = pnand %p894_p0, %p190_p1 }
   0x5   : > { %p229_p3 = scmp.lt.s32.totalorder (!%p191_p2), %s890_s16, 1  ;;  %v1035_v0 = vmov (!%p191_p2), 0.0   ;;  %vm1036_vm0 = vmmov (!%p191_p2), 0   ;;  %vm263_vm1 = vcmask (!%p191_p2), 261120   ;;  %v315_v8 = vlaneseq (!%p191_p2)  ;;  %s1038_s27 = smov (!%p191_p2), 96  }
   0x6   : > { %194 = sbr.rel (%p191_p2) target bundleno = 1497 (0x5d9), region = 36  ;;  %933 = vmatprep.subr.bf16.mxu0 (!%p191_p2), %v1035_v0  ;;  %935 = vmatprep.mubr.msk.bf16.mxu0 (!%p191_p2), %vm1036_vm0, %v1035_v0  ;;  %v1037_v12 = vmov (!%p191_p2), 0   ;;  %vm322_vm4 = vcmask (!%p191_p2), 130048   ;;  %s1039_s28 = smov (!%p191_p2), 32   ;;  %vm794_vm5 = vcmask (!%p191_p2), 523264   ;;  %vm797_vm6 = vcmask (!%p191_p2), 785408  }
   0x7   : > { %939 = vmatprep.subr.bf16.mxu1 (!%p191_p2), %v1035_v0  ;;  %941 = vmatprep.mubr.msk.bf16.mxu1 (!%p191_p2), %vm1036_vm0, %v1035_v0  ;;  %v316_v10 = vshrl.u32 (!%p191_p2), %v315_v8, 7  ;;  %s1040_s6 = smov (!%p191_p2), 64  }
   0x9   : > { %v317_v11 = vsub.s32 (!%p191_p2), 0, %v316_v10 }
   0xd   : > { %s1204_s16 = smov (!%p229_p3, %s890_s16), 1 }
   0xe   : > { %s1080_s17 = sshll.u32 %s1204_s16, 4  ;;  %s246_s26 = scalar_lea.vmem %s1201_s3, %s1204_s16 }
   0xf   : > { %s238_s20 = scalar_lea.vmem %s1199_s1, %s1080_s17  ;;  %s233_s23 = scalar_lea.vmem %s1198_s0, %s1080_s17  ;;  %v259_v9 = vld [vmem:[%s246_s26] sm:$0x1] }
  0x10   : > { %v255_v1 = vld [vmem:[%s238_s20] sm:$0xff]  ;;  %v256_v2 = vld [vmem:[%s238_s20 + $0x8] sm:$0xff]  ;;  %vm313_vm2 = vcmp.eq.s32.totalorder %v259_v9, 0  ;;  %s243_s5 = scalar_lea.vmem %s1200_s2, %s1080_s17  ;;  %s251_s9 = scalar_lea.vmem %s1202_s4, %s1080_s17 }
  0x11   : > { %v261_v3 = vpack.c.bf16 %v256_v2, %v255_v1  ;;  %v253_v5 = vld [vmem:[%s233_s23] sm:$0xff]  ;;  %v254_v6 = vld [vmem:[%s233_s23 + $0x8] sm:$0xff]  ;;  %v314_v13 = vsel %vm313_vm2, 1, %v1037_v12 }
  0x12   : > { %v260_v7 = vpack.c.bf16 %v254_v6, %v253_v5  ;;  %v1098_v14 = vrot.slane %v314_v13, %v317_v11  ;;  %v257_v35 = vld [vmem:[%s243_s5] sm:$0xff]  ;;  %v258_v36 = vld [vmem:[%s243_s5 + $0x8] sm:$0xff] }
  0x13   : > { %v268_v4 = vsel %vm263_vm1, %v261_v3, 0  ;;  %v1115_v37 = vpack.c.bf16 %v258_v36, %v257_v35 }
  0x14   : > { %934 = vmatpush3.bf16.xpose.msra.mxu0 %v268_v4  ;;  %vm319_vm3 = vcmp.eq.s32.totalorder %v1098_v14, 1 }
  0x15   : > { %951 = vmatprep.subr.bf16.mxu0 %v1035_v0  ;;  %940 = vmatpush3.bf16.msra.mxu1 %v1115_v37 }
  0x16   : > { %945 = vmatprep.subr.bf16.mxu1 %v1035_v0 }
  0x1b   : > { %936 = vmatmul.mubr.msk.bf16.vlgmr.msra.gmra.mrb[0].mxu0 %vm263_vm1, %v260_v7 }
  0x1c   : > { %953 = vmatprep.mubr.msk.bf16.mxu0 %vm1036_vm0, %v1035_v0 }
  0xee   : > { %v304_v15 = vpop.f32.mrb[0].mxu0 }
  0xef   : > { %v311_v16 = vmul.f32 0.17677669, %v304_v15  ;;  %v937_v17 = vpop.f32.mrb[1].mxu0 }
  0xf0   : > { %v307_v18 = vpop.f32.mrb[2].mxu0 }
  0xf1   : > { %v312_v19 = vmul.f32 0.17677669, %v307_v18  ;;  %v938_v20 = vpop.f32.mrb[3].mxu0  ;;  %v320_v21 = vsel %vm319_vm3, -1e+09, %v311_v16 }
  0xf2   : > { %v323_v22 = vsel %vm322_vm4, %v320_v21, -inf }
  0xf3   : > { %324 = vmax.xlane.f32.xlu0 %v323_v22  ;;  %v321_v23 = vsel %vm319_vm3, -1e+09, %v312_v19 }
  0xf4   : > { %v326_v24 = vsel %vm322_vm4, %v321_v23, -inf }
  0xf7   : > { %327 = vmax.xlane.f32.xlu0 %v326_v24 }
 0x10d   : > { %394 = vrot.lane.b32.xlu0 %v261_v3, %s1038_s27 }
 0x111   : > { %645 = vrot.lane.b32.xlu0 %v261_v3, %s1039_s28 }
 0x180   : > { %v325_v25 = vpop.xlane.xlu0 %324 }
 0x181   : > { %v329_v26 = vsub.f32 %v320_v21, %v325_v25 }
 0x183   : > { %v331_v27 = vmul.f32 1.442695, %v329_v26 }
 0x184   : > { %v328_v28 = vpop.xlane.xlu0 %327 }
 0x185   : > { %995 = vpow2.f32 %v331_v27  ;;  %v330_v29 = vsub.f32 %v321_v23, %v328_v28 }
 0x187   : > { %v333_v30 = vmul.f32 1.442695, %v330_v29 }
 0x188   : > { %v395_v42 = vpop.permute.xlu0 %394 }
 0x189   : > { %997 = vpow2.f32 %v333_v30  ;;  %v400_v46 = vsel %vm263_vm1, %v395_v42, 0 }
 0x18c   : > { %v646_v50 = vpop.permute.xlu0 %645 }
 0x18d   : > { %v651_v52 = vsel %vm263_vm1, %v646_v50, 0 }
 0x18f   : > { %v996_v31 = vpop.eup %995 }
 0x190   : > { %v335_v32 = vsel %vm322_vm4, %v996_v31, 0.0 }
 0x191   : > { %336 = vadd.xlane.f32.xlu1 %v335_v32 }
 0x193   : > { %v998_v33 = vpop.eup %997 }
 0x194   : > { %v338_v34 = vsel %vm322_vm4, %v998_v33, 0.0 }
 0x195   : > { %339 = vadd.xlane.f32.xlu1 %v338_v34 }
 0x1a6   : > { %391 = vrot.lane.b32.xlu1 %v260_v7, %s1038_s27 }
 0x1aa   : > { %520 = vrot.lane.b32.xlu1 %v261_v3, %s1040_s6 }
 0x1ae   : > { %518 = vrot.lane.b32.xlu1 %v260_v7, %s1040_s6 }
 0x1b2   : > { %643 = vrot.lane.b32.xlu1 %v260_v7, %s1039_s28 }
 0x21e   : > { %v337_v38 = vpop.xlane.xlu1 %336 }
 0x21f   : > { %999 = vrcp.f32 %v337_v38 }
 0x222   : > { %v340_v39 = vpop.xlane.xlu1 %339 }
 0x223   : > { %1001 = vrcp.f32 %v340_v39 }
 0x226   : > { %v392_v45 = vpop.permute.xlu1 %391 }
 0x229   : > { %v1000_v40 = vpop.eup %999 }
 0x22a   : > { %v343_v43 = vmul.f32 %v1000_v40, %v996_v31  ;;  %v521_v48 = vpop.permute.xlu1 %520 }
 0x22b   : > { %v526_v49 = vsel %vm263_vm1, %v521_v48, 0 }
 0x22d   : > { %v1002_v41 = vpop.eup %1001 }
 0x22e   : > { %v344_v44 = vmul.f32 %v1002_v41, %v998_v33  ;;  %v519_v51 = vpop.permute.xlu1 %518 }
 0x230   : > { %v345_v47 = vpack.c.bf16 %v344_v44, %v343_v43 }
 0x232   : > { %942 = vmatmul.mubr.msk.bf16.vlgmr.msra.gmra.mrb[0].mxu1 %vm322_vm4, %v345_v47  ;;  %v644_v53 = vpop.permute.xlu1 %643 }
 0x233   : > { %946 = vmatpush3.bf16.xpose.msra.mxu1 %v400_v46  ;;  %947 = vmatprep.mubr.msk.bf16.mxu1 %vm1036_vm0, %v1035_v0 }
 0x234   : > { %957 = vmatprep.subr.bf16.mxu1 %v1035_v0 }
 0x23a   : > { %948 = vmatmul.mubr.msk.bf16.vlgmr.msra.gmra.mrb[4].mxu1 %vm263_vm1, %v392_v45 }
 0x23b   : > { %958 = vmatpush3.bf16.xpose.msra.mxu1 %v526_v49  ;;  %959 = vmatprep.mubr.msk.bf16.mxu1 %vm1036_vm0, %v1035_v0 }
 0x23c   : > { %969 = vmatprep.subr.bf16.mxu1 %v1035_v0 }
 0x242   : > { %960 = vmatmul.mubr.msk.bf16.vlgmr.msra.gmra.mrb[8].mxu1 %vm263_vm1, %v519_v51 }
 0x243   : > { %970 = vmatpush3.bf16.xpose.msra.mxu1 %v651_v52  ;;  %971 = vmatprep.mubr.msk.bf16.mxu1 %vm1036_vm0, %v1035_v0 }
 0x24a   : > { %972 = vmatmul.mubr.msk.bf16.vlgmr.msra.gmra.mrb[12].mxu1 %vm263_vm1, %v644_v53 }
 0x305   : > { %v1138_v54 = vpop.f32.mrb[0].mxu1 }
 0x306   : > { %v943_v55 = vpop.f32.mrb[1].mxu1 }
 0x307   : > { %v1140_v56 = vpop.f32.mrb[2].mxu1 }
 0x308   : > { %v944_v57 = vpop.f32.mrb[3].mxu1 }
 0x30d   : > { %v436_v58 = vpop.f32.mrb[4].mxu1 }
 0x30e   : > { %v443_v59 = vmul.f32 0.17677669, %v436_v58  ;;  %v949_v60 = vpop.f32.mrb[5].mxu1 }
 0x30f   : > { %v439_v61 = vpop.f32.mrb[6].mxu1 }
 0x310   : > { %v444_v62 = vmul.f32 0.17677669, %v439_v61  ;;  %v950_v63 = vpop.f32.mrb[7].mxu1  ;;  %v445_v1 = vsel %vm319_vm3, -1e+09, %v443_v59 }
 0x311   : > { %v447_v2 = vsel %vm322_vm4, %v445_v1, -inf }
 0x312   : > { %448 = vmax.xlane.f32.xlu0 %v447_v2  ;;  %v446_v3 = vsel %vm319_vm3, -1e+09, %v444_v62 }
 0x313   : > { %v450_v4 = vsel %vm322_vm4, %v446_v3, -inf }
 0x314   : > { %451 = vmax.xlane.f32.xlu1 %v450_v4 }
 0x315   : > { %v562_v5 = vpop.f32.mrb[8].mxu1 }
 0x316   : > { %v569_v6 = vmul.f32 0.17677669, %v562_v5  ;;  %v961_v7 = vpop.f32.mrb[9].mxu1 }
 0x317   : > { %v565_v8 = vpop.f32.mrb[10].mxu1 }
 0x318   : > { %v570_v9 = vmul.f32 0.17677669, %v565_v8  ;;  %v962_v10 = vpop.f32.mrb[11].mxu1  ;;  %v571_v11 = vsel %vm319_vm3, -1e+09, %v569_v6 }
 0x319   : > { %v573_v12 = vsel %vm322_vm4, %v571_v11, -inf }
 0x31a   : > { %574 = vmax.xlane.f32.xlu0 %v573_v12  ;;  %v572_v13 = vsel %vm319_vm3, -1e+09, %v570_v9 }
 0x31b   : > { %v576_v16 = vsel %vm322_vm4, %v572_v13, -inf }
 0x31d   : > { %v687_v15 = vpop.f32.mrb[12].mxu1 }
 0x31e   : > { %v694_v17 = vmul.f32 0.17677669, %v687_v15  ;;  %577 = vmax.xlane.f32.xlu0 %v576_v16  ;;  %v973_v18 = vpop.f32.mrb[13].mxu1 }
 0x31f   : > { %v690_v19 = vpop.f32.mrb[14].mxu1 }
 0x320   : > { %v695_v20 = vmul.f32 0.17677669, %v690_v19  ;;  %v696_v21 = vsel %vm319_vm3, -1e+09, %v694_v17  ;;  %v974_v22 = vpop.f32.mrb[15].mxu1 }
 0x321   : > { %v698_v23 = vsel %vm322_vm4, %v696_v21, -inf }
 0x322   : > { %699 = vmax.xlane.f32.xlu0 %v698_v23  ;;  %v697_v24 = vsel %vm319_vm3, -1e+09, %v695_v20 }
 0x323   : > { %v701_v25 = vsel %vm322_vm4, %v697_v24, -inf }
 0x324   : > { %702 = vmax.xlane.f32.xlu1 %v701_v25 }
 0x39f   : > { %v449_v26 = vpop.xlane.xlu0 %448 }
 0x3a0   : > { %v453_v27 = vsub.f32 %v445_v1, %v449_v26 }
 0x3a1   : > { %v452_v28 = vpop.xlane.xlu1 %451 }
 0x3a2   : > { %v455_v29 = vmul.f32 1.442695, %v453_v27  ;;  %v454_v30 = vsub.f32 %v446_v3, %v452_v28 }
 0x3a4   : > { %1003 = vpow2.f32 %v455_v29  ;;  %v457_v31 = vmul.f32 1.442695, %v454_v30 }
 0x3a6   : > { %1005 = vpow2.f32 %v457_v31 }
 0x3a7   : > { %v575_v32 = vpop.xlane.xlu0 %574 }
 0x3a8   : > { %v579_v33 = vsub.f32 %v571_v11, %v575_v32 }
 0x3aa   : > { %v581_v34 = vmul.f32 1.442695, %v579_v33 }
 0x3ab   : > { %v578_v35 = vpop.xlane.xlu0 %577 }
 0x3ac   : > { %1007 = vpow2.f32 %v581_v34  ;;  %v580_v36 = vsub.f32 %v572_v13, %v578_v35 }
 0x3ae   : > { %v1004_v38 = vpop.eup %1003  ;;  %v583_v14 = vmul.f32 1.442695, %v580_v36 }
 0x3af   : > { %v700_v39 = vpop.xlane.xlu0 %699  ;;  %v459_v40 = vsel %vm322_vm4, %v1004_v38, 0.0 }
 0x3b0   : > { %v1006_v41 = vpop.eup %1005  ;;  %1009 = vpow2.f32 %v583_v14  ;;  %v704_v42 = vsub.f32 %v696_v21, %v700_v39  ;;  %460 = vadd.xlane.f32.xlu0 %v459_v40 }
 0x3b1   : > { %v462_v43 = vsel %vm322_vm4, %v1006_v41, 0.0  ;;  %v703_v51 = vpop.xlane.xlu1 %702 }
 0x3b2   : > { %v706_v44 = vmul.f32 1.442695, %v704_v42  ;;  %463 = vadd.xlane.f32.xlu1 %v462_v43  ;;  %v705_v52 = vsub.f32 %v697_v24, %v703_v51 }
 0x3b4   : > { %1011 = vpow2.f32 %v706_v44  ;;  %v708_v53 = vmul.f32 1.442695, %v705_v52 }
 0x3b6   : > { %v1008_v45 = vpop.eup %1007  ;;  %1013 = vpow2.f32 %v708_v53 }
 0x3b7   : > { %v585_v46 = vsel %vm322_vm4, %v1008_v45, 0.0 }
 0x3b8   : > { %586 = vadd.xlane.f32.xlu0 %v585_v46 }
 0x3ba   : > { %v1010_v47 = vpop.eup %1009 }
 0x3bb   : > { %v588_v48 = vsel %vm322_vm4, %v1010_v47, 0.0 }
 0x3bc   : > { %589 = vadd.xlane.f32.xlu1 %v588_v48 }
 0x3be   : > { %v1012_v49 = vpop.eup %1011 }
 0x3bf   : > { %v710_v50 = vsel %vm322_vm4, %v1012_v49, 0.0 }
 0x3c0   : > { %711 = vadd.xlane.f32.xlu0 %v710_v50  ;;  %v1014_v55 = vpop.eup %1013 }
 0x3c1   : > { %v713_v57 = vsel %vm322_vm4, %v1014_v55, 0.0 }
 0x3cd   : > { %596 = vrot.lane.b32.xlu1 %v1115_v37, %s1040_s6 }
 0x3d6   : > { %471 = vrot.lane.b32.xlu0 %v1115_v37, %s1038_s27 }
 0x3f1   : > { %714 = vadd.xlane.f32.xlu1 %v713_v57 }
 0x402   : > { %721 = vrot.lane.b32.xlu1 %v1115_v37, %s1039_s28 }
 0x43d   : > { %v461_v59 = vpop.xlane.xlu0 %460 }
 0x43f   : > { %v464_v58 = vpop.xlane.xlu1 %463 }
 0x440   : > { %1015 = vrcp.f32 %v464_v58 }
 0x441   : > { %1017 = vrcp.f32 %v461_v59 }
 0x445   : > { %v587_v60 = vpop.xlane.xlu0 %586 }
 0x449   : > { %v590_v61 = vpop.xlane.xlu1 %589 }
 0x44a   : > { %1019 = vrcp.f32 %v590_v61  ;;  %v1016_v62 = vpop.eup %1015 }
 0x44b   : > { %1021 = vrcp.f32 %v587_v60  ;;  %v1018_v1 = vpop.eup %1017  ;;  %v468_v2 = vmul.f32 %v1016_v62, %v1006_v41 }
 0x44c   : > { %v467_v3 = vmul.f32 %v1018_v1, %v1004_v38 }
 0x44d   : > { %v712_v63 = vpop.xlane.xlu0 %711  ;;  %v597_v37 = vpop.permute.xlu1 %596 }
 0x44e   : > { %v469_v5 = vpack.c.bf16 %v468_v2, %v467_v3  ;;  %1023 = vrcp.f32 %v712_v63 }
 0x451   : > { %v472_v4 = vpop.permute.xlu0 %471 }
 0x452   : > { %952 = vmatpush3.bf16.msra.mxu0 %v472_v4 }
 0x453   : > { %963 = vmatprep.subr.bf16.mxu0 %v1035_v0 }
 0x454   : > { %v1020_v6 = vpop.eup %1019 }
 0x455   : > { %954 = vmatmul.mubr.msk.bf16.vlgmr.msra.gmra.mrb[4].mxu0 %vm322_vm4, %v469_v5  ;;  %v1022_v7 = vpop.eup %1021  ;;  %v594_v8 = vmul.f32 %v1020_v6, %v1010_v47 }
 0x456   : > { %964 = vmatpush3.bf16.msra.mxu0 %v597_v37  ;;  %965 = vmatprep.mubr.msk.bf16.mxu0 %vm1036_vm0, %v1035_v0  ;;  %v593_v9 = vmul.f32 %v1022_v7, %v1008_v45 }
 0x457   : > { %975 = vmatprep.subr.bf16.mxu0 %v1035_v0 }
 0x458   : > { %v595_v10 = vpack.c.bf16 %v594_v8, %v593_v9  ;;  %v1024_v13 = vpop.eup %1023 }
 0x459   : > { %v718_v16 = vmul.f32 %v1024_v13, %v1012_v49 }
 0x45d   : > { %966 = vmatmul.mubr.msk.bf16.vlgmr.msra.gmra.mrb[8].mxu0 %vm322_vm4, %v595_v10 }
 0x45e   : > { %977 = vmatprep.mubr.msk.bf16.mxu0 %vm1036_vm0, %v1035_v0 }
 0x47e   : > { %v715_v11 = vpop.xlane.xlu1 %714 }
 0x47f   : > { %1025 = vrcp.f32 %v715_v11 }
 0x482   : > { %v722_v12 = vpop.permute.xlu1 %721 }
 0x483   : > { %976 = vmatpush3.bf16.msra.mxu0 %v722_v12 }
 0x489   : > { %v1026_v15 = vpop.eup %1025 }
 0x48a   : > { %v719_v17 = vmul.f32 %v1026_v15, %v1014_v55 }
 0x48c   : > { %v720_v18 = vpack.c.bf16 %v719_v17, %v718_v16 }
 0x48e   : > { %978 = vmatmul.mubr.msk.bf16.vlgmr.msra.gmra.mrb[12].mxu0 %vm322_vm4, %v720_v18 }
 0x528   : > { %v511_v19 = vpop.f32.mrb[4].mxu0 }
 0x529   : > { %770 = vrot.lane.b32.xlu1 %v511_v19, %s1039_s28  ;;  %v955_v20 = vpop.f32.mrb[5].mxu0 }
 0x52a   : > { %v514_v21 = vpop.f32.mrb[6].mxu0 }
 0x52b   : > { %772 = vrot.lane.b32.xlu0 %v514_v21, %s1039_s28  ;;  %v956_v0 = vpop.f32.mrb[7].mxu0 }
 0x530   : > { %v636_v22 = vpop.f32.mrb[8].mxu0 }
 0x531   : > { %778 = vrot.lane.b32.xlu1 %v636_v22, %s1040_s6  ;;  %v967_v23 = vpop.f32.mrb[9].mxu0 }
 0x532   : > { %v639_v24 = vpop.f32.mrb[10].mxu0 }
 0x533   : > { %780 = vrot.lane.b32.xlu0 %v639_v24, %s1040_s6  ;;  %v968_v25 = vpop.f32.mrb[11].mxu0 }
 0x561   : > { %v761_v26 = vpop.f32.mrb[12].mxu0 }
 0x562   : > { %786 = vrot.lane.b32.xlu1 %v761_v26, %s1038_s27  ;;  %v979_v27 = vpop.f32.mrb[13].mxu0 }
 0x563   : > { %v764_v28 = vpop.f32.mrb[14].mxu0 }
 0x564   : > { %788 = vrot.lane.b32.xlu0 %v764_v28, %s1038_s27  ;;  %v980_v29 = vpop.f32.mrb[15].mxu0 }
 0x59b   : > { %v771_v30 = vpop.permute.xlu1 %770 }
 0x59c   : > { %v792_v34 = vsel %vm263_vm1, %v1138_v54, %v771_v30 }
 0x59d   : > { %v773_v31 = vpop.permute.xlu0 %772 }
 0x59e   : > { %v793_v38 = vsel %vm263_vm1, %v1140_v56, %v773_v31 }
 0x5a3   : > { %v779_v32 = vpop.permute.xlu1 %778 }
 0x5a4   : > { %v795_v35 = vsel %vm794_vm5, %v792_v34, %v779_v32 }
 0x5a5   : > { %v781_v33 = vpop.permute.xlu0 %780 }
 0x5a6   : > { %v796_v39 = vsel %vm794_vm5, %v793_v38, %v781_v33 }
 0x5d4   : > { %v787_v36 = vpop.permute.xlu1 %786 }
 0x5d5   : > { %v798_v14 = vsel %vm797_vm6, %v795_v35, %v787_v36 }
 0x5d6   : > { %800 = vst [vmem:[%s251_s9] sm:$0xff] %v798_v14  ;;  %v789_v40 = vpop.permute.xlu0 %788 }
 0x5d7   : > { %v799_v41 = vsel %vm797_vm6, %v796_v39, %v789_v40 }
 0x5d8   : > { %801 = vst [vmem:[%s251_s9 + $0x8] sm:$0xff] %v799_v41 }
 0x5d9 PF: > { %s14_s15 = sadd.s32 1, %s1033_s15  }
 0x5da   : > { %p11_p4 = scmp.ge.s32.totalorder %s14_s15, 4  }
 0x5dc   :  { %13 = sbr.rel (!%p11_p4) target bundleno = 1 (0x1), region = 75 }

</bundles_post_ra>
